<compile_context>
chip_gen: v7x
topology: tpu7x:2x2x1
jax: 0.10.0
libtpu: 0.0.40
codegen_flags: <defaults>
</compile_context>

<pallas_src>
import functools

import jax
import jax.numpy as jnp
from jax import lax
from jax.experimental import pallas as pl
from jax.experimental.pallas import tpu as pltpu

EPS = 1e-5                      # nn.BatchNorm2d default
LANE = 128
VMEM_LIMIT = 48 * 1024 * 1024   # conservative budget that also fits v7x (64 MiB phys)


def _round_up(x, m):
    return (x + m - 1) // m * m


def _pick_tile(m, candidates=(1024, 512, 256, 128, 64, 32, 16, 8)):
    for t in candidates:
        if m % t == 0:
            return t
    return m


def _conv_stats_kernel(xp_ref, w_ref, conv_ref, stats_ref, *,
                       oh, ow, kh, kw, stride):
    """One batch image per grid step: 3x3 conv (9 shifted matmuls) + BN stats."""
    m = oh * ow

    @pl.when(pl.program_id(0) == 0)
    def _init():
        stats_ref[...] = jnp.zeros_like(stats_ref)

    acc = jnp.zeros((m, w_ref.shape[-1]), jnp.float32)
    for di in range(kh):
        for dj in range(kw):
            if stride == 1:
                tap = xp_ref[0, di:di + oh, dj:dj + ow, :]
            else:
                tap = xp_ref[0, pl.ds(di, oh, stride), pl.ds(dj, ow, stride), :]
            tap2d = tap.reshape(m, tap.shape[-1])                  # (OH*OW, Cin) bf16
            acc = acc + jnp.dot(tap2d, w_ref[di * kw + dj],
                                preferred_element_type=jnp.float32)

    conv_ref[0] = acc                                              # raw conv, f32
    # cross-tile BatchNorm statistics (sum & sum-of-squares, f32 accumulators)
    stats_ref[0:1, :] = stats_ref[0:1, :] + jnp.sum(acc, axis=0, keepdims=True)
    stats_ref[1:2, :] = stats_ref[1:2, :] + jnp.sum(acc * acc, axis=0, keepdims=True)


def _bn_relu_kernel(conv_ref, scale_ref, shift_ref, o_ref):
    y = conv_ref[...] * scale_ref[...] + shift_ref[...]
    o_ref[...] = jnp.maximum(y, 0.0).astype(o_ref.dtype)


def conv_bn_relu(x_nchw, weight_oihw, gamma, beta, *, stride=1, padding=1):
    N, Cin, H, W = x_nchw.shape
    Cout, _, KH, KW = weight_oihw.shape
    OH = (H + 2 * padding - KH) // stride + 1
    OW = (W + 2 * padding - KW) // stride + 1
    OHW = OH * OW
    Coutp = _round_up(Cout, LANE)

    # ---- layout glue (no 9x im2col expansion): NCHW -> padded NHWC, bf16 ----
    x = jnp.transpose(x_nchw, (0, 2, 3, 1)).astype(jnp.bfloat16)
    xp = jnp.pad(x, ((0, 0), (padding, padding), (padding, padding), (0, 0)))
    HP, WP = xp.shape[1], xp.shape[2]

    # weight OIHW -> (KH*KW, Cin, Coutp) bf16, zero-padded on the lane axis
    w = jnp.transpose(weight_oihw, (2, 3, 1, 0)).reshape(KH * KW, Cin, Cout)
    w = jnp.pad(w, ((0, 0), (0, 0), (0, Coutp - Cout))).astype(jnp.bfloat16)

    gamma_p = jnp.pad(gamma.astype(jnp.float32), (0, Coutp - Cout))
    beta_p = jnp.pad(beta.astype(jnp.float32), (0, Coutp - Cout))

    # ---- pass 1: conv + per-channel sum / sum-of-squares -------------------
    # TODO(synk): for very large H*W (e.g. 224x224 stem layers) add intra-image
    # output-row tiling with halo DMA so a single image's conv tile need not fit
    # in VMEM at once.
    kern1 = functools.partial(_conv_stats_kernel, oh=OH, ow=OW,
                              kh=KH, kw=KW, stride=stride)
    conv_raw, stats = pl.pallas_call(
        kern1,
        grid=(N,),
        out_shape=(jax.ShapeDtypeStruct((N, OHW, Coutp), jnp.float32),
                   jax.ShapeDtypeStruct((2, Coutp), jnp.float32)),
        in_specs=[
            pl.BlockSpec((1, HP, WP, Cin), lambda n: (n, 0, 0, 0)),
            pl.BlockSpec((KH * KW, Cin, Coutp), lambda n: (0, 0, 0)),  # resident weight
        ],
        out_specs=(
            pl.BlockSpec((1, OHW, Coutp), lambda n: (n, 0, 0)),
            pl.BlockSpec((2, Coutp), lambda n: (0, 0)),                # resident accumulator
        ),
        compiler_params=pltpu.CompilerParams(
            dimension_semantics=("arbitrary",),
            vmem_limit_bytes=VMEM_LIMIT),
    )(xp, w)

    # ---- finalize BatchNorm (training-mode, biased variance) -> scale/shift ----
    count = jnp.float32(N * OHW)
    mean = stats[0] / count
    var = jnp.maximum(stats[1] / count - mean * mean, 0.0)
    scale = gamma_p * lax.rsqrt(var + EPS)
    shift = beta_p - mean * scale
    scale2d = scale.reshape(1, Coutp)
    shift2d = shift.reshape(1, Coutp)

    # ---- pass 2: lane-dense normalize + ReLU over (N*OH*OW, Coutp) tiles ----
    Mflat = N * OHW
    conv_flat = conv_raw.reshape(Mflat, Coutp)
    TM = _pick_tile(Mflat)
    out_flat = pl.pallas_call(
        _bn_relu_kernel,
        grid=(Mflat // TM,),
        out_shape=jax.ShapeDtypeStruct((Mflat, Coutp), jnp.float32),
        in_specs=[
            pl.BlockSpec((TM, Coutp), lambda i: (i, 0)),
            pl.BlockSpec((1, Coutp), lambda i: (0, 0)),
            pl.BlockSpec((1, Coutp), lambda i: (0, 0)),
        ],
        out_specs=pl.BlockSpec((TM, Coutp), lambda i: (i, 0)),
        compiler_params=pltpu.CompilerParams(
            dimension_semantics=("parallel",),
            vmem_limit_bytes=VMEM_LIMIT),
    )(conv_flat, scale2d, shift2d)

    out = out_flat.reshape(N, OH, OW, Coutp)[:, :, :, :Cout]
    return jnp.transpose(out, (0, 3, 1, 2))                       # back to NCHW


def _reference(x, weight, gamma, beta, stride, padding):
    conv = lax.conv_general_dilated(
        x, weight, window_strides=(stride, stride),
        padding=((padding, padding), (padding, padding)),
        dimension_numbers=("NCHW", "OIHW", "NCHW"))
    mean = conv.mean(axis=(0, 2, 3), keepdims=True)
    var = ((conv - mean) ** 2).mean(axis=(0, 2, 3), keepdims=True)
    y = (conv - mean) * lax.rsqrt(var + EPS)
    y = y * gamma.reshape(1, -1, 1, 1) + beta.reshape(1, -1, 1, 1)
    return jnp.maximum(y, 0.0)


if __name__ == "__main__":
    key = jax.random.PRNGKey(0)
    kx, kw = jax.random.split(key)

    N, Cin, H, W = 2, 4, 16, 16
    Cout, stride, padding = 8, 1, 1

    x = jax.random.normal(kx, (N, Cin, H, W), dtype=jnp.float32)
    weight = 0.1 * jax.random.normal(kw, (Cout, Cin, 3, 3), dtype=jnp.float32)
    gamma = jnp.ones((Cout,), dtype=jnp.float32)   # BatchNorm2d default init
    beta = jnp.zeros((Cout,), dtype=jnp.float32)

    out = conv_bn_relu(x, weight, gamma, beta, stride=stride, padding=padding)
    out = jax.block_until_ready(out)

    ref = _reference(x, weight, gamma, beta, stride, padding)
    assert out.shape == ref.shape == (N, Cout, H // stride, W // stride)
    # bf16 matmul operands -> slightly looser tolerance than the all-f32 version
    assert jnp.allclose(out, ref, atol=2e-2, rtol=2e-2), "mismatch vs reference"

    print("KERNEL_OK")
</pallas_src>

<mosaic_0001>
module attributes {stable_mosaic.version = 11 : i64} {
  func.func @_conv_stats_kernel(%arg0: i32, %arg1: memref<1x18x18x4xbf16, #tpu.memory_space<vmem>>, %arg2: memref<9x4x128xbf16, #tpu.memory_space<vmem>>, %arg3: memref<1x256x128xf32, #tpu.memory_space<vmem>>, %arg4: memref<2x128xf32, #tpu.memory_space<vmem>>) attributes {dimension_semantics = [#tpu.dimension_semantics<arbitrary>], iteration_bounds = array<i64: 2>, scalar_prefetch = 0 : i64, scratch_operands = 0 : i64, tpu.core_type = #tpu.core_type<tc>, window_params = [{transform_indices = @transform_0, window_bounds = array<i64: 1, 18, 18, 4>}, {pipeline_mode = #tpu.pipeline_mode<synchronous>, transform_indices = @transform_1, window_bounds = array<i64: 9, 4, 128>}, {transform_indices = @transform_2, window_bounds = array<i64: 1, 256, 128>}, {pipeline_mode = #tpu.pipeline_mode<synchronous>, transform_indices = @transform_3, window_bounds = array<i64: 2, 128>}]} {
    %c0_i32 = arith.constant 0 : i32
    %0 = arith.cmpi eq, %arg0, %c0_i32 : i32
    %1 = arith.extui %0 : i1 to i32
    %c0_i32_0 = arith.constant 0 : i32
    %2 = arith.cmpi ne, %1, %c0_i32_0 : i32
    scf.if %2 {
      %cst_77 = arith.constant 0.000000e+00 : f32
      %81 = vector.broadcast %cst_77 : f32 to vector<2x128xf32>
      %c0_78 = arith.constant 0 : index
      %c0_79 = arith.constant 0 : index
      %82 = vector.load %arg4[%c0_78, %c0_79] : memref<2x128xf32, #tpu.memory_space<vmem>>, vector<2x128xf32>
      tpu.vector_store %arg4[%c0_78, %c0_79], %81 {strides = array<i32>} : memref<2x128xf32, #tpu.memory_space<vmem>>, vector<2x128xf32>,
    } else {
    }
    %cst = arith.constant 0.000000e+00 : f32
    %3 = vector.broadcast %cst : f32 to vector<256x128xf32>
    %c0 = arith.constant 0 : index
    %c0_1 = arith.constant 0 : index
    %c0_2 = arith.constant 0 : index
    %c0_3 = arith.constant 0 : index
    %4 = vector.load %arg1[%c0, %c0_1, %c0_2, %c0_3] : memref<1x18x18x4xbf16, #tpu.memory_space<vmem>>, vector<1x16x16x4xbf16>
    %5 = vector.shape_cast %4 : vector<1x16x16x4xbf16> to vector<16x16x4xbf16>
    %6 = vector.shape_cast %5 : vector<16x16x4xbf16> to vector<256x4xbf16>
    %c0_4 = arith.constant 0 : index
    %c0_5 = arith.constant 0 : index
    %c0_6 = arith.constant 0 : index
    %7 = vector.load %arg2[%c0_4, %c0_5, %c0_6] : memref<9x4x128xbf16, #tpu.memory_space<vmem>>, vector<1x4x128xbf16>
    %8 = vector.shape_cast %7 : vector<1x4x128xbf16> to vector<4x128xbf16>
    %cst_7 = arith.constant dense<0.000000e+00> : vector<256x128xf32>
    %9 = tpu.matmul %6, %8, %cst_7 {dimension_numbers = #tpu.dot_dimension_numbers<[1], [0], [0], [1], [0, 0, 1, 1], [], []>} : vector<256x4xbf16>, vector<4x128xbf16>, vector<256x128xf32> -> vector<256x128xf32>
    %10 = arith.addf %3, %9 : vector<256x128xf32>
    %c0_8 = arith.constant 0 : index
    %c0_9 = arith.constant 0 : index
    %c1 = arith.constant 1 : index
    %c0_10 = arith.constant 0 : index
    %11 = vector.load %arg1[%c0_8, %c0_9, %c1, %c0_10] : memref<1x18x18x4xbf16, #tpu.memory_space<vmem>>, vector<1x16x16x4xbf16>
    %12 = vector.shape_cast %11 : vector<1x16x16x4xbf16> to vector<16x16x4xbf16>
    %13 = vector.shape_cast %12 : vector<16x16x4xbf16> to vector<256x4xbf16>
    %c1_11 = arith.constant 1 : index
    %c0_12 = arith.constant 0 : index
    %c0_13 = arith.constant 0 : index
    %14 = vector.load %arg2[%c1_11, %c0_12, %c0_13] : memref<9x4x128xbf16, #tpu.memory_space<vmem>>, vector<1x4x128xbf16>
    %15 = vector.shape_cast %14 : vector<1x4x128xbf16> to vector<4x128xbf16>
    %cst_14 = arith.constant dense<0.000000e+00> : vector<256x128xf32>
    %16 = tpu.matmul %13, %15, %cst_14 {dimension_numbers = #tpu.dot_dimension_numbers<[1], [0], [0], [1], [0, 0, 1, 1], [], []>} : vector<256x4xbf16>, vector<4x128xbf16>, vector<256x128xf32> -> vector<256x128xf32>
    %17 = arith.addf %10, %16 : vector<256x128xf32>
    %c0_15 = arith.constant 0 : index
    %c0_16 = arith.constant 0 : index
    %c2 = arith.constant 2 : index
    %c0_17 = arith.constant 0 : index
    %18 = vector.load %arg1[%c0_15, %c0_16, %c2, %c0_17] : memref<1x18x18x4xbf16, #tpu.memory_space<vmem>>, vector<1x16x16x4xbf16>
    %19 = vector.shape_cast %18 : vector<1x16x16x4xbf16> to vector<16x16x4xbf16>
    %20 = vector.shape_cast %19 : vector<16x16x4xbf16> to vector<256x4xbf16>
    %c2_18 = arith.constant 2 : index
    %c0_19 = arith.constant 0 : index
    %c0_20 = arith.constant 0 : index
    %21 = vector.load %arg2[%c2_18, %c0_19, %c0_20] : memref<9x4x128xbf16, #tpu.memory_space<vmem>>, vector<1x4x128xbf16>
    %22 = vector.shape_cast %21 : vector<1x4x128xbf16> to vector<4x128xbf16>
    %cst_21 = arith.constant dense<0.000000e+00> : vector<256x128xf32>
    %23 = tpu.matmul %20, %22, %cst_21 {dimension_numbers = #tpu.dot_dimension_numbers<[1], [0], [0], [1], [0, 0, 1, 1], [], []>} : vector<256x4xbf16>, vector<4x128xbf16>, vector<256x128xf32> -> vector<256x128xf32>
    %24 = arith.addf %17, %23 : vector<256x128xf32>
    %c0_22 = arith.constant 0 : index
    %c1_23 = arith.constant 1 : index
    %c0_24 = arith.constant 0 : index
    %c0_25 = arith.constant 0 : index
    %25 = vector.load %arg1[%c0_22, %c1_23, %c0_24, %c0_25] : memref<1x18x18x4xbf16, #tpu.memory_space<vmem>>, vector<1x16x16x4xbf16>
    %26 = vector.shape_cast %25 : vector<1x16x16x4xbf16> to vector<16x16x4xbf16>
    %27 = vector.shape_cast %26 : vector<16x16x4xbf16> to vector<256x4xbf16>
    %c3 = arith.constant 3 : index
    %c0_26 = arith.constant 0 : index
    %c0_27 = arith.constant 0 : index
    %28 = vector.load %arg2[%c3, %c0_26, %c0_27] : memref<9x4x128xbf16, #tpu.memory_space<vmem>>, vector<1x4x128xbf16>
    %29 = vector.shape_cast %28 : vector<1x4x128xbf16> to vector<4x128xbf16>
    %cst_28 = arith.constant dense<0.000000e+00> : vector<256x128xf32>
    %30 = tpu.matmul %27, %29, %cst_28 {dimension_numbers = #tpu.dot_dimension_numbers<[1], [0], [0], [1], [0, 0, 1, 1], [], []>} : vector<256x4xbf16>, vector<4x128xbf16>, vector<256x128xf32> -> vector<256x128xf32>
    %31 = arith.addf %24, %30 : vector<256x128xf32>
    %c0_29 = arith.constant 0 : index
    %c1_30 = arith.constant 1 : index
    %c1_31 = arith.constant 1 : index
    %c0_32 = arith.constant 0 : index
    %32 = vector.load %arg1[%c0_29, %c1_30, %c1_31, %c0_32] : memref<1x18x18x4xbf16, #tpu.memory_space<vmem>>, vector<1x16x16x4xbf16>
    %33 = vector.shape_cast %32 : vector<1x16x16x4xbf16> to vector<16x16x4xbf16>
    %34 = vector.shape_cast %33 : vector<16x16x4xbf16> to vector<256x4xbf16>
    %c4 = arith.constant 4 : index
    %c0_33 = arith.constant 0 : index
    %c0_34 = arith.constant 0 : index
    %35 = vector.load %arg2[%c4, %c0_33, %c0_34] : memref<9x4x128xbf16, #tpu.memory_space<vmem>>, vector<1x4x128xbf16>
    %36 = vector.shape_cast %35 : vector<1x4x128xbf16> to vector<4x128xbf16>
    %cst_35 = arith.constant dense<0.000000e+00> : vector<256x128xf32>
    %37 = tpu.matmul %34, %36, %cst_35 {dimension_numbers = #tpu.dot_dimension_numbers<[1], [0], [0], [1], [0, 0, 1, 1], [], []>} : vector<256x4xbf16>, vector<4x128xbf16>, vector<256x128xf32> -> vector<256x128xf32>
    %38 = arith.addf %31, %37 : vector<256x128xf32>
    %c0_36 = arith.constant 0 : index
    %c1_37 = arith.constant 1 : index
    %c2_38 = arith.constant 2 : index
    %c0_39 = arith.constant 0 : index
    %39 = vector.load %arg1[%c0_36, %c1_37, %c2_38, %c0_39] : memref<1x18x18x4xbf16, #tpu.memory_space<vmem>>, vector<1x16x16x4xbf16>
    %40 = vector.shape_cast %39 : vector<1x16x16x4xbf16> to vector<16x16x4xbf16>
    %41 = vector.shape_cast %40 : vector<16x16x4xbf16> to vector<256x4xbf16>
    %c5 = arith.constant 5 : index
    %c0_40 = arith.constant 0 : index
    %c0_41 = arith.constant 0 : index
    %42 = vector.load %arg2[%c5, %c0_40, %c0_41] : memref<9x4x128xbf16, #tpu.memory_space<vmem>>, vector<1x4x128xbf16>
    %43 = vector.shape_cast %42 : vector<1x4x128xbf16> to vector<4x128xbf16>
    %cst_42 = arith.constant dense<0.000000e+00> : vector<256x128xf32>
    %44 = tpu.matmul %41, %43, %cst_42 {dimension_numbers = #tpu.dot_dimension_numbers<[1], [0], [0], [1], [0, 0, 1, 1], [], []>} : vector<256x4xbf16>, vector<4x128xbf16>, vector<256x128xf32> -> vector<256x128xf32>
    %45 = arith.addf %38, %44 : vector<256x128xf32>
    %c0_43 = arith.constant 0 : index
    %c2_44 = arith.constant 2 : index
    %c0_45 = arith.constant 0 : index
    %c0_46 = arith.constant 0 : index
    %46 = vector.load %arg1[%c0_43, %c2_44, %c0_45, %c0_46] : memref<1x18x18x4xbf16, #tpu.memory_space<vmem>>, vector<1x16x16x4xbf16>
    %47 = vector.shape_cast %46 : vector<1x16x16x4xbf16> to vector<16x16x4xbf16>
    %48 = vector.shape_cast %47 : vector<16x16x4xbf16> to vector<256x4xbf16>
    %c6 = arith.constant 6 : index
    %c0_47 = arith.constant 0 : index
    %c0_48 = arith.constant 0 : index
    %49 = vector.load %arg2[%c6, %c0_47, %c0_48] : memref<9x4x128xbf16, #tpu.memory_space<vmem>>, vector<1x4x128xbf16>
    %50 = vector.shape_cast %49 : vector<1x4x128xbf16> to vector<4x128xbf16>
    %cst_49 = arith.constant dense<0.000000e+00> : vector<256x128xf32>
    %51 = tpu.matmul %48, %50, %cst_49 {dimension_numbers = #tpu.dot_dimension_numbers<[1], [0], [0], [1], [0, 0, 1, 1], [], []>} : vector<256x4xbf16>, vector<4x128xbf16>, vector<256x128xf32> -> vector<256x128xf32>
    %52 = arith.addf %45, %51 : vector<256x128xf32>
    %c0_50 = arith.constant 0 : index
    %c2_51 = arith.constant 2 : index
    %c1_52 = arith.constant 1 : index
    %c0_53 = arith.constant 0 : index
    %53 = vector.load %arg1[%c0_50, %c2_51, %c1_52, %c0_53] : memref<1x18x18x4xbf16, #tpu.memory_space<vmem>>, vector<1x16x16x4xbf16>
    %54 = vector.shape_cast %53 : vector<1x16x16x4xbf16> to vector<16x16x4xbf16>
    %55 = vector.shape_cast %54 : vector<16x16x4xbf16> to vector<256x4xbf16>
    %c7 = arith.constant 7 : index
    %c0_54 = arith.constant 0 : index
    %c0_55 = arith.constant 0 : index
    %56 = vector.load %arg2[%c7, %c0_54, %c0_55] : memref<9x4x128xbf16, #tpu.memory_space<vmem>>, vector<1x4x128xbf16>
    %57 = vector.shape_cast %56 : vector<1x4x128xbf16> to vector<4x128xbf16>
    %cst_56 = arith.constant dense<0.000000e+00> : vector<256x128xf32>
    %58 = tpu.matmul %55, %57, %cst_56 {dimension_numbers = #tpu.dot_dimension_numbers<[1], [0], [0], [1], [0, 0, 1, 1], [], []>} : vector<256x4xbf16>, vector<4x128xbf16>, vector<256x128xf32> -> vector<256x128xf32>
    %59 = arith.addf %52, %58 : vector<256x128xf32>
    %c0_57 = arith.constant 0 : index
    %c2_58 = arith.constant 2 : index
    %c2_59 = arith.constant 2 : index
    %c0_60 = arith.constant 0 : index
    %60 = vector.load %arg1[%c0_57, %c2_58, %c2_59, %c0_60] : memref<1x18x18x4xbf16, #tpu.memory_space<vmem>>, vector<1x16x16x4xbf16>
    %61 = vector.shape_cast %60 : vector<1x16x16x4xbf16> to vector<16x16x4xbf16>
    %62 = vector.shape_cast %61 : vector<16x16x4xbf16> to vector<256x4xbf16>
    %c8 = arith.constant 8 : index
    %c0_61 = arith.constant 0 : index
    %c0_62 = arith.constant 0 : index
    %63 = vector.load %arg2[%c8, %c0_61, %c0_62] : memref<9x4x128xbf16, #tpu.memory_space<vmem>>, vector<1x4x128xbf16>
    %64 = vector.shape_cast %63 : vector<1x4x128xbf16> to vector<4x128xbf16>
    %cst_63 = arith.constant dense<0.000000e+00> : vector<256x128xf32>
    %65 = tpu.matmul %62, %64, %cst_63 {dimension_numbers = #tpu.dot_dimension_numbers<[1], [0], [0], [1], [0, 0, 1, 1], [], []>} : vector<256x4xbf16>, vector<4x128xbf16>, vector<256x128xf32> -> vector<256x128xf32>
    %66 = arith.addf %59, %65 : vector<256x128xf32>
    %c0_64 = arith.constant 0 : index
    %c0_65 = arith.constant 0 : index
    %c0_66 = arith.constant 0 : index
    %67 = vector.load %arg3[%c0_64, %c0_65, %c0_66] : memref<1x256x128xf32, #tpu.memory_space<vmem>>, vector<1x256x128xf32>
    %68 = vector.shape_cast %67 : vector<1x256x128xf32> to vector<256x128xf32>
    %69 = vector.shape_cast %66 : vector<256x128xf32> to vector<1x256x128xf32>
    tpu.vector_store %arg3[%c0_64, %c0_65, %c0_66], %69 {strides = array<i32>} : memref<1x256x128xf32, #tpu.memory_space<vmem>>, vector<1x256x128xf32>,
    %c0_67 = arith.constant 0 : index
    %c0_68 = arith.constant 0 : index
    %70 = vector.load %arg4[%c0_67, %c0_68] : memref<2x128xf32, #tpu.memory_space<vmem>>, vector<1x128xf32>
    %cst_69 = arith.constant dense<0.000000e+00> : vector<128xf32>
    %71 = vector.multi_reduction <add>, %66, %cst_69 [0] : vector<256x128xf32> to vector<128xf32>
    %72 = vector.shape_cast %71 : vector<128xf32> to vector<1x128xf32>
    %73 = arith.addf %70, %72 : vector<1x128xf32>
    %c0_70 = arith.constant 0 : index
    %c0_71 = arith.constant 0 : index
    %74 = vector.load %arg4[%c0_70, %c0_71] : memref<2x128xf32, #tpu.memory_space<vmem>>, vector<1x128xf32>
    tpu.vector_store %arg4[%c0_70, %c0_71], %73 {strides = array<i32>} : memref<2x128xf32, #tpu.memory_space<vmem>>, vector<1x128xf32>,
    %c1_72 = arith.constant 1 : index
    %c0_73 = arith.constant 0 : index
    %75 = vector.load %arg4[%c1_72, %c0_73] : memref<2x128xf32, #tpu.memory_space<vmem>>, vector<1x128xf32>
    %76 = arith.mulf %66, %66 : vector<256x128xf32>
    %cst_74 = arith.constant dense<0.000000e+00> : vector<128xf32>
    %77 = vector.multi_reduction <add>, %76, %cst_74 [0] : vector<256x128xf32> to vector<128xf32>
    %78 = vector.shape_cast %77 : vector<128xf32> to vector<1x128xf32>
    %79 = arith.addf %75, %78 : vector<1x128xf32>
    %c1_75 = arith.constant 1 : index
    %c0_76 = arith.constant 0 : index
    %80 = vector.load %arg4[%c1_75, %c0_76] : memref<2x128xf32, #tpu.memory_space<vmem>>, vector<1x128xf32>
    tpu.vector_store %arg4[%c1_75, %c0_76], %79 {strides = array<i32>} : memref<2x128xf32, #tpu.memory_space<vmem>>, vector<1x128xf32>,
    return
  }
  func.func @transform_0(%arg0: i32) -> (i32, i32, i32, i32) {
    %c0_i32 = arith.constant 0 : i32
    %c0_i32_0 = arith.constant 0 : i32
    %c0_i32_1 = arith.constant 0 : i32
    %c0_i32_2 = arith.constant 0 : i32
    return %arg0, %c0_i32, %c0_i32_0, %c0_i32_1 : i32, i32, i32, i32
  }
  func.func @transform_1(%arg0: i32) -> (i32, i32, i32) {
    %c0_i32 = arith.constant 0 : i32
    %c0_i32_0 = arith.constant 0 : i32
    %c0_i32_1 = arith.constant 0 : i32
    %c0_i32_2 = arith.constant 0 : i32
    return %c0_i32, %c0_i32_0, %c0_i32_1 : i32, i32, i32
  }
  func.func @transform_2(%arg0: i32) -> (i32, i32, i32) {
    %c0_i32 = arith.constant 0 : i32
    %c0_i32_0 = arith.constant 0 : i32
    %c0_i32_1 = arith.constant 0 : i32
    return %arg0, %c0_i32, %c0_i32_0 : i32, i32, i32
  }
  func.func @transform_3(%arg0: i32) -> (i32, i32) {
    %c0_i32 = arith.constant 0 : i32
    %c0_i32_0 = arith.constant 0 : i32
    %c0_i32_1 = arith.constant 0 : i32
    return %c0_i32, %c0_i32_0 : i32, i32
  }
}

</mosaic_0001>

<bundles_post_ra>
// kernel: tpu_custom_call.1
= control target key start
LH: loop header
LB: loop body
LE: loop exit
PB: predicated region body
PF: predicated region fallthrough
CT: control target
= control target key end

     0   :  { %9 = vsyncpa [#allocation3], 0  ;;  %s8403_s0 = inlined_call_operand.vmem [shape: bf16[2,18,18,4], index: 0, kind: input, shape index: {}]   ;;  %s8404_s1 = inlined_call_operand.vmem [shape: bf16[9,4,128], index: 1, kind: input, shape index: {}]   ;;  %s8405_s2 = inlined_call_operand.hbm [shape: f32[2,256,128], index: 2, kind: output, shape index: {0}]   ;;  %s8406_s3 = inlined_call_operand.hbm [shape: f32[2,128], index: 3, kind: output, shape index: {1}]  }
   0x1   :  { %11 = vsyncpa [#allocation3 + $0x1], 0 }
   0x2   :  { %12 = vsyncpa [#allocation5], 0  ;;  %s6526_s12 = smov 0   ;;  %s6528_s13 = smov 0  }
   0x3   :  { %s6530_s14 = smov 0   ;;  %s6532_s15 = smov 0  }
   0x4 LB: > { %s6547_s16 = sadd.s32 4294967295, %s6499_s15   ;;  %s4975_s17 = sadd.s32 4294967294, %s6499_s15   ;;  %s6499_s15 = sphi %s6532_s15, %s8475_s15   ;;  %s6495_s14 = sphi %s6530_s14, %s8474_s14   ;;  %s6491_s13 = sphi %s6528_s13, %s8473_s13   ;;  %s6487_s12 = sphi %s6526_s12, %s8472_s12  }
   0x5   : > { %s6551_s18 = sadd.s32 1, %s6499_s15   ;;  %s72_s19 = sadd.s32 1, %s6495_s14 }
   0x6   : > { %s69_s20 = ssub.s32 %s6499_s15, %s6551_s18  ;;  %p82_p0 = scmp.ne.s32.totalorder %s6495_s14, %s6491_s13 }
   0x7   : > { %p70_p1 = scmp.eq.s32.totalorder %s69_s20, 0  ;;  %p83_p2 = scmp.eq.s32.totalorder %s6547_s16, 1 }
   0x8   : > { %p88_p3 = scmp.ne.s32.totalorder %s6491_s13, %s6487_s12  ;;  %p89_p4 = scmp.eq.s32.totalorder %s4975_s17, 1 }
   0x9   : > { %s6562_s21 = scalar_select %p70_p1, %s6495_s14, %s72_s19  }
   0xa   : > { %p6566_p5 = por %p83_p2, %p82_p0  ;;  %p6570_p6 = por %p89_p4, %p88_p3 }
   0xb   : > { %p4978_p7 = scmp.ge.s32.totalorder %s6499_s15, 1  ;;  %p139_p8 = scmp.lt.s32.totalorder %s6499_s15, 3 }
   0xd   : > { %p140_p9 = pnand %p4978_p7, %p139_p8 }
   0xf   : > { %143 = sbr.rel (%p140_p9) target bundleno = 646 (0x286), region = 28 }
  0x16   : > { %s158_s24 = sand.u32 1, %s6491_s13   ;;  %p163_p10 = scmp.lt.s32.totalorder %s6547_s16, 1 }
  0x17   : > { %s4979_s25 = sshll.u32 %s158_s24, 8  ;;  %p4981_p11 = scmp.ne.s32.totalorder %s6547_s16, 0 }
  0x18   : > { %s164_s26 = scalar_select %p163_p10, %s6547_s16, 1 }
  0x19   : > { %s6586_s4 = scalar_lea.vmem [#allocation2], %s4979_s25  ;;  %172 = sbr.rel (%p4981_p11) target bundleno = 32 (0x20), region = 32  ;;  %v6501_v0 = vmov (!%p4981_p11), 0.0  }
  0x1a   : > { %s6253_s27 = smul.u32 216, %s164_s26  ;;  %173 = vst [vmem:[#allocation4] sm:$0x3] (!%p4981_p11), %v6501_v0 }
  0x1c   : > { %s6584_s30 = scalar_lea.vmem %s8403_s0, %s6253_s27 }
  0x20 PF: > { %v4982_v1 = vld [vmem:[%s8404_s1 + $0x2] sm:$0x3]  ;;  %vm709_vm0 = vcmask 1041408   ;;  %v5209_v2 = vld [vmem:[%s8404_s1 + $0x8] sm:$0x3]  ;;  %vm660_vm4 = vcmask 31744  }
  0x21   : > { %6243 = vmatprep.subr.msk.bf16.mxu1 %vm709_vm0, %v4982_v1  ;;  %6247 = vmatprep.subr.msk.bf16.mxu0 %vm709_vm0, %v5209_v2  ;;  %v711_v3 = vsel %vm709_vm0, %v4982_v1, 0  ;;  %v6599_v4 = vsel %vm709_vm0, %v5209_v2, 0  ;;  %v174_v5 = vld [vmem:[%s6584_s30] sm:$0xf]  ;;  %v175_v6 = vld [vmem:[%s6584_s30 + $0x4] sm:$0xf] }
  0x22   : > { %8422 = vst [vmem:[#allocation8_spill] sm:$0xff] %v6599_v4  ;;  %5680 = vmatpush3.bf16.msra.mxu1 %v711_v3  ;;  %5816 = vmatpush3.bf16.msra.mxu0 %v6599_v4  ;;  %v207_v7 = vld [vmem:[%s6584_s30 + $0x8] sm:$0x1]  ;;  %vm223_vm1 = vsmask.f32 3328  ;;  %v227_v8 = vshrl.u32 %v174_v5, 16 }
  0x23   : > { %vm224_vm2 = vsmask.f32 7440  ;;  %v230_v9 = vshll.u32 %v174_v5, 16  ;;  %v236_v10 = vshll.u32 %v175_v6, 16  ;;  %v240_v11 = vshrl.u32 %v175_v6, 16  ;;  %s4891_s10 = sshll.u32 %s6586_s4, 4  ;;  %s8333_s10 = int_to_ptr.vmem [resolvable:$true] %s4891_s10 }
  0x24   : > { %v206_v12 = vld [vmem:[%s8404_s1] sm:$0x3]  ;;  %v246_v13 = vshll.u32 %v207_v7, 16  ;;  %v5161_v14 = vld [vmem:[%s6584_s30 + $0xc] sm:$0xf]  ;;  %v229_v16 = vrot.slane %v227_v8, 4  ;;  %vm6629_vm3 = vmor %vm223_vm1, %vm224_vm2 }
  0x25   : > { %6244 = vmatprep.subr.msk.bf16.mxu1 %vm709_vm0, %v206_v12  ;;  %v6611_v15 = vld [vmem:[%s6584_s30 + $0x10] sm:$0xf]  ;;  %v232_v17 = vrot.slane %v230_v9, 5  ;;  %v238_v18 = vrot.slane %v236_v10, 5  ;;  %v242_v19 = vrot.slane %v240_v11, 4  ;;  %v2031_v22 = vshrl.u32 %v5161_v14, 16 }
  0x26   : > { %v6614_v20 = vld [vmem:[%s6584_s30 + $0x14] sm:$0x1]  ;;  %v248_v21 = vrot.slane %v246_v13, 5  ;;  %v2034_v23 = vshll.u32 %v5161_v14, 16  ;;  %v2040_v24 = vshll.u32 %v6611_v15, 16  ;;  %v2044_v28 = vshrl.u32 %v6611_v15, 16 }
  0x27   : > { %v6620_v25 = vld [vmem:[%s8404_s1 + $0xa] sm:$0x3]  ;;  %v233_v26 = vor.u32 %v232_v17, %v229_v16  ;;  %v243_v27 = vor.u32 %v242_v19, %v238_v18  ;;  %v2050_v29 = vshll.u32 %v6614_v20, 16  ;;  %v176_v30 = vld [vmem:[%s6584_s30 + $0xc] sm:$0xf]  ;;  %v2033_v32 = vrot.slane %v2031_v22, 4 }
  0x28   : > { %6249 = vmatprep.subr.msk.bf16.mxu0 %vm709_vm0, %v6620_v25  ;;  %v2036_v33 = vrot.slane %v2034_v23, 5  ;;  %v2042_v34 = vrot.slane %v2040_v24, 5  ;;  %v177_v35 = vld [vmem:[%s6584_s30 + $0x10] sm:$0xf]  ;;  %v2046_v38 = vrot.slane %v2044_v28, 4  ;;  %v251_v42 = vshrl.u32 %v176_v30, 16 }
  0x29   : > { %v234_v36 = vrot.slane %v233_v26, 4  ;;  %v244_v37 = vrot.slane %v243_v27, 4  ;;  %v2052_v40 = vrot.slane %v2050_v29, 5  ;;  %v208_v41 = vld [vmem:[%s6584_s30 + $0x14] sm:$0x1]  ;;  %v254_v43 = vshll.u32 %v176_v30, 16 }
  0x2a   : > { %v2037_v39 = vor.u32 %v2036_v33, %v2033_v32  ;;  %v2047_v46 = vor.u32 %v2046_v38, %v2042_v34  ;;  %v260_v47 = vshll.u32 %v177_v35, 16  ;;  %v253_v50 = vrot.slane %v251_v42, 4  ;;  %v5164_v56 = vld [vmem:[%s6584_s30 + $0x18] sm:$0xf]  ;;  %v6646_v61 = vld [vmem:[%s6584_s30 + $0x1c] sm:$0xf] }
  0x2b   : > { %v239_v44 = vsel %vm6629_vm3, %v234_v36, %v238_v18  ;;  %v249_v45 = vsel %vm6629_vm3, %v244_v37, %v248_v21  ;;  %v256_v51 = vrot.slane %v254_v43, 5  ;;  %v264_v54 = vshrl.u32 %v177_v35, 16  ;;  %v6649_v62 = vld [vmem:[%s6584_s30 + $0x20] sm:$0x1]  ;;  %v178_v17 = vld [vmem:[%s6584_s30 + $0x18] sm:$0xf] }
  0x2c   : > { %v4983_v48 = vcombine.low %v239_v44, %v249_v45  ;;  %v2038_v49 = vrot.slane %v2037_v39, 4  ;;  %v2048_v52 = vrot.slane %v2047_v46, 4  ;;  %v262_v53 = vrot.slane %v260_v47, 5  ;;  %v179_v23 = vld [vmem:[%s6584_s30 + $0x1c] sm:$0xf]  ;;  %s8340_s20 = scalar_lea.sflag [#allocation3], %s158_s24 }
  0x2d   : > { %v270_v55 = vshll.u32 %v208_v41, 16  ;;  %v2774_v58 = vrot.slane %v6611_v15, 5  ;;  %v2777_v59 = vrot.slane %v6614_v20, 5  ;;  %v257_v60 = vor.u32 %v256_v51, %v253_v50  ;;  %v209_v29 = vld [vmem:[%s6584_s30 + $0x20] sm:$0x1]  ;;  %s6407_s25 = scalar_lea.vmem %s8333_s10, 4096 }
  0x2e   : > { %5681 = vmatprep.mubr.msk.bf16.mxu1 %vm660_vm4, %v4983_v48  ;;  %v2043_v57 = vsel %vm6629_vm3, %v2038_v49, %v2042_v34  ;;  %v2053_v63 = vsel %vm6629_vm3, %v2048_v52, %v2052_v40  ;;  %v266_v0 = vrot.slane %v264_v54, 4  ;;  %v1003_v2 = vsel %vm709_vm0, %v206_v12, 0  ;;  %v5167_v35 = vld [vmem:[%s6584_s30 + $0x24] sm:$0xf]  ;;  %v6675_v44 = vld [vmem:[%s6584_s30 + $0x28] sm:$0xf]  ;;  %p6408_p12 = scmp.ne.s32.totalorder %s8333_s10, %s6407_s25 }
  0x2f   : > { %v272_v1 = vrot.slane %v270_v55, 5  ;;  %v5210_v3 = vcombine.low %v2043_v57, %v2053_v63  ;;  %v258_v5 = vrot.slane %v257_v60, 4  ;;  %v2055_v6 = vshrl.u32 %v5164_v56, 16  ;;  %v6681_v47 = vld [vmem:[%s6584_s30 + $0x2c] sm:$0x1]  ;;  %s6502_s26 = smov [#allocation2]  }
  0x30   : > { %v2058_v7 = vshll.u32 %v5164_v56, 16  ;;  %v267_v8 = vor.u32 %v266_v0, %v262_v53  ;;  %v2064_v9 = vshll.u32 %v6646_v61, 16  ;;  %v2068_v10 = vshrl.u32 %v6646_v61, 16  ;;  %p6409_p13 = pnand %p6408_p12, %p6566_p5  ;;  %s6411_s27 = sshll.u32 %s6502_s26, 4  ;;  %s6412_s27 = int_to_ptr.vmem [resolvable:$false] %s6411_s27 }
  0x31   : > { %v2074_v11 = vshll.u32 %v6649_v62, 16  ;;  %5817 = vmatprep.mubr.msk.bf16.mxu0 %vm660_vm4, %v5210_v3  ;;  %v263_v13 = vsel %vm6629_vm3, %v258_v5, %v262_v53  ;;  %v2057_v14 = vrot.slane %v2055_v6, 4  ;;  %v2781_v16 = vrot.slane %v6646_v61, 5  ;;  %v180_v53 = vld [vmem:[%s6584_s30 + $0x24] sm:$0xf]  ;;  %s6413_s28 = scalar_lea.vmem %s6412_s27, 8192  ;;  %p6414_p1 = scmp.lt.s32.totalorder %s8333_s10, %s6412_s27 }
  0x32   : > { %v2060_v12 = vrot.slane %v2058_v7, 5  ;;  %v268_v18 = vrot.slane %v267_v8, 4  ;;  %v2066_v19 = vrot.slane %v2064_v9, 5  ;;  %v2070_v21 = vrot.slane %v2068_v10, 4  ;;  %p6410_p0 = pneg %p6409_p13  ;;  %p6415_p3 = scmp.lt.s32.totalorder %s6413_s28, %s6407_s25 }
  0x33   : > { %v2076_v22 = vrot.slane %v2074_v11, 5  ;;  %v6665_v26 = vrot.slane %v2781_v16, 4  ;;  %v2784_v27 = vrot.slane %v6649_v62, 5  ;;  %v2983_v28 = vsel %vm709_vm0, %v6620_v25, 0 }
  0x34   : > { %v2061_v24 = vor.u32 %v2060_v12, %v2057_v14  ;;  %v273_v30 = vsel %vm6629_vm3, %v268_v18, %v272_v1  ;;  %v2071_v32 = vor.u32 %v2070_v21, %v2066_v19  ;;  %v275_v33 = vshrl.u32 %v178_v17, 16  ;;  %v5170_v14 = vld [vmem:[%s6584_s30 + $0x30] sm:$0xf]  ;;  %p6416_p4 = por %p6415_p3, %p6414_p1 }
  0x35   : > { %v278_v34 = vshll.u32 %v178_v17, 16  ;;  %v4984_v36 = vcombine.low %v263_v13, %v273_v30  ;;  %v284_v38 = vshll.u32 %v179_v23, 16  ;;  %v288_v39 = vshrl.u32 %v179_v23, 16  ;;  %v210_v13 = vld [vmem:[%s6584_s30 + $0x2c] sm:$0x1] }
  0x36   : > { %v2062_v37 = vrot.slane %v2061_v24, 4  ;;  %v2072_v40 = vrot.slane %v2071_v32, 4  ;;  %v277_v41 = vrot.slane %v275_v33, 4  ;;  %v294_v43 = vshll.u32 %v209_v29, 16  ;;  %p6417_p7 = pnand %p6416_p4, %p6410_p0 }
  0x37   : > { %v280_v42 = vrot.slane %v278_v34, 5  ;;  %5682 = vmatmul.mubr.msk.bf16.vlgmr.msra.gmra.mrb[0].mxu1 %vm660_vm4, %v4984_v36  ;;  %v286_v45 = vrot.slane %v284_v38, 5  ;;  %v290_v46 = vrot.slane %v288_v39, 4  ;;  %v2079_v48 = vshrl.u32 %v5167_v35, 16 }
  0x38   : > { %v2067_v25 = vsel %vm6629_vm3, %v2062_v37, %v2066_v19  ;;  %5714 = vmatpush3.bf16.msra.mxu1 %v1003_v2  ;;  %v2077_v49 = vsel %vm6629_vm3, %v2072_v40, %v2076_v22  ;;  %v296_v51 = vrot.slane %v294_v43, 5  ;;  %v2082_v52 = vshll.u32 %v5167_v35, 16  ;;  %v181_v2 = vld [vmem:[%s6584_s30 + $0x28] sm:$0xf]  ;;  %v6704_v37 = vld [vmem:[%s6584_s30 + $0x38] sm:$0x1] }
  0x39   : > { %v281_v50 = vor.u32 %v280_v42, %v277_v41  ;;  %v5211_v54 = vcombine.low %v2067_v25, %v2077_v49  ;;  %v291_v55 = vor.u32 %v290_v46, %v286_v45  ;;  %v2081_v56 = vrot.slane %v2079_v48, 4  ;;  %v182_v43 = vld [vmem:[%s6584_s30 + $0x30] sm:$0xf]  ;;  %v183_v49 = vld [vmem:[%s6584_s30 + $0x34] sm:$0xf] }
  0x3a   : > { %v2088_v57 = vshll.u32 %v6675_v44, 16  ;;  %v2084_v63 = vrot.slane %v2082_v52, 5  ;;  %v2092_v0 = vshrl.u32 %v6675_v44, 16  ;;  %v2098_v1 = vshll.u32 %v6681_v47, 16 }
  0x3b   : > { %v282_v60 = vrot.slane %v281_v50, 4  ;;  %5818 = vmatmul.mubr.msk.bf16.vlgmr.msra.gmra.mrb[0].mxu0 %vm660_vm4, %v5211_v54  ;;  %v292_v3 = vrot.slane %v291_v55, 4  ;;  %v299_v6 = vshrl.u32 %v180_v53, 16  ;;  %v302_v7 = vshll.u32 %v180_v53, 16 }
  0x3c   : > { %v2090_v5 = vrot.slane %v2088_v57, 5  ;;  %5850 = vmatpush3.bf16.msra.mxu0 %v2983_v28  ;;  %v2085_v9 = vor.u32 %v2084_v63, %v2081_v56  ;;  %v2094_v10 = vrot.slane %v2092_v0, 4  ;;  %v2100_v11 = vrot.slane %v2098_v1, 5  ;;  %v6698_v28 = vld [vmem:[%s6584_s30 + $0x34] sm:$0xf] }
  0x3d   : > { %v287_v8 = vsel %vm6629_vm3, %v282_v60, %v286_v45  ;;  %v297_v12 = vsel %vm6629_vm3, %v292_v3, %v296_v51  ;;  %v301_v17 = vrot.slane %v299_v6, 4  ;;  %v304_v18 = vrot.slane %v302_v7, 5  ;;  %v211_v57 = vld [vmem:[%s6584_s30 + $0x38] sm:$0x1]  ;;  %v5173_v3 = vld [vmem:[%s6584_s30 + $0x3c] sm:$0xf] }
  0x3e   : > { %v308_v19 = vshll.u32 %v181_v2, 16  ;;  %v4985_v21 = vcombine.low %v287_v8, %v297_v12  ;;  %v2086_v22 = vrot.slane %v2085_v9, 4  ;;  %v2095_v23 = vor.u32 %v2094_v10, %v2090_v5  ;;  %v6721_v9 = vld [vmem:[%s6584_s30 + $0x40] sm:$0xf] }
  0x3f   : > { %v312_v24 = vshrl.u32 %v181_v2, 16  ;;  %v305_v29 = vor.u32 %v304_v18, %v301_v17  ;;  %v318_v32 = vshll.u32 %v210_v13, 16  ;;  %v2103_v33 = vshrl.u32 %v5170_v14, 16 }
  0x40   : > { %v310_v30 = vrot.slane %v308_v19, 5  ;;  %5685 = vmatprep.mubr.msk.bf16.mxu1 %vm660_vm4, %v4985_v21  ;;  %v2091_v34 = vsel %vm6629_vm3, %v2086_v22, %v2090_v5  ;;  %v2096_v35 = vrot.slane %v2095_v23, 4  ;;  %v2106_v38 = vshll.u32 %v5170_v14, 16  ;;  %v6726_v19 = vld [vmem:[%s6584_s30 + $0x44] sm:$0x1] }
  0x41   : > { %v314_v36 = vrot.slane %v312_v24, 4  ;;  %v306_v39 = vrot.slane %v305_v29, 4  ;;  %v320_v40 = vrot.slane %v318_v32, 5  ;;  %v2105_v41 = vrot.slane %v2103_v33, 4  ;;  %v6734_v32 = vld [vmem:[%s8404_s1 + $0xc] sm:$0x3] }
  0x42   : > { %v2112_v42 = vshll.u32 %v6698_v28, 16  ;;  %v2101_v25 = vsel %vm6629_vm3, %v2096_v35, %v2100_v11  ;;  %v2108_v46 = vrot.slane %v2106_v38, 5  ;;  %v2116_v48 = vshrl.u32 %v6698_v28, 16  ;;  %6250 = vmatprep.subr.msk.bf16.mxu0 %vm709_vm0, %v6734_v32 }
  0x43   : > { %v315_v45 = vor.u32 %v314_v36, %v310_v30  ;;  %v5212_v50 = vcombine.low %v2091_v34, %v2101_v25  ;;  %v311_v51 = vsel %vm6629_vm3, %v306_v39, %v310_v30  ;;  %v2122_v53 = vshll.u32 %v6704_v37, 16  ;;  %v184_v30 = vld [vmem:[%s6584_s30 + $0x3c] sm:$0xf] }
  0x44   : > { %v2114_v52 = vrot.slane %v2112_v42, 5  ;;  %v2109_v55 = vor.u32 %v2108_v46, %v2105_v41  ;;  %v2118_v56 = vrot.slane %v2116_v48, 4  ;;  %v323_v60 = vshrl.u32 %v182_v43, 16 }
  0x45   : > { %v316_v54 = vrot.slane %v315_v45, 4  ;;  %5821 = vmatprep.mubr.msk.bf16.mxu0 %vm660_vm4, %v5212_v50  ;;  %v2124_v63 = vrot.slane %v2122_v53, 5  ;;  %v326_v0 = vshll.u32 %v182_v43, 16  ;;  %v332_v1 = vshll.u32 %v183_v49, 16  ;;  %v185_v45 = vld [vmem:[%s6584_s30 + $0x40] sm:$0xf] }
  0x46   : > { %v336_v2 = vshrl.u32 %v183_v49, 16  ;;  %v2110_v6 = vrot.slane %v2109_v55, 4  ;;  %v2119_v7 = vor.u32 %v2118_v56, %v2114_v52  ;;  %v325_v8 = vrot.slane %v323_v60, 4  ;;  %v5176_v53 = vld [vmem:[%s6584_s30 + $0x48] sm:$0xf] }
  0x47   : > { %v321_v5 = vsel %vm6629_vm3, %v316_v54, %v320_v40  ;;  %v328_v11 = vrot.slane %v326_v0, 5  ;;  %v334_v13 = vrot.slane %v332_v1, 5  ;;  %v342_v18 = vshll.u32 %v211_v57, 16 }
  0x48   : > { %v4986_v10 = vcombine.low %v311_v51, %v321_v5  ;;  %v338_v14 = vrot.slane %v336_v2, 4  ;;  %v2115_v12 = vsel %vm6629_vm3, %v2110_v6, %v2114_v52  ;;  %v2120_v17 = vrot.slane %v2119_v7, 4  ;;  %v212_v51 = vld [vmem:[%s6584_s30 + $0x44] sm:$0x1]  ;;  %v6752_v5 = vld [vmem:[%s6584_s30 + $0x4c] sm:$0xf] }
  0x49   : > { %v2127_v21 = vshrl.u32 %v5173_v3, 16  ;;  %v329_v22 = vor.u32 %v328_v11, %v325_v8  ;;  %v2130_v24 = vshll.u32 %v5173_v3, 16  ;;  %v2136_v29 = vshll.u32 %v6721_v9, 16 }
  0x4a   : > { %5686 = vmatmul.mubr.msk.bf16.gmra.mrb[4].mxu1 %vm660_vm4, %v4986_v10  ;;  %v339_v23 = vor.u32 %v338_v14, %v334_v13  ;;  %v2125_v33 = vsel %vm6629_vm3, %v2120_v17, %v2124_v63  ;;  %v344_v34 = vrot.slane %v342_v18, 5  ;;  %v2140_v36 = vshrl.u32 %v6721_v9, 16  ;;  %v6757_v14 = vld [vmem:[%s6584_s30 + $0x50] sm:$0x1] }
  0x4b   : > { %v2129_v35 = vrot.slane %v2127_v21, 4  ;;  %v5213_v38 = vcombine.low %v2115_v12, %v2125_v33  ;;  %v330_v39 = vrot.slane %v329_v22, 4  ;;  %v2132_v41 = vrot.slane %v2130_v24, 5  ;;  %v6760_v12 = vld [vmem:[%s6584_s30 + $0x48] sm:$0xf] }
  0x4c   : > { %v340_v40 = vrot.slane %v339_v23, 4  ;;  %v2138_v42 = vrot.slane %v2136_v29, 5  ;;  %v2142_v43 = vrot.slane %v2140_v36, 4  ;;  %v2146_v25 = vshll.u32 %v6726_v19, 16  ;;  %v6768_v36 = vld [vmem:[%s6584_s30 + $0x4c] sm:$0xf] }
  0x4d   : > { %v347_v46 = vshrl.u32 %v184_v30, 16  ;;  %5822 = vmatmul.mubr.msk.bf16.gmra.mrb[4].mxu0 %vm660_vm4, %v5213_v38  ;;  %v335_v48 = vsel %vm6629_vm3, %v330_v39, %v334_v13  ;;  %v2133_v50 = vor.u32 %v2132_v41, %v2129_v35  ;;  %v350_v52 = vshll.u32 %v184_v30, 16 }
  0x4e   : > { %v345_v49 = vsel %vm6629_vm3, %v340_v40, %v344_v34  ;;  %v2143_v55 = vor.u32 %v2142_v43, %v2138_v42  ;;  %v2148_v56 = vrot.slane %v2146_v25, 5  ;;  %v356_v0 = vshll.u32 %v185_v45, 16 }
  0x4f   : > { %v4987_v54 = vcombine.low %v335_v48, %v345_v49  ;;  %v349_v57 = vrot.slane %v347_v46, 4  ;;  %v2134_v60 = vrot.slane %v2133_v50, 4  ;;  %v352_v63 = vrot.slane %v350_v52, 5  ;;  %v5179_v49 = vld [vmem:[%s6584_s30 + $0x54] sm:$0xf] }
  0x50   : > { %v360_v1 = vshrl.u32 %v185_v45, 16  ;;  %v2144_v2 = vrot.slane %v2143_v55, 4  ;;  %v366_v3 = vshll.u32 %v212_v51, 16  ;;  %v2151_v6 = vshrl.u32 %v5176_v53, 16 }
  0x51   : > { %5689 = vmatprep.mubr.msk.bf16.mxu1 %vm660_vm4, %v4987_v54  ;;  %v2154_v7 = vshll.u32 %v5176_v53, 16  ;;  %v2139_v8 = vsel %vm6629_vm3, %v2134_v60, %v2138_v42  ;;  %v353_v10 = vor.u32 %v352_v63, %v349_v57  ;;  %v358_v11 = vrot.slane %v356_v0, 5  ;;  %v213_v42 = vld [vmem:[%s6584_s30 + $0x50] sm:$0x1]  ;;  %v6782_v54 = vld [vmem:[%s6584_s30 + $0x58] sm:$0xf] }
  0x52   : > { %v362_v13 = vrot.slane %v360_v1, 4  ;;  %v2149_v17 = vsel %vm6629_vm3, %v2144_v2, %v2148_v56  ;;  %v368_v18 = vrot.slane %v366_v3, 5  ;;  %v2153_v21 = vrot.slane %v2151_v6, 4  ;;  %v6787_v2 = vld [vmem:[%s6584_s30 + $0x5c] sm:$0x1] }
  0x53   : > { %v2156_v22 = vrot.slane %v2154_v7, 5  ;;  %v5214_v23 = vcombine.low %v2139_v8, %v2149_v17  ;;  %v354_v24 = vrot.slane %v353_v10, 4  ;;  %v2160_v30 = vshll.u32 %v6752_v5, 16 }
  0x54   : > { %v363_v29 = vor.u32 %v362_v13, %v358_v11  ;;  %v2164_v34 = vshrl.u32 %v6752_v5, 16  ;;  %v2170_v35 = vshll.u32 %v6757_v14, 16  ;;  %v371_v38 = vshrl.u32 %v6760_v12, 16 }
  0x55   : > { %v2157_v33 = vor.u32 %v2156_v22, %v2153_v21  ;;  %5825 = vmatprep.mubr.msk.bf16.mxu0 %vm660_vm4, %v5214_v23  ;;  %v359_v39 = vsel %vm6629_vm3, %v354_v24, %v358_v11  ;;  %v2162_v41 = vrot.slane %v2160_v30, 5  ;;  %v374_v43 = vshll.u32 %v6760_v12, 16  ;;  %v6793_v21 = vld [vmem:[%s6584_s30 + $0x54] sm:$0xf]  ;;  %v6799_v30 = vld [vmem:[%s6584_s30 + $0x58] sm:$0xf] }
  0x56   : > { %v364_v40 = vrot.slane %v363_v29, 4  ;;  %v2166_v45 = vrot.slane %v2164_v34, 4  ;;  %v2172_v46 = vrot.slane %v2170_v35, 5  ;;  %v373_v48 = vrot.slane %v371_v38, 4 }
  0x57   : > { %v2158_v25 = vrot.slane %v2157_v33, 4  ;;  %v376_v51 = vrot.slane %v374_v43, 5  ;;  %v380_v52 = vshll.u32 %v6768_v36, 16  ;;  %v384_v53 = vshrl.u32 %v6768_v36, 16 }
  0x58   : > { %v369_v50 = vsel %vm6629_vm3, %v364_v40, %v368_v18  ;;  %v2167_v57 = vor.u32 %v2166_v45, %v2162_v41  ;;  %v390_v60 = vshll.u32 %v213_v42, 16  ;;  %v2175_v3 = vshrl.u32 %v5179_v49, 16 }
  0x59   : > { %v4988_v55 = vcombine.low %v359_v39, %v369_v50  ;;  %v2163_v56 = vsel %vm6629_vm3, %v2158_v25, %v2162_v41  ;;  %v377_v63 = vor.u32 %v376_v51, %v373_v48  ;;  %v382_v0 = vrot.slane %v380_v52, 5  ;;  %v214_v41 = vld [vmem:[%s6584_s30 + $0x5c] sm:$0x1]  ;;  %v6815_v50 = vld [vmem:[%s8404_s1 + $0x4] sm:$0x3] }
  0x5a   : > { %v386_v1 = vrot.slane %v384_v53, 4  ;;  %v2168_v6 = vrot.slane %v2167_v57, 4  ;;  %v392_v7 = vrot.slane %v390_v60, 5  ;;  %v2178_v8 = vshll.u32 %v5179_v49, 16  ;;  %v5182_v49 = vld [vmem:[%s6584_s30 + $0x60] sm:$0xf]  ;;  %6245 = vmatprep.subr.msk.bf16.mxu1 %vm709_vm0, %v6815_v50 }
  0x5b   : > { %5690 = vmatmul.mubr.msk.bf16.gmra.mrb[8].mxu1 %vm660_vm4, %v4988_v55  ;;  %v2184_v10 = vshll.u32 %v6782_v54, 16  ;;  %v378_v11 = vrot.slane %v377_v63, 4  ;;  %v2177_v17 = vrot.slane %v2175_v3, 4  ;;  %v2188_v18 = vshrl.u32 %v6782_v54, 16 }
  0x5c   : > { %v387_v13 = vor.u32 %v386_v1, %v382_v0  ;;  %v2173_v22 = vsel %vm6629_vm3, %v2168_v6, %v2172_v46  ;;  %v2180_v23 = vrot.slane %v2178_v8, 5  ;;  %v2194_v29 = vshll.u32 %v6787_v2, 16  ;;  %v6826_v6 = vld [vmem:[%s6584_s30 + $0x68] sm:$0x1] }
  0x5d   : > { %v2186_v24 = vrot.slane %v2184_v10, 5  ;;  %v5215_v33 = vcombine.low %v2163_v56, %v2173_v22  ;;  %v383_v34 = vsel %vm6629_vm3, %v378_v11, %v382_v0  ;;  %v2190_v38 = vrot.slane %v2188_v18, 4  ;;  %v6818_v56 = vld [vmem:[%s6584_s30 + $0x64] sm:$0xf]  ;;  %v6832_v18 = vld [vmem:[%s6584_s30 + $0x60] sm:$0xf] }
  0x5e   : > { %v388_v35 = vrot.slane %v387_v13, 4  ;;  %v2181_v39 = vor.u32 %v2180_v23, %v2177_v17  ;;  %v2196_v40 = vrot.slane %v2194_v29, 5  ;;  %v395_v42 = vshrl.u32 %v6793_v21, 16 }
  0x5f   : > { %v398_v43 = vshll.u32 %v6793_v21, 16  ;;  %5826 = vmatmul.mubr.msk.bf16.gmra.mrb[8].mxu0 %vm660_vm4, %v5215_v33  ;;  %v2191_v45 = vor.u32 %v2190_v38, %v2186_v24  ;;  %v404_v46 = vshll.u32 %v6799_v30, 16  ;;  %v408_v48 = vshrl.u32 %v6799_v30, 16 }
  0x60   : > { %v393_v25 = vsel %vm6629_vm3, %v388_v35, %v392_v7  ;;  %v2182_v52 = vrot.slane %v2181_v39, 4  ;;  %v397_v53 = vrot.slane %v395_v42, 4  ;;  %v414_v0 = vshll.u32 %v214_v41, 16  ;;  %v215_v42 = vld [vmem:[%s6584_s30 + $0x68] sm:$0x1] }
  0x61   : > { %v4989_v51 = vcombine.low %v383_v34, %v393_v25  ;;  %v400_v55 = vrot.slane %v398_v43, 5  ;;  %v2192_v57 = vrot.slane %v2191_v45, 4  ;;  %v406_v60 = vrot.slane %v404_v46, 5 }
  0x62   : > { %v410_v63 = vrot.slane %v408_v48, 4  ;;  %v2187_v1 = vsel %vm6629_vm3, %v2182_v52, %v2186_v24  ;;  %v2199_v7 = vshrl.u32 %v5182_v49, 16  ;;  %v2202_v8 = vshll.u32 %v5182_v49, 16  ;;  %v6835_v24 = vld [vmem:[%s6584_s30 + $0x64] sm:$0xf] }
  0x63   : > { %5693 = vmatprep.mubr.msk.bf16.mxu1 %vm660_vm4, %v4989_v51  ;;  %v401_v3 = vor.u32 %v400_v55, %v397_v53  ;;  %v2197_v10 = vsel %vm6629_vm3, %v2192_v57, %v2196_v40  ;;  %v416_v13 = vrot.slane %v414_v0, 5  ;;  %v2208_v17 = vshll.u32 %v6818_v56, 16  ;;  %v5242_v57 = vld [vmem:[%s6584_s30 + $0xc] sm:$0xe] }
  0x64   : > { %v411_v11 = vor.u32 %v410_v63, %v406_v60  ;;  %v5216_v22 = vcombine.low %v2187_v1, %v2197_v10  ;;  %v2201_v29 = vrot.slane %v2199_v7, 4  ;;  %v2204_v33 = vrot.slane %v2202_v8, 5  ;;  %v6857_v10 = vld [vmem:[%s6584_s30 + $0x70] sm:$0xf] }
  0x65   : > { %v402_v23 = vrot.slane %v401_v3, 4  ;;  %v2210_v35 = vrot.slane %v2208_v17, 5  ;;  %v2212_v38 = vshrl.u32 %v6818_v56, 16  ;;  %v2218_v39 = vshll.u32 %v6826_v6, 16  ;;  %v6851_v3 = vld [vmem:[%s6584_s30 + $0x6c] sm:$0xf] }
  0x66   : > { %v412_v34 = vrot.slane %v411_v11, 4  ;;  %5829 = vmatprep.mubr.msk.bf16.mxu0 %vm660_vm4, %v5216_v22  ;;  %v2205_v41 = vor.u32 %v2204_v33, %v2201_v29  ;;  %v419_v43 = vshrl.u32 %v6832_v18, 16  ;;  %v422_v25 = vshll.u32 %v6832_v18, 16 }
  0x67   : > { %v407_v40 = vsel %vm6629_vm3, %v402_v23, %v406_v60  ;;  %v2214_v46 = vrot.slane %v2212_v38, 4  ;;  %v2220_v48 = vrot.slane %v2218_v39, 5  ;;  %v428_v49 = vshll.u32 %v6835_v24, 16 }
  0x68   : > { %v417_v45 = vsel %vm6629_vm3, %v412_v34, %v416_v13  ;;  %v2206_v52 = vrot.slane %v2205_v41, 4  ;;  %v421_v53 = vrot.slane %v419_v43, 4  ;;  %v424_v55 = vrot.slane %v422_v25, 5  ;;  %v216_v41 = vld [vmem:[%s6584_s30 + $0x74] sm:$0x1] }
  0x69   : > { %v4990_v51 = vcombine.low %v407_v40, %v417_v45  ;;  %v2215_v60 = vor.u32 %v2214_v46, %v2210_v35  ;;  %v430_v63 = vrot.slane %v428_v49, 5  ;;  %v432_v0 = vshrl.u32 %v6835_v24, 16  ;;  %v5243_v43 = vld [vmem:[%s6584_s30 + $0x18] sm:$0xe] }
  0x6a   : > { %v438_v1 = vshll.u32 %v215_v42, 16  ;;  %v2211_v7 = vsel %vm6629_vm3, %v2206_v52, %v2210_v35  ;;  %v425_v8 = vor.u32 %v424_v55, %v421_v53  ;;  %vm1214_vm5 = vcmask 1042432   ;;  %v6883_v49 = vld [vmem:[%s6584_s30 + $0x78] sm:$0xf]  ;;  %v6886_v53 = vld [vmem:[%s6584_s30 + $0x7c] sm:$0xf] }
  0x6b   : > { %5694 = vmatmul.mubr.msk.bf16.gmra.mrb[12].mxu1 %vm660_vm4, %v4990_v51  ;;  %vm1215_vm6 = vcmask 1046532   ;;  %v2216_v11 = vrot.slane %v2215_v60, 4  ;;  %v434_v13 = vrot.slane %v432_v0, 4  ;;  %v5258_v23 = vrot.slane %v5242_v57, 9 }
  0x6c   : > { %v440_v17 = vrot.slane %v438_v1, 5  ;;  %vm6859_vm7 = vmor %vm1214_vm5, %vm1215_vm6  ;;  %v426_v29 = vrot.slane %v425_v8, 4  ;;  %v2776_v33 = vrot.slane %v2774_v58, 4  ;;  %v443_v34 = vshrl.u32 %v6851_v3, 16 }
  0x6d   : > { %v446_v35 = vshll.u32 %v6851_v3, 16  ;;  %v2221_v38 = vsel %vm6629_vm3, %v2216_v11, %v2220_v48  ;;  %v435_v39 = vor.u32 %v434_v13, %v430_v63  ;;  %v2775_v40 = vsel %vm6859_vm7, %v5258_v23, %v2774_v58 }
  0x6e   : > { %v452_v42 = vshll.u32 %v6857_v10, 16  ;;  %v5217_v25 = vcombine.low %v2211_v7, %v2221_v38  ;;  %v431_v45 = vsel %vm6629_vm3, %v426_v29, %v430_v63  ;;  %v2778_v46 = vsel %vm6859_vm7, %v2776_v33, %v2777_v59  ;;  %v217_v59 = vld [vmem:[%s6584_s30 + $0x80] sm:$0x1]  ;;  %v6909_v33 = vld [vmem:[%s6584_s30 + $0x84] sm:$0xf] }
  0x6f   : > { %v445_v48 = vrot.slane %v443_v34, 4  ;;  %v436_v15 = vrot.slane %v435_v39, 4  ;;  %v5275_v51 = vcombine.low %v2775_v40, %v2778_v46  ;;  %v448_v58 = vrot.slane %v446_v35, 5  ;;  %v6915_v38 = vld [vmem:[%s6584_s30 + $0x88] sm:$0xf] }
  0x70   : > { %v454_v52 = vrot.slane %v452_v42, 5  ;;  %5830 = vmatmul.mubr.msk.bf16.gmra.mrb[12].mxu0 %vm660_vm4, %v5217_v25  ;;  %v456_v55 = vshrl.u32 %v6857_v10, 16  ;;  %v462_v57 = vshll.u32 %v216_v41, 16  ;;  %v5259_v60 = vrot.slane %v5243_v43, 9  ;;  %v6923_v42 = vld [vmem:[%s8404_s1 + $0xe] sm:$0x3] }
  0x71   : > { %v2785_v20 = vsel %vm6859_vm7, %v6665_v26, %v2784_v27  ;;  %v441_v63 = vsel %vm6629_vm3, %v436_v15, %v440_v17  ;;  %5851 = vmatprep.mubr.msk.bf16.mxu0 %vm660_vm4, %v5275_v51  ;;  %v449_v0 = vor.u32 %v448_v58, %v445_v48  ;;  %v3342_v1 = vsel %vm709_vm0, %v6734_v32, 0  ;;  %v5244_v27 = vld [vmem:[%s6584_s30 + $0x24] sm:$0xe]  ;;  %v218_v48 = vld [vmem:[%s6584_s30 + $0x8c] sm:$0x1] }
  0x72   : > { %v467_v7 = vshrl.u32 %v6883_v49, 16  ;;  %v4991_v8 = vcombine.low %v431_v45, %v441_v63  ;;  %v458_v62 = vrot.slane %v456_v55, 4  ;;  %v464_v11 = vrot.slane %v462_v57, 5  ;;  %v5245_v55 = vld [vmem:[%s6584_s30 + $0x30] sm:$0xe] }
  0x73   : > { %v2782_v26 = vsel %vm6859_vm7, %v5259_v60, %v2781_v16  ;;  %v450_v13 = vrot.slane %v449_v0, 4  ;;  %v470_v29 = vshll.u32 %v6883_v49, 16  ;;  %v476_v34 = vshll.u32 %v6886_v53, 16 }
  0x74   : > { %v5276_v17 = vcombine.low %v2782_v26, %v2785_v20  ;;  %v469_v23 = vrot.slane %v467_v7, 4  ;;  %5697 = vmatprep.mubr.msk.bf16.mxu1 %vm660_vm4, %v4991_v8  ;;  %v459_v32 = vor.u32 %v458_v62, %v454_v52  ;;  %v480_v35 = vshrl.u32 %v6886_v53, 16  ;;  %v6939_v7 = vld [vmem:[%s6584_s30 + $0x90] sm:$0xf] }
  0x75   : > { %v486_v61 = vshll.u32 %v217_v59, 16  ;;  %v455_v16 = vsel %vm6629_vm3, %v450_v13, %v454_v52  ;;  %v472_v39 = vrot.slane %v470_v29, 5  ;;  %v5260_v40 = vrot.slane %v5244_v27, 9  ;;  %v6942_v27 = vld [vmem:[%s6584_s30 + $0x94] sm:$0xf] }
  0x76   : > { %v2788_v41 = vrot.slane %v6675_v44, 5  ;;  %v460_v43 = vrot.slane %v459_v32, 4  ;;  %v478_v25 = vrot.slane %v476_v34, 5  ;;  %v482_v45 = vrot.slane %v480_v35, 4 }
  0x77   : > { %v488_v46 = vrot.slane %v486_v61, 5  ;;  %v473_v15 = vor.u32 %v472_v39, %v469_v23  ;;  %v2791_v52 = vrot.slane %v6681_v47, 5  ;;  %v491_v60 = vshrl.u32 %v6909_v33, 16  ;;  %v219_v61 = vld [vmem:[%s6584_s30 + $0x98] sm:$0x1] }
  0x78   : > { %v2789_v51 = vsel %vm6859_vm7, %v5260_v40, %v2788_v41  ;;  %v2790_v58 = vrot.slane %v2788_v41, 4  ;;  %v465_v44 = vsel %vm6629_vm3, %v460_v43, %v464_v11  ;;  %5852 = vmatmul.mubr.msk.bf16.vlgmr.msra.gmra.mrb[0].mxu0 %vm660_vm4, %v5276_v17  ;;  %v483_v57 = vor.u32 %v482_v45, %v478_v25  ;;  %v5246_v43 = vld [vmem:[%s6584_s30 + $0x3c] sm:$0xe] }
  0x79   : > { %v494_v20 = vshll.u32 %v6909_v33, 16  ;;  %v4992_v59 = vcombine.low %v455_v16, %v465_v44  ;;  %5884 = vmatpush3.bf16.msra.mxu0 %v3342_v1  ;;  %v474_v63 = vrot.slane %v473_v15, 4  ;;  %v500_v47 = vshll.u32 %v6915_v38, 16  ;;  %v6961_v15 = vld [vmem:[%s6584_s30 + $0x9c] sm:$0xf] }
  0x7a   : > { %v2792_v0 = vsel %vm6859_vm7, %v2790_v58, %v2791_v52  ;;  %v484_v8 = vrot.slane %v483_v57, 4  ;;  %v493_v11 = vrot.slane %v491_v60, 4  ;;  %6251 = vmatprep.subr.msk.bf16.mxu0 %vm709_vm0, %v6923_v42  ;;  %v504_v17 = vshrl.u32 %v6915_v38, 16  ;;  %v6972_v60 = vld [vmem:[%s6584_s30 + $0xa0] sm:$0xf] }
  0x7b   : > { %v5277_v62 = vcombine.low %v2789_v51, %v2792_v0  ;;  %v496_v26 = vrot.slane %v494_v20, 5  ;;  %5698 = vmatmul.mubr.msk.bf16.gmra.mrb[16].mxu1 %vm660_vm4, %v4992_v59  ;;  %v479_v1 = vsel %vm6629_vm3, %v474_v63, %v478_v25  ;;  %v502_v13 = vrot.slane %v500_v47, 5 }
  0x7c   : > { %v510_v23 = vshll.u32 %v218_v48, 16  ;;  %v489_v29 = vsel %vm6629_vm3, %v484_v8, %v488_v46  ;;  %v5261_v34 = vrot.slane %v5245_v55, 9  ;;  %v2795_v35 = vrot.slane %v6698_v28, 5 }
  0x7d   : > { %5855 = vmatprep.mubr.msk.bf16.mxu0 %vm660_vm4, %v5277_v62  ;;  %v497_v32 = vor.u32 %v496_v26, %v493_v11  ;;  %v4993_v16 = vcombine.low %v479_v1, %v489_v29  ;;  %v506_v39 = vrot.slane %v504_v17, 4  ;;  %v2798_v41 = vrot.slane %v6704_v37, 5  ;;  %v220_v26 = vld [vmem:[%s6584_s30 + $0xa4] sm:$0x1] }
  0x7e   : > { %v512_v40 = vrot.slane %v510_v23, 5  ;;  %v2796_v45 = vsel %vm6859_vm7, %v5261_v34, %v2795_v35  ;;  %v2797_v48 = vrot.slane %v2795_v35, 4  ;;  %v515_v46 = vshrl.u32 %v6939_v7, 16 }
  0x7f   : > { %v498_v25 = vrot.slane %v497_v32, 4  ;;  %5701 = vmatprep.mubr.msk.bf16.mxu1 %vm660_vm4, %v4993_v16  ;;  %v507_v28 = vor.u32 %v506_v39, %v502_v13  ;;  %v518_v51 = vshll.u32 %v6939_v7, 16  ;;  %v524_v58 = vshll.u32 %v6942_v27, 16 }
  0x80   : > { %v528_v37 = vshrl.u32 %v6942_v27, 16  ;;  %v2799_v55 = vsel %vm6859_vm7, %v2797_v48, %v2798_v41  ;;  %v517_v44 = vrot.slane %v515_v46, 4  ;;  %v534_v57 = vshll.u32 %v219_v61, 16  ;;  %v6987_v41 = vld [vmem:[%s6584_s30 + $0xa8] sm:$0xf] }
  0x81   : > { %v503_v52 = vsel %vm6629_vm3, %v498_v25, %v502_v13  ;;  %v508_v20 = vrot.slane %v507_v28, 4  ;;  %v5278_v59 = vcombine.low %v2796_v45, %v2799_v55  ;;  %v520_v63 = vrot.slane %v518_v51, 5  ;;  %v6994_v48 = vld [vmem:[%s6584_s30 + $0xac] sm:$0xf] }
  0x82   : > { %v526_v0 = vrot.slane %v524_v58, 5  ;;  %v530_v47 = vrot.slane %v528_v37, 4  ;;  %v536_v8 = vrot.slane %v534_v57, 5  ;;  %v5262_v62 = vrot.slane %v5246_v43, 9  ;;  %v221_v57 = vld [vmem:[%s6584_s30 + $0xb0] sm:$0x1] }
  0x83   : > { %v2802_v11 = vrot.slane %v6721_v9, 5  ;;  %v513_v1 = vsel %vm6629_vm3, %v508_v20, %v512_v40  ;;  %5856 = vmatmul.mubr.msk.bf16.gmra.mrb[4].mxu0 %vm660_vm4, %v5278_v59  ;;  %v521_v13 = vor.u32 %v520_v63, %v517_v44  ;;  %v2805_v17 = vrot.slane %v6726_v19, 5  ;;  %v5247_v9 = vld [vmem:[%s6584_s30 + $0x48] sm:$0xe] }
  0x84   : > { %v539_v23 = vshrl.u32 %v6961_v15, 16  ;;  %v4994_v29 = vcombine.low %v503_v52, %v513_v1  ;;  %v531_v32 = vor.u32 %v530_v47, %v526_v0  ;;  %v542_v39 = vshll.u32 %v6961_v15, 16 }
  0x85   : > { %v2803_v34 = vsel %vm6859_vm7, %v5262_v62, %v2802_v11  ;;  %v2804_v35 = vrot.slane %v2802_v11, 4  ;;  %v522_v61 = vrot.slane %v521_v13, 4  ;;  %v548_v40 = vshll.u32 %v6972_v60, 16 }
  0x86   : > { %v541_v16 = vrot.slane %v539_v23, 4  ;;  %5702 = vmatmul.mubr.msk.bf16.gmra.mrb[20].mxu1 %vm660_vm4, %v4994_v29  ;;  %v532_v19 = vrot.slane %v531_v32, 4  ;;  %v552_v25 = vshrl.u32 %v6972_v60, 16  ;;  %v558_v45 = vshll.u32 %v220_v26, 16  ;;  %v5248_v26 = vld [vmem:[%s6584_s30 + $0x54] sm:$0xe] }
  0x87   : > { %v2806_v43 = vsel %vm6859_vm7, %v2804_v35, %v2805_v17  ;;  %v527_v46 = vsel %vm6629_vm3, %v522_v61, %v526_v0  ;;  %v544_v51 = vrot.slane %v542_v39, 5  ;;  %v550_v58 = vrot.slane %v548_v40, 5 }
  0x88   : > { %v5279_v28 = vcombine.low %v2803_v34, %v2806_v43  ;;  %v537_v37 = vsel %vm6629_vm3, %v532_v19, %v536_v8  ;;  %v554_v52 = vrot.slane %v552_v25, 4  ;;  %v560_v55 = vrot.slane %v558_v45, 5  ;;  %v7022_v25 = vld [vmem:[%s6584_s30 + $0xb8] sm:$0xf] }
  0x89   : > { %v5263_v44 = vrot.slane %v5247_v9, 9  ;;  %v4995_v20 = vcombine.low %v527_v46, %v537_v37  ;;  %v545_v59 = vor.u32 %v544_v51, %v541_v16  ;;  %v2809_v63 = vrot.slane %v6752_v5, 5  ;;  %v7017_v16 = vld [vmem:[%s6584_s30 + $0xb4] sm:$0xf] }
  0x8a   : > { %5859 = vmatprep.mubr.msk.bf16.mxu0 %vm660_vm4, %v5279_v28  ;;  %v2812_v47 = vrot.slane %v6757_v14, 5  ;;  %v555_v0 = vor.u32 %v554_v52, %v550_v58  ;;  %v563_v62 = vshrl.u32 %v6987_v41, 16  ;;  %v566_v11 = vshll.u32 %v6987_v41, 16  ;;  %v7028_v52 = vld [vmem:[%s6584_s30 + $0xbc] sm:$0x1] }
  0x8b   : > { %v572_v8 = vshll.u32 %v6994_v48, 16  ;;  %5705 = vmatprep.mubr.msk.bf16.mxu1 %vm660_vm4, %v4995_v20  ;;  %v546_v1 = vrot.slane %v545_v59, 4  ;;  %v2810_v13 = vsel %vm6859_vm7, %v5263_v44, %v2809_v63  ;;  %v2811_v17 = vrot.slane %v2809_v63, 4 }
  0x8c   : > { %v576_v5 = vshrl.u32 %v6994_v48, 16  ;;  %v556_v14 = vrot.slane %v555_v0, 4  ;;  %v565_v23 = vrot.slane %v563_v62, 4  ;;  %v568_v29 = vrot.slane %v566_v11, 5  ;;  %v5249_v62 = vld [vmem:[%s6584_s30 + $0x60] sm:$0xe] }
  0x8d   : > { %v574_v32 = vrot.slane %v572_v8, 5  ;;  %v551_v34 = vsel %vm6629_vm3, %v546_v1, %v550_v58  ;;  %v2813_v35 = vsel %vm6859_vm7, %v2811_v17, %v2812_v47  ;;  %v582_v61 = vshll.u32 %v221_v57, 16  ;;  %v5250_v17 = vld [vmem:[%s6584_s30 + $0x6c] sm:$0xe] }
  0x8e   : > { %v578_v9 = vrot.slane %v576_v5, 4  ;;  %v561_v39 = vsel %vm6629_vm3, %v556_v14, %v560_v55  ;;  %v5280_v40 = vcombine.low %v2810_v13, %v2813_v35  ;;  %v569_v19 = vor.u32 %v568_v29, %v565_v23  ;;  %v5186_v13 = vld [vmem:[%s6584_s30 + $0x70] sm:$0xf] }
  0x8f   : > { %v5264_v43 = vrot.slane %v5248_v26, 9  ;;  %v4996_v45 = vcombine.low %v551_v34, %v561_v39  ;;  %v584_v28 = vrot.slane %v582_v61, 5  ;;  %v2816_v51 = vrot.slane %v6782_v54, 5 }
  0x90   : > { %v579_v46 = vor.u32 %v578_v9, %v574_v32  ;;  %5860 = vmatmul.mubr.msk.bf16.gmra.mrb[8].mxu0 %vm660_vm4, %v5280_v40  ;;  %v570_v58 = vrot.slane %v569_v19, 4  ;;  %v2819_v37 = vrot.slane %v6787_v2, 5  ;;  %v587_v55 = vshrl.u32 %v7017_v16, 16 }
  0x91   : > { %v590_v44 = vshll.u32 %v7017_v16, 16  ;;  %5706 = vmatmul.mubr.msk.bf16.gmra.mrb[24].mxu1 %vm660_vm4, %v4996_v45  ;;  %v2817_v54 = vsel %vm6859_vm7, %v5264_v43, %v2816_v51  ;;  %v2818_v20 = vrot.slane %v2816_v51, 4  ;;  %v596_v59 = vshll.u32 %v7022_v25, 16 }
  0x92   : > { %v580_v57 = vrot.slane %v579_v46, 4  ;;  %v575_v2 = vsel %vm6629_vm3, %v570_v58, %v574_v32  ;;  %v589_v63 = vrot.slane %v587_v55, 4  ;;  %v600_v0 = vshrl.u32 %v7022_v25, 16  ;;  %v5187_v32 = vld [vmem:[%s6584_s30 + $0x74] sm:$0x1] }
  0x93   : > { %v592_v47 = vrot.slane %v590_v44, 5  ;;  %v2820_v8 = vsel %vm6859_vm7, %v2818_v20, %v2819_v37  ;;  %v598_v26 = vrot.slane %v596_v59, 5  ;;  %v606_v1 = vshll.u32 %v7028_v52, 16  ;;  %v7061_v55 = vld [vmem:[%s6584_s30 + $0x7c] sm:$0xf] }
  0x94   : > { %v585_v11 = vsel %vm6629_vm3, %v580_v57, %v584_v28  ;;  %v5281_v14 = vcombine.low %v2817_v54, %v2820_v8  ;;  %v602_v29 = vrot.slane %v600_v0, 4  ;;  %v5265_v35 = vrot.slane %v5249_v62, 9  ;;  %v7064_v44 = vld [vmem:[%s6584_s30 + $0x80] sm:$0x1]  ;;  %v5251_v57 = vld [vmem:[%s6584_s30 + $0x78] sm:$0xe] }
  0x95   : > { %v4997_v5 = vcombine.low %v575_v2, %v585_v11  ;;  %v593_v23 = vor.u32 %v592_v47, %v589_v63  ;;  %v608_v34 = vrot.slane %v606_v1, 5  ;;  %v2823_v9 = vrot.slane %v6818_v56, 5  ;;  %v6351_v59 = vld [vmem:[%s6584_s30] sm:$0xf]  ;;  %v7071_v2 = vld [vmem:[%s6584_s30 + $0x4] sm:$0xf] }
  0x96   : > { %v2826_v61 = vrot.slane %v6826_v6, 5  ;;  %5863 = vmatprep.mubr.msk.bf16.mxu0 %vm660_vm4, %v5281_v14  ;;  %v603_v40 = vor.u32 %v602_v29, %v598_v26  ;;  %v5266_v19 = vrot.slane %v5250_v17, 9  ;;  %v2830_v43 = vrot.slane %v5186_v13, 5  ;;  %v5192_v0 = vld [vmem:[%s6584_s30 + $0x88] sm:$0xf] }
  0x97   : > { %5709 = vmatprep.mubr.msk.bf16.mxu1 %vm660_vm4, %v4997_v5  ;;  %v594_v39 = vrot.slane %v593_v23, 4  ;;  %v2824_v45 = vsel %vm6859_vm7, %v5265_v35, %v2823_v9  ;;  %v2825_v46 = vrot.slane %v2823_v9, 4  ;;  %v2833_v56 = vrot.slane %v5187_v32, 5  ;;  %v5252_v62 = vld [vmem:[%s6584_s30 + $0x84] sm:$0xe] }
  0x98   : > { %v604_v28 = vrot.slane %v603_v40, 4  ;;  %v2831_v51 = vsel %vm6859_vm7, %v5266_v19, %v2830_v43  ;;  %v2832_v58 = vrot.slane %v2830_v43, 4  ;;  %v5015_v63 = vcombine.low %v6351_v59, %v7071_v2  ;;  %v5195_v23 = vld [vmem:[%s6584_s30 + $0x94] sm:$0xf]  ;;  %v5253_v29 = vld [vmem:[%s6584_s30 + $0x90] sm:$0xe] }
  0x99   : > { %v599_v6 = vsel %vm6629_vm3, %v594_v39, %v598_v26  ;;  %v2827_v37 = vsel %vm6859_vm7, %v2825_v46, %v2826_v61  ;;  %v5193_v26 = vld [vmem:[%s6584_s30 + $0x8c] sm:$0x1]  ;;  %v5267_v1 = vrot.slane %v5251_v57, 9  ;;  %v2837_v13 = vrot.slane %v7061_v55, 5  ;;  %v5196_v9 = vld [vmem:[%s6584_s30 + $0x98] sm:$0x1] }
  0x9a   : > { %v609_v54 = vsel %vm6629_vm3, %v604_v28, %v608_v34  ;;  %v5282_v20 = vcombine.low %v2824_v45, %v2827_v37  ;;  %v2834_v47 = vsel %vm6859_vm7, %v2832_v58, %v2833_v56  ;;  %v2840_v17 = vrot.slane %v7064_v44, 5  ;;  %v5198_v61 = vld [vmem:[%s6584_s30 + $0xa0] sm:$0xf]  ;;  %v6353_v39 = vld [vmem:[%s6584_s30 + $0xc] sm:$0xf] }
  0x9b   : > { %v4998_v11 = vcombine.low %v599_v6, %v609_v54  ;;  %v5283_v8 = vcombine.low %v2831_v51, %v2834_v47  ;;  %v5268_v5 = vrot.slane %v5252_v62, 9  ;;  %v2844_v14 = vrot.slane %v5192_v0, 5  ;;  %v7093_v40 = vld [vmem:[%s6584_s30 + $0x10] sm:$0xf]  ;;  %v5199_v46 = vld [vmem:[%s6584_s30 + $0xa4] sm:$0x1] }
  0x9c   : > { %5864 = vmatmul.mubr.msk.bf16.gmra.mrb[12].mxu0 %vm660_vm4, %v5282_v20  ;;  %v2838_v32 = vsel %vm6859_vm7, %v5267_v1, %v2837_v13  ;;  %v2839_v34 = vrot.slane %v2837_v13, 4  ;;  %v2847_v35 = vrot.slane %v5193_v26, 5  ;;  %v5016_v19 = vcombine.low %v6353_v39, %v7093_v40  ;;  %v5254_v56 = vld [vmem:[%s6584_s30 + $0x9c] sm:$0xe]  ;;  %v6355_v28 = vld [vmem:[%s6584_s30 + $0x18] sm:$0xf] }
  0x9d   : > { %5710 = vmatmul.mubr.msk.bf16.gmra.mrb[28].mxu1 %vm660_vm4, %v4998_v11  ;;  %5867 = vmatprep.mubr.msk.bf16.mxu0 %vm660_vm4, %v5283_v8  ;;  %v2845_v43 = vsel %vm6859_vm7, %v5268_v5, %v2844_v14  ;;  %v2846_v45 = vrot.slane %v2844_v14, 4  ;;  %v7104_v51 = vld [vmem:[%s6584_s30 + $0x1c] sm:$0xf]  ;;  %v5269_v37 = vrot.slane %v5253_v29, 9  ;;  %v2851_v57 = vrot.slane %v5195_v23, 5 }
  0x9e   : > { %5715 = vmatprep.mubr.msk.bf16.mxu1 %vm660_vm4, %v5015_v63  ;;  %v2841_v6 = vsel %vm6859_vm7, %v2839_v34, %v2840_v17  ;;  %v5017_v58 = vcombine.low %v6355_v28, %v7104_v51  ;;  %v2854_v59 = vrot.slane %v5196_v9, 5  ;;  %v2858_v63 = vrot.slane %v5198_v61, 5  ;;  %v5201_v47 = vld [vmem:[%s6584_s30 + $0xac] sm:$0xf]  ;;  %v5204_v26 = vld [vmem:[%s6584_s30 + $0xb8] sm:$0xf] }
  0x9f   : > { %v5284_v54 = vcombine.low %v2838_v32, %v2841_v6  ;;  %v2848_v20 = vsel %vm6859_vm7, %v2846_v45, %v2847_v35  ;;  %v2853_v62 = vrot.slane %v2851_v57, 4  ;;  %v5270_v11 = vrot.slane %v5254_v56, 9  ;;  %v7117_v17 = vld [vmem:[%s8404_s1 + $0x6] sm:$0x3]  ;;  %v5202_v14 = vld [vmem:[%s6584_s30 + $0xb0] sm:$0x1] }
  0xa0   : > { %v5285_v0 = vcombine.low %v2845_v43, %v2848_v20  ;;  %v2861_v8 = vrot.slane %v5199_v46, 5  ;;  %v1428_v1 = vsel %vm709_vm0, %v6815_v50, 0  ;;  %v2860_v13 = vrot.slane %v2858_v63, 4  ;;  %v5255_v34 = vld [vmem:[%s6584_s30 + $0xa8] sm:$0xe] }
  0xa1   : > { %v2852_v5 = vsel %vm6859_vm7, %v5269_v37, %v2851_v57  ;;  %v2855_v50 = vsel %vm6859_vm7, %v2853_v62, %v2854_v59  ;;  %v2865_v23 = vrot.slane %v5201_v47, 5  ;;  %v2859_v29 = vsel %vm6859_vm7, %v5270_v11, %v2858_v63  ;;  %v5205_v9 = vld [vmem:[%s6584_s30 + $0xbc] sm:$0x1]  ;;  %v5256_v61 = vld [vmem:[%s6584_s30 + $0xb4] sm:$0xe] }
  0xa2   : > { %v2862_v32 = vsel %vm6859_vm7, %v2860_v13, %v2861_v8  ;;  %v2872_v35 = vrot.slane %v5204_v26, 5  ;;  %v6357_v39 = vld [vmem:[%s6584_s30 + $0x24] sm:$0xf]  ;;  %v5286_v45 = vcombine.low %v2852_v5, %v2855_v50  ;;  %v5271_v56 = vrot.slane %v5255_v34, 9  ;;  %v7143_v37 = vld [vmem:[%s6584_s30 + $0x34] sm:$0xf] }
  0xa3   : > { %v5287_v46 = vcombine.low %v2859_v29, %v2862_v32  ;;  %v2867_v6 = vrot.slane %v2865_v23, 4  ;;  %v2868_v28 = vrot.slane %v5202_v14, 5  ;;  %v2875_v59 = vrot.slane %v5205_v9, 5  ;;  %v5207_v63 = vld [vmem:[%s6584_s30 + $0xc4] sm:$0xf] }
  0xa4   : > { %5868 = vmatmul.mubr.msk.bf16.gmra.mrb[16].mxu0 %vm660_vm4, %v5284_v54  ;;  %v5272_v54 = vrot.slane %v5256_v61, 9  ;;  %v2874_v20 = vrot.slane %v2872_v35, 4  ;;  %v2866_v47 = vsel %vm6859_vm7, %v5271_v56, %v2865_v23  ;;  %v2879_v62 = vrot.slane %v5207_v63, 5  ;;  %v5208_v26 = vld [vmem:[%s6584_s30 + $0xc8] sm:$0x1] }
  0xa5   : > { %5716 = vmatmul.mubr.msk.bf16.vlgmr.msra.gmra.mrb[0].mxu1 %vm660_vm4, %v5016_v19  ;;  %5871 = vmatprep.mubr.msk.bf16.mxu0 %vm660_vm4, %v5285_v0  ;;  %v7138_v19 = vld [vmem:[%s6584_s30 + $0x28] sm:$0xf]  ;;  %v2869_v0 = vsel %vm6859_vm7, %v2867_v6, %v2868_v28  ;;  %v6361_v13 = vld [vmem:[%s6584_s30 + $0x3c] sm:$0xf]  ;;  %v7163_v5 = vld [vmem:[%s6584_s30 + $0x40] sm:$0xf]  ;;  %v5021_v9 = vcombine.low %v6760_v12, %v6768_v36  ;;  %v5023_v6 = vcombine.low %v6832_v18, %v6835_v24 }
  0xa6   : > { %5748 = vmatpush3.bf16.msra.mxu1 %v1428_v1  ;;  %5719 = vmatprep.mubr.msk.bf16.mxu1 %vm660_vm4, %v5017_v58  ;;  %v5018_v43 = vcombine.low %v6357_v39, %v7138_v19  ;;  %v6359_v58 = vld [vmem:[%s6584_s30 + $0x30] sm:$0xf]  ;;  %v2873_v11 = vsel %vm6859_vm7, %v5272_v54, %v2872_v35  ;;  %v2876_v8 = vsel %vm6859_vm7, %v2874_v20, %v2875_v59  ;;  %v5257_v1 = vld [vmem:[%s6584_s30 + $0xc0] sm:$0xe]  ;;  %v2881_v32 = vrot.slane %v2879_v62, 4 }
  0xa7   : > { %6246 = vmatprep.subr.msk.bf16.mxu1 %vm709_vm0, %v7117_v17  ;;  %v5019_v57 = vcombine.low %v6359_v58, %v7143_v37  ;;  %v5020_v50 = vcombine.low %v6361_v13, %v7163_v5  ;;  %v5288_v14 = vcombine.low %v2866_v47, %v2869_v0  ;;  %v5289_v23 = vcombine.low %v2873_v11, %v2876_v8  ;;  %v1166_v58 = vld [vmem:[%s6584_s30] sm:$0xe]  ;;  %v1167_v20 = vld [vmem:[%s6584_s30 + $0xc] sm:$0xe]  ;;  %v6363_v18 = vld [vmem:[%s6584_s30 + $0x8] sm:$0x1] }
  0xa8   : > { %v5273_v29 = vrot.slane %v5257_v1, 9  ;;  %v2882_v34 = vrot.slane %v5208_v26, 5  ;;  %v2256_v35 = vshll.u32 %v7061_v55, 16  ;;  %v2260_v61 = vshrl.u32 %v7061_v55, 16  ;;  %v6314_v47 = vld [vmem:[%s6584_s30 + $0x24] sm:$0xff]  }
  0xa9   : > { %v2266_v56 = vshll.u32 %v7064_v44, 16  ;;  %v1219_v54 = vrot.slane %v7071_v2, 5  ;;  %v1222_v24 = vrot.slane %v6363_v18, 5  ;;  %v6364_v44 = vld [vmem:[%s6584_s30 + $0x14] sm:$0x1]  ;;  %v5024_v63 = vcombine.low %v6851_v3, %v6857_v10 }
  0xaa   : > { %v2880_v39 = vsel %vm6859_vm7, %v5273_v29, %v2879_v62  ;;  %v7178_v12 = vrot.slane %v2256_v35, 5  ;;  %v2262_v36 = vrot.slane %v2260_v61, 4  ;;  %v1229_v59 = vrot.slane %v6364_v44, 5  ;;  %v1169_v62 = vld [vmem:[%s6584_s30 + $0x24] sm:$0xe] }
  0xab   : > { %v5047_v0 = vrot.slane %v1166_v58, 9  ;;  %v4068_v11 = vsel %vm709_vm0, %v6923_v42, 0  ;;  %v1221_v8 = vrot.slane %v1219_v54, 4  ;;  %v1170_v13 = vld [vmem:[%s6584_s30 + $0x30] sm:$0xe]  ;;  %v1240_v3 = vrot.slane %v7138_v19, 5 }
  0xac   : > { %5872 = vmatmul.mubr.msk.bf16.gmra.mrb[20].mxu0 %vm660_vm4, %v5286_v45  ;;  %8427 = vst [vmem:[#allocation9_spill] sm:$0xff] %v7178_v12  ;;  %v5022_v45 = vcombine.low %v6793_v21, %v6799_v30  ;;  %v2263_v28 = vor.u32 %v2262_v36, %v7178_v12  ;;  %v1168_v21 = vld [vmem:[%s6584_s30 + $0x18] sm:$0xe]  ;;  %v1233_v30 = vrot.slane %v7104_v51, 5  ;;  %v5048_v51 = vrot.slane %v1167_v20, 9  ;;  %v6318_v58 = vld [vmem:[%s6584_s30 + $0x3c] sm:$0xff]  }
  0xad   : > { %5720 = vmatmul.mubr.msk.bf16.gmra.mrb[4].mxu1 %vm660_vm4, %v5018_v43  ;;  %5875 = vmatprep.mubr.msk.bf16.mxu0 %vm660_vm4, %v5287_v46  ;;  %v2883_v43 = vsel %vm6859_vm7, %v2881_v32, %v2882_v34  ;;  %v6312_v46 = vld [vmem:[%s6584_s30 + $0x18] sm:$0xff]   ;;  %v5049_v1 = vrot.slane %v1168_v21, 9  ;;  %v6316_v32 = vld [vmem:[%s6584_s30 + $0x30] sm:$0xff]   ;;  %v5026_v34 = vcombine.low %v6909_v33, %v6915_v38  ;;  %v5027_v42 = vcombine.low %v6939_v7, %v6942_v27  ;;  %v7344_v27 = vld [vmem:[%s6584_s30 + $0x64] sm:$0xf] }
  0xae   : > { %5723 = vmatprep.mubr.msk.bf16.mxu1 %vm660_vm4, %v5019_v57  ;;  %v5290_v55 = vcombine.low %v2880_v39, %v2883_v43  ;;  %v1226_v57 = vrot.slane %v7093_v40, 5  ;;  %v7198_v40 = vrot.slane %v2266_v56, 5  ;;  %v7201_v2 = vrot.slane %v2263_v28, 4  ;;  %v1171_v10 = vld [vmem:[%s6584_s30 + $0x3c] sm:$0xe]  ;;  %v6322_v33 = vld [vmem:[%s6584_s30 + $0x54] sm:$0xff]  }
  0xaf   : > { %v1247_v35 = vrot.slane %v7143_v37, 5  ;;  %v7232_v19 = vsel %vm6859_vm7, %v5047_v0, %v1219_v54  ;;  %v1254_v39 = vrot.slane %v7163_v5, 5  ;;  %v7242_v37 = vsel %vm6859_vm7, %v1221_v8, %v1222_v24  ;;  %v6366_v56 = vld [vmem:[%s6584_s30 + $0x2c] sm:$0x1]  ;;  %v6367_v20 = vld [vmem:[%s6584_s30 + $0x38] sm:$0x1] }
  0xb0   : > { %8428 = vst [vmem:[#allocation10_spill] sm:$0xff] %v7198_v40  ;;  %8429 = vst [vmem:[#allocation11_spill] sm:$0xff] %v7201_v2  ;;  %v1228_v26 = vrot.slane %v1226_v57, 4  ;;  %v7236_v61 = vsel %vm6859_vm7, %v5048_v51, %v1226_v57  ;;  %v7250_v36 = vsel %vm6859_vm7, %v5049_v1, %v1233_v30  ;;  %v5051_v28 = vrot.slane %v1170_v13, 9  ;;  %v5372_v18 = vld [vmem:[%s6584_s30 + $0x18] sm:$0xf] }
  0xb1   : > { %v1249_v54 = vrot.slane %v1247_v35, 4  ;;  %v1250_v21 = vrot.slane %v6367_v20, 5  ;;  %v6320_v24 = vld [vmem:[%s6584_s30 + $0x48] sm:$0xff]   ;;  %v7271_v44 = vsel %vm709_vm0, %v7117_v17, 0  ;;  %v1173_v1 = vld [vmem:[%s6584_s30 + $0x54] sm:$0xe] }
  0xb2   : > { %v7246_v43 = vsel %vm6859_vm7, %v1228_v26, %v1229_v59  ;;  %v1256_v59 = vrot.slane %v1254_v39, 4  ;;  %v6369_v0 = vld [vmem:[%s6584_s30 + $0x4c] sm:$0xf]  ;;  %v5375_v13 = vld [vmem:[%s6584_s30 + $0x24] sm:$0xf] }
  0xb3   : > { %v1261_v51 = vrot.slane %v6369_v0, 5  ;;  %v3613_v20 = vshll.u32 %v5375_v13, 16  ;;  %v5377_v17 = vld [vmem:[%s6584_s30 + $0x2c] sm:$0x1]  ;;  %v6375_v8 = vld [vmem:[%s6584_s30 + $0x70] sm:$0xf] }
  0xb4   : > { %5876 = vmatmul.mubr.msk.bf16.gmra.mrb[24].mxu0 %vm660_vm4, %v5288_v14  ;;  %v1235_v14 = vrot.slane %v1233_v30, 4  ;;  %v5052_v30 = vrot.slane %v1171_v10, 9  ;;  %v6370_v10 = vld [vmem:[%s6584_s30 + $0x50] sm:$0x1]  ;;  %v6385_v2 = vld [vmem:[%s6584_s30 + $0xa4] sm:$0x1] }
  0xb5   : > { %5724 = vmatmul.mubr.msk.bf16.gmra.mrb[8].mxu1 %vm660_vm4, %v5020_v50  ;;  %5879 = vmatprep.mubr.msk.bf16.mxu0 %vm660_vm4, %v5289_v23  ;;  %v5025_v50 = vcombine.low %v6883_v49, %v6886_v53  ;;  %v6365_v23 = vld [vmem:[%s6584_s30 + $0x20] sm:$0x1]  ;;  %v7226_v49 = vld [vmem:[%s8404_s1 + $0x10] sm:$0x3]  ;;  %v5029_v53 = vcombine.low %v6987_v41, %v6994_v48 }
  0xb6   : > { %5727 = vmatprep.mubr.msk.bf16.mxu1 %vm660_vm4, %v5021_v9  ;;  %v1236_v29 = vrot.slane %v6365_v23, 5  ;;  %v5028_v9 = vcombine.low %v6961_v15, %v6972_v60  ;;  %v7297_v23 = vsel %vm6859_vm7, %v5051_v28, %v1247_v35  ;;  %v1263_v35 = vrot.slane %v1261_v51, 4 }
  0xb8   : > { %v7258_v5 = vsel %vm6859_vm7, %v1235_v14, %v1236_v29 }
  0xbc   : > { %5880 = vmatmul.mubr.msk.bf16.gmra.mrb[28].mxu0 %vm660_vm4, %v5290_v55  ;;  %v5050_v55 = vrot.slane %v1169_v62, 9  ;;  %v5373_v62 = vld [vmem:[%s6584_s30 + $0x1c] sm:$0xf] }
  0xbd   : > { %5728 = vmatmul.mubr.msk.bf16.gmra.mrb[12].mxu1 %vm660_vm4, %v5022_v45  ;;  %5885 = vmatprep.mubr.msk.bf16.mxu0 %vm660_vm4, %v6312_v46  ;;  %v7253_v45 = vld [vmem:[%s6584_s30 + $0x48] sm:$0xe]  ;;  %v1242_v46 = vrot.slane %v1240_v3, 4  ;;  %v3599_v28 = vshrl.u32 %v5373_v62, 16 }
  0xbe   : > { %5731 = vmatprep.mubr.msk.bf16.mxu1 %vm660_vm4, %v5023_v6  ;;  %v1243_v6 = vrot.slane %v6366_v56, 5  ;;  %v7286_v26 = vsel %vm6859_vm7, %v5050_v55, %v1240_v3  ;;  %v5053_v29 = vrot.slane %v7253_v45, 9  ;;  %v7303_v56 = vsel %vm6859_vm7, %v1249_v54, %v1250_v21 }
  0xbf   : > { %v7307_v3 = vsel %vm6859_vm7, %v5052_v30, %v1254_v39  ;;  %v3586_v55 = vshrl.u32 %v5372_v18, 16  ;;  %v3595_v45 = vshll.u32 %v5373_v62, 16  ;;  %v3610_v54 = vshrl.u32 %v5375_v13, 16  ;;  %v6324_v62 = vld [vmem:[%s6584_s30 + $0x60] sm:$0xff]  }
  0xc0   : > { %v7293_v14 = vsel %vm6859_vm7, %v1242_v46, %v1243_v6  ;;  %v3589_v46 = vshll.u32 %v5372_v18, 16  ;;  %v5054_v18 = vrot.slane %v1173_v1, 9  ;;  %v5374_v1 = vld [vmem:[%s6584_s30 + $0x20] sm:$0x1] }
  0xc1   : > { %v7348_v13 = vrot.slane %v3595_v45, 5 }
  0xc2   : > { %v3591_v0 = vrot.slane %v3589_v46, 5  ;;  %v5378_v46 = vld [vmem:[%s6584_s30 + $0x30] sm:$0xf] }
  0xc4   : > { %5886 = vmatmul.mubr.msk.bf16.vlgmr.msra.gmra.mrb[0].mxu0 %vm660_vm4, %v6314_v47 }
  0xc5   : > { %5732 = vmatmul.mubr.msk.bf16.gmra.mrb[16].mxu1 %vm660_vm4, %v5024_v63  ;;  %5918 = vmatpush3.bf16.msra.mxu0 %v4068_v11  ;;  %v6368_v63 = vld [vmem:[%s6584_s30 + $0x44] sm:$0x1]  ;;  %v3634_v11 = vshrl.u32 %v5378_v46, 16 }
  0xc6   : > { %5735 = vmatprep.mubr.msk.bf16.mxu1 %vm660_vm4, %v5025_v50  ;;  %5889 = vmatprep.mubr.msk.bf16.mxu0 %vm660_vm4, %v6316_v32  ;;  %v1257_v47 = vrot.slane %v6368_v63, 5  ;;  %v5376_v50 = vld [vmem:[%s6584_s30 + $0x28] sm:$0xf]  ;;  %v1264_v32 = vrot.slane %v6370_v10, 5 }
  0xc7   : > { %6252 = vmatprep.subr.msk.bf16.mxu0 %vm709_vm0, %v7226_v49  ;;  %v3619_v21 = vshll.u32 %v5376_v50, 16  ;;  %v3623_v39 = vshrl.u32 %v5376_v50, 16  ;;  %v3612_v50 = vrot.slane %v3610_v54, 4 }
  0xc8   : > { %v7311_v6 = vsel %vm6859_vm7, %v1256_v59, %v1257_v47  ;;  %v6371_v59 = vld [vmem:[%s6584_s30 + $0x58] sm:$0xf]  ;;  %v3588_v47 = vrot.slane %v3586_v55, 4  ;;  %v7341_v7 = vsel %vm6859_vm7, %v1263_v35, %v1264_v32  ;;  %v6373_v35 = vld [vmem:[%s6584_s30 + $0x5c] sm:$0x1] }
  0xc9   : > { %v1268_v63 = vrot.slane %v6371_v59, 5  ;;  %v7350_v10 = vrot.slane %v3619_v21, 5  ;;  %v3625_v55 = vrot.slane %v3623_v39, 4  ;;  %v1271_v59 = vrot.slane %v6373_v35, 5  ;;  %v5379_v21 = vld [vmem:[%s6584_s30 + $0x34] sm:$0xf] }
  0xca   : > { %v3592_v54 = vor.u32 %v3591_v0, %v3588_v47  ;;  %v1175_v35 = vld [vmem:[%s6584_s30 + $0x6c] sm:$0xe]  ;;  %v3629_v47 = vshll.u32 %v5377_v17, 16  ;;  %v6376_v0 = vld [vmem:[%s6584_s30 + $0x7c] sm:$0xf] }
  0xcb   : > { %v1270_v32 = vrot.slane %v1268_v63, 4  ;;  %v6377_v17 = vld [vmem:[%s6584_s30 + $0x74] sm:$0x1] }
  0xcc   : > { %5890 = vmatmul.mubr.msk.bf16.gmra.mrb[4].mxu0 %vm660_vm4, %v6318_v58  ;;  %v6374_v58 = vld [vmem:[%s6584_s30 + $0x68] sm:$0x1]  ;;  %v3593_v15 = vrot.slane %v3592_v54, 4 }
  0xcd   : > { %5736 = vmatmul.mubr.msk.bf16.gmra.mrb[20].mxu1 %vm660_vm4, %v5026_v34  ;;  %5893 = vmatprep.mubr.msk.bf16.mxu0 %vm660_vm4, %v6320_v24  ;;  %v7333_v34 = vsel %vm6859_vm7, %v5053_v29, %v1261_v51  ;;  %v7336_v24 = vld [vmem:[%s6584_s30 + $0x60] sm:$0xe]  ;;  %v3601_v51 = vrot.slane %v3599_v28, 4  ;;  %v3615_v29 = vrot.slane %v3613_v20, 5  ;;  %v1278_v30 = vrot.slane %v6374_v58, 5 }
  0xce   : > { %5739 = vmatprep.mubr.msk.bf16.mxu1 %vm660_vm4, %v5027_v42  ;;  %v8407_v42 = vrot.slane %v7344_v27, 5  ;;  %v5055_v38 = vrot.slane %v7336_v24, 9  ;;  %v7361_v28 = vsel %vm6859_vm7, %v5054_v18, %v1268_v63  ;;  %v3605_v20 = vshll.u32 %v5374_v1, 16 }
  0xcf   : > { %v3602_v39 = vor.u32 %v3601_v51, %v7348_v13  ;;  %v1282_v24 = vrot.slane %v6375_v8, 5  ;;  %v3637_v58 = vshll.u32 %v5378_v46, 16  ;;  %v3616_v18 = vor.u32 %v3615_v29, %v3612_v50 }
  0xd0   : > { %v1277_v45 = vrot.slane %v8407_v42, 4  ;;  %v3626_v63 = vor.u32 %v3625_v55, %v7350_v10  ;;  %v7378_v8 = vsel %vm6859_vm7, %v1270_v32, %v1271_v59  ;;  %v1289_v1 = vrot.slane %v6376_v0, 5  ;;  %v6326_v59 = vld [vmem:[%s6584_s30 + $0x6c] sm:$0xff]   ;;  %v6327_v0 = vld [vmem:[%s6584_s30 + $0x78] sm:$0xff]  }
  0xd1   : > { %v3643_v51 = vshll.u32 %v5379_v21, 16  ;;  %v3647_v50 = vshrl.u32 %v5379_v21, 16  ;;  %v3607_v60 = vrot.slane %v3605_v20, 5  ;;  %v3603_v29 = vrot.slane %v3602_v39, 4  ;;  %v7391_v20 = vld [vmem:[%s6584_s30 + $0x38] sm:$0x1] }
  0xd2   : > { %v1284_v55 = vrot.slane %v1282_v24, 4  ;;  %v3636_v46 = vrot.slane %v3634_v11, 4  ;;  %v3639_v32 = vrot.slane %v3637_v58, 5  ;;  %v3617_v21 = vrot.slane %v3616_v18, 4  ;;  %8430 = vst [vmem:[#allocation12_spill] sm:$0xff] %v7391_v20 }
  0xd3   : > { %v3627_v57 = vrot.slane %v3626_v63, 4  ;;  %v3631_v42 = vrot.slane %v3629_v47, 5  ;;  %v1291_v48 = vrot.slane %v1289_v1, 4  ;;  %v8431_v39 = vrot.slane %v7344_v27, 5  ;;  %v1177_v47 = vld [vmem:[%s6584_s30 + $0x84] sm:$0xe] }
  0xd4   : > { %5894 = vmatmul.mubr.msk.bf16.gmra.mrb[8].mxu0 %vm660_vm4, %v6322_v33  ;;  %v1176_v33 = vld [vmem:[%s6584_s30 + $0x78] sm:$0xe]  ;;  %v7405_v18 = vsel %vm6859_vm7, %v1277_v45, %v1278_v30  ;;  %v3608_v30 = vsel %vm6629_vm3, %v3603_v29, %v3607_v60  ;;  %v3622_v45 = vsel %vm6629_vm3, %v3617_v21, %v7350_v10  ;;  %v8433_v29 = vcombine.low %v7232_v19, %v7242_v37 }
  0xd5   : > { %5740 = vmatmul.mubr.msk.bf16.gmra.mrb[24].mxu1 %vm660_vm4, %v5028_v9  ;;  %5897 = vmatprep.mubr.msk.bf16.mxu0 %vm660_vm4, %v6324_v62  ;;  %v5056_v9 = vrot.slane %v1175_v35, 9  ;;  %v1285_v62 = vrot.slane %v6377_v17, 5  ;;  %v5057_v41 = vrot.slane %v1176_v33, 9  ;;  %v7393_v35 = vrot.slane %v3643_v51, 5 }
  0xd6   : > { %5743 = vmatprep.mubr.msk.bf16.mxu1 %vm660_vm4, %v5029_v53  ;;  %v6378_v53 = vld [vmem:[%s6584_s30 + $0x80] sm:$0x1]  ;;  %v3649_v17 = vrot.slane %v3647_v50, 4  ;;  %v7401_v58 = vsel %vm6859_vm7, %v5055_v38, %v8431_v39  ;;  %v3598_v33 = vsel %vm6629_vm3, %v3593_v15, %v7348_v13  ;;  %v3640_v51 = vor.u32 %v3639_v32, %v3636_v46  ;;  %v6379_v38 = vld [vmem:[%s6584_s30 + $0x88] sm:$0xf] }
  0xd7   : > { %v1292_v54 = vrot.slane %v6378_v53, 5  ;;  %v7409_v63 = vsel %vm6859_vm7, %v5056_v9, %v1282_v24  ;;  %v7417_v27 = vsel %vm6859_vm7, %v1284_v55, %v1285_v62  ;;  %v1296_v50 = vrot.slane %v6379_v38, 5  ;;  %v5381_v15 = vld [vmem:[%s6584_s30 + $0x3c] sm:$0xf]  ;;  %v6380_v55 = vld [vmem:[%s6584_s30 + $0x8c] sm:$0x1] }
  0xd8   : > { %v7428_v13 = vsel %vm6859_vm7, %v5057_v41, %v1289_v1  ;;  %v3653_v24 = vshll.u32 %v7391_v20, 16  ;;  %v8432_v9 = vcombine.low %v7017_v16, %v7022_v25  ;;  %v3632_v60 = vsel %vm6629_vm3, %v3627_v57, %v3631_v42  ;;  %v7458_v32 = vld [vmem:[%s6584_s30 + $0x40] sm:$0xf]  ;;  %v7462_v41 = vld [vmem:[%s6584_s30 + $0x4c] sm:$0xf] }
  0xd9   : > { %v7441_v10 = vsel %vm6859_vm7, %v1291_v48, %v1292_v54  ;;  %v3650_v1 = vor.u32 %v3649_v17, %v7393_v35  ;;  %v5058_v62 = vrot.slane %v1177_v47, 9  ;;  %v7454_v42 = vsel %vm709_vm0, %v7226_v49, 0  ;;  %8434 = vst [vmem:[#allocation13_spill] sm:$0xff] %v7458_v32  ;;  %v6328_v48 = vld [vmem:[%s6584_s30 + $0x84] sm:$0xff]   ;;  %v5387_v39 = vld [vmem:[%s6584_s30 + $0x54] sm:$0xf] }
  0xda   : > { %v1299_v46 = vrot.slane %v6380_v55, 5  ;;  %v3641_v19 = vrot.slane %v3640_v51, 4  ;;  %v1298_v37 = vrot.slane %v1296_v50, 4  ;;  %v3661_v21 = vshll.u32 %v5381_v15, 16  ;;  %v6329_v47 = vld [vmem:[%s6584_s30 + $0x90] sm:$0xff]  }
  0xdb   : > { %v7465_v53 = vcombine.low %v3598_v33, %v3608_v30  ;;  %v7467_v54 = vcombine.low %v3622_v45, %v3632_v60  ;;  %v3655_v17 = vrot.slane %v3653_v24, 5  ;;  %v3651_v51 = vrot.slane %v3650_v1, 4  ;;  %v7480_v33 = vld [vmem:[%s6584_s30 + $0x58] sm:$0xf]  ;;  %v7483_v30 = vld [vmem:[%s6584_s30 + $0x44] sm:$0x1] }
  0xdc   : > { %5898 = vmatmul.mubr.msk.bf16.gmra.mrb[12].mxu0 %vm660_vm4, %v6326_v59  ;;  %v5384_v59 = vld [vmem:[%s6584_s30 + $0x48] sm:$0xf]  ;;  %v7475_v38 = vsel %vm6859_vm7, %v5058_v62, %v1296_v50  ;;  %8435 = vst [vmem:[#allocation14_spill] sm:$0xff] %v7483_v30  ;;  %v3691_v24 = vshll.u32 %v7462_v41, 16  ;;  %v3646_v1 = vsel %vm6629_vm3, %v3641_v19, %v7393_v35  ;;  %v7492_v50 = vsel %vm6859_vm7, %v1298_v37, %v1299_v46  ;;  %v7496_v49 = vld [vmem:[%s6584_s30 + $0x90] sm:$0xe] }
  0xdd   : > { %5744 = vmatmul.mubr.msk.bf16.gmra.mrb[28].mxu1 %vm660_vm4, %v8432_v9  ;;  %5901 = vmatprep.mubr.msk.bf16.mxu0 %vm660_vm4, %v6327_v0  ;;  %v3658_v0 = vshrl.u32 %v5381_v15, 16  ;;  %v3667_v15 = vshll.u32 %v7458_v32, 16  ;;  %v3671_v9 = vshrl.u32 %v7458_v32, 16  ;;  %v3682_v45 = vshrl.u32 %v5384_v59, 16  ;;  %v6384_v20 = vld [vmem:[%s6584_s30 + $0xa0] sm:$0xf] }
  0xde   : > { %5749 = vmatprep.mubr.msk.bf16.mxu1 %vm660_vm4, %v8433_v29  ;;  %v3685_v60 = vshll.u32 %v5384_v59, 16  ;;  %v3695_v29 = vshrl.u32 %v7462_v41, 16  ;;  %v3663_v55 = vrot.slane %v3661_v21, 5  ;;  %v3706_v59 = vshrl.u32 %v5387_v39, 16 }
  0xdf   : > { %v3660_v62 = vrot.slane %v3658_v0, 4  ;;  %v3709_v57 = vshll.u32 %v5387_v39, 16  ;;  %v3715_v16 = vshll.u32 %v7480_v33, 16  ;;  %v3719_v11 = vshrl.u32 %v7480_v33, 16 }
  0xe0   : > { %v8436_v35 = vcombine.low %v7236_v61, %v7246_v43  ;;  %v3656_v46 = vsel %vm6629_vm3, %v3651_v51, %v3655_v17  ;;  %v7507_v19 = vrot.slane %v3667_v15, 5  ;;  %v3673_v37 = vrot.slane %v3671_v9, 4  ;;  %v7516_v61 = vld [vmem:[%s6584_s30 + $0x50] sm:$0x1]  ;;  %v7526_v9 = vld [vmem:[%s6584_s30 + $0x5c] sm:$0x1] }
  0xe1   : > { %v3677_v0 = vshll.u32 %v7483_v30, 16  ;;  %v8437_v21 = vcombine.low %v7250_v36, %v7258_v5  ;;  %v3684_v43 = vrot.slane %v3682_v45, 4  ;;  %v7518_v39 = vrot.slane %v3691_v24, 5  ;;  %v6381_v36 = vld [vmem:[%s6584_s30 + $0x94] sm:$0xf] }
  0xe2   : > { %v3697_v17 = vrot.slane %v3695_v29, 4  ;;  %v3664_v15 = vor.u32 %v3663_v55, %v3660_v62  ;;  %v1303_v5 = vrot.slane %v6381_v36, 5  ;;  %v6382_v45 = vld [vmem:[%s8404_s1 + $0x8] sm:$0x3]  ;;  %v3711_v24 = vrot.slane %v3709_v57, 5 }
  0xe3   : > { %v7532_v29 = vrot.slane %v3715_v16, 5  ;;  %v3721_v62 = vrot.slane %v3719_v11, 4  ;;  %v6331_v55 = vld [vmem:[%s6584_s30 + $0xa8] sm:$0xff]   ;;  %v7539_v36 = vrot.slane %v3677_v0, 5  ;;  %v3701_v51 = vshll.u32 %v7516_v61, 16 }
  0xe4   : > { %5902 = vmatmul.mubr.msk.bf16.gmra.mrb[16].mxu0 %vm660_vm4, %v6328_v48  ;;  %v3687_v48 = vrot.slane %v3685_v60, 5  ;;  %v3708_v60 = vrot.slane %v3706_v59, 4  ;;  %v7543_v30 = vld [vmem:[%s6584_s30 + $0x64] sm:$0xf]  ;;  %v3698_v57 = vor.u32 %v3697_v17, %v7518_v39  ;;  %v1179_v16 = vld [vmem:[%s6584_s30 + $0x9c] sm:$0xe] }
  0xe5   : > { %5750 = vmatmul.mubr.msk.bf16.vlgmr.msra.gmra.mrb[0].mxu1 %vm660_vm4, %v8436_v35  ;;  %5905 = vmatprep.mubr.msk.bf16.mxu0 %vm660_vm4, %v6329_v47  ;;  %v6330_v47 = vld [vmem:[%s6584_s30 + $0x9c] sm:$0xff]   ;;  %v7536_v35 = vcombine.low %v3646_v1, %v3656_v46  ;;  %8438 = vst [vmem:[#allocation15_spill] sm:$0xff] %v7543_v30  ;;  %v1310_v11 = vrot.slane %v6384_v20, 5  ;;  %v7549_v12 = vrot.slane %v3664_v15, 4  ;;  %v3725_v1 = vshll.u32 %v7526_v9, 16 }
  0xe6   : > { %5782 = vmatpush3.bf16.msra.mxu1 %v7271_v44  ;;  %5753 = vmatprep.mubr.msk.bf16.mxu1 %vm660_vm4, %v8437_v21  ;;  %v5059_v44 = vrot.slane %v7496_v49, 9  ;;  %v5390_v49 = vld [vmem:[%s6584_s30 + $0x60] sm:$0xf]  ;;  %v3674_v21 = vor.u32 %v3673_v37, %v7507_v19  ;;  %v3688_v59 = vor.u32 %v3687_v48, %v3684_v43  ;;  %v3712_v0 = vor.u32 %v3711_v24, %v3708_v60 }
  0xe7   : > { %6248 = vmatprep.subr.msk.bf16.mxu1 %vm709_vm0, %v6382_v45  ;;  %v6383_v45 = vld [vmem:[%s6584_s30 + $0x98] sm:$0x1]  ;;  %v3730_v46 = vshrl.u32 %v5390_v49, 16  ;;  %v3733_v37 = vshll.u32 %v5390_v49, 16  ;;  %v3722_v4 = vor.u32 %v3721_v62, %v7532_v29  ;;  %v3739_v43 = vshll.u32 %v7543_v30, 16 }
  0xe8   : > { %v1306_v32 = vrot.slane %v6383_v45, 5  ;;  %v3743_v48 = vshrl.u32 %v7543_v30, 16  ;;  %v8439_v20 = vcombine.low %v7286_v26, %v7293_v14  ;;  %v3675_v17 = vrot.slane %v3674_v21, 4 }
  0xe9   : > { %v1305_v15 = vrot.slane %v1303_v5, 4  ;;  %v5060_v60 = vrot.slane %v1179_v16, 9  ;;  %v8440_v24 = vcombine.low %v7297_v23, %v7303_v56  ;;  %v3689_v62 = vrot.slane %v3688_v59, 4 }
  0xea   : > { %v3699_v49 = vrot.slane %v3698_v57, 4  ;;  %v1312_v45 = vrot.slane %v1310_v11, 4  ;;  %v1313_v26 = vrot.slane %v6385_v2, 5  ;;  %v3727_v14 = vrot.slane %v3725_v1, 5  ;;  %v6333_v57 = vld [vmem:[%s6584_s30 + $0xc0] sm:$0xff]  }
  0xeb   : > { %v3732_v40 = vrot.slane %v3730_v46, 4  ;;  %v3735_v30 = vrot.slane %v3733_v37, 5  ;;  %v3713_v16 = vrot.slane %v3712_v0, 4  ;;  %v3723_v23 = vrot.slane %v3722_v4, 4  ;;  %v7588_v37 = vld [vmem:[%s6584_s30 + $0x68] sm:$0x1] }
  0xec   : > { %5906 = vmatmul.mubr.msk.bf16.gmra.mrb[20].mxu0 %vm660_vm4, %v6330_v47  ;;  %v3703_v47 = vrot.slane %v3701_v51, 5  ;;  %v6332_v51 = vld [vmem:[%s6584_s30 + $0xb4] sm:$0xff]   ;;  %v7569_v56 = vrot.slane %v3739_v43, 5  ;;  %v3745_v59 = vrot.slane %v3743_v48, 4  ;;  %v3670_v2 = vsel %vm6629_vm3, %v7549_v12, %v7507_v19  ;;  %8441 = vst [vmem:[#allocation16_spill] sm:$0xff] %v7588_v37 }
  0xed   : > { %5754 = vmatmul.mubr.msk.bf16.gmra.mrb[4].mxu1 %vm660_vm4, %v8439_v20  ;;  %5909 = vmatprep.mubr.msk.bf16.mxu0 %vm660_vm4, %v6331_v55  ;;  %v1180_v20 = vld [vmem:[%s6584_s30 + $0xa8] sm:$0xe]  ;;  %v6386_v55 = vld [vmem:[%s6584_s30 + $0xac] sm:$0xf]  ;;  %v3680_v1 = vsel %vm6629_vm3, %v3675_v17, %v7539_v36  ;;  %v7581_v46 = vsel %vm6859_vm7, %v5059_v44, %v1303_v5  ;;  %v7585_v4 = vsel %vm6859_vm7, %v1305_v15, %v1306_v32  ;;  %v1181_v5 = vld [vmem:[%s6584_s30 + $0xb4] sm:$0xe] }
  0xee   : > { %5757 = vmatprep.mubr.msk.bf16.mxu1 %vm660_vm4, %v8440_v24  ;;  %v1317_v21 = vrot.slane %v6386_v55, 5  ;;  %v3694_v0 = vsel %vm6629_vm3, %v3689_v62, %v7518_v39  ;;  %v7595_v12 = vsel %vm6859_vm7, %v5060_v60, %v1310_v11  ;;  %v7599_v19 = vsel %vm6859_vm7, %v1312_v45, %v1313_v26  ;;  %v5393_v36 = vld [vmem:[%s6584_s30 + $0x6c] sm:$0xf]  ;;  %v6387_v48 = vld [vmem:[%s6584_s30 + $0xb0] sm:$0x1] }
  0xef   : > { %8442 = vst [vmem:[#allocation17_spill] sm:$0xff] %v7599_v19  ;;  %v5061_v44 = vrot.slane %v1180_v20, 9  ;;  %v3704_v32 = vsel %vm6629_vm3, %v3699_v49, %v3703_v47  ;;  %v1320_v17 = vrot.slane %v6387_v48, 5  ;;  %v3736_v39 = vor.u32 %v3735_v30, %v3732_v40  ;;  %v7623_v62 = vld [vmem:[%s6584_s30 + $0x70] sm:$0xf] }
  0xf0   : > { %v1319_v43 = vrot.slane %v1317_v21, 4  ;;  %v3718_v11 = vsel %vm6629_vm3, %v3713_v16, %v7532_v29  ;;  %v3728_v15 = vsel %vm6629_vm3, %v3723_v23, %v3727_v14  ;;  %v3746_v60 = vor.u32 %v3745_v59, %v7569_v56  ;;  %8444 = vst [vmem:[#allocation18_spill] sm:$0xff] %v7623_v62  ;;  %v5396_v20 = vld [vmem:[%s6584_s30 + $0x78] sm:$0xf]  ;;  %v7642_v55 = vld [vmem:[%s6584_s30 + $0x7c] sm:$0xf] }
  0xf1   : > { %v3749_v47 = vshll.u32 %v7588_v37, 16  ;;  %v8443_v24 = vcombine.low %v7307_v3, %v7311_v6  ;;  %v5062_v30 = vrot.slane %v1181_v5, 9  ;;  %v1324_v29 = vrot.slane %v7022_v25, 5  ;;  %v6334_v3 = vld [vmem:[%s6584_s30 + $0xcc] sm:$0xff]   ;;  %8446 = vst [vmem:[#allocation19_spill] sm:$0xff] %v7642_v55 }
  0xf2   : > { %v3754_v49 = vshrl.u32 %v5393_v36, 16  ;;  %v8445_v45 = vcombine.low %v7333_v34, %v7341_v7  ;;  %v7630_v6 = vcombine.low %v3670_v2, %v3680_v1  ;;  %v7632_v26 = vcombine.low %v3694_v0, %v3704_v32  ;;  %v5399_v23 = vld [vmem:[%s6584_s30 + $0x84] sm:$0xf]  ;;  %v7655_v59 = vld [vmem:[%s6584_s30 + $0x88] sm:$0xf] }
  0xf3   : > { %v7638_v25 = vsel %vm6859_vm7, %v5061_v44, %v1317_v21  ;;  %v7644_v34 = vcombine.low %v3718_v11, %v3728_v15  ;;  %v7648_v7 = vsel %vm6859_vm7, %v1319_v43, %v1320_v17  ;;  %8447 = vst [vmem:[#allocation20_spill] sm:$0xff] %v7655_v59  ;;  %v7659_v21 = vrot.slane %v3749_v47, 5  ;;  %v5402_v0 = vld [vmem:[%s6584_s30 + $0x90] sm:$0xf]  ;;  %v7671_v48 = vld [vmem:[%s6584_s30 + $0x94] sm:$0xf] }
  0xf4   : > { %5910 = vmatmul.mubr.msk.bf16.gmra.mrb[24].mxu0 %vm660_vm4, %v6332_v51  ;;  %v7650_v51 = vrot.slane %v3736_v39, 4  ;;  %v3757_v2 = vshll.u32 %v5393_v36, 16  ;;  %v3763_v1 = vshll.u32 %v7623_v62, 16  ;;  %v7665_v44 = vsel %vm6859_vm7, %v5062_v30, %v1324_v29  ;;  %8448 = vst [vmem:[#allocation21_spill] sm:$0xff] %v7671_v48  ;;  %v7679_v30 = vld [vmem:[%s6584_s30 + $0x74] sm:$0x1] }
  0xf5   : > { %5758 = vmatmul.mubr.msk.bf16.gmra.mrb[8].mxu1 %vm660_vm4, %v8443_v24  ;;  %5913 = vmatprep.mubr.msk.bf16.mxu0 %vm660_vm4, %v6333_v57  ;;  %v7657_v57 = vrot.slane %v3746_v60, 4  ;;  %v7667_v5 = vrot.slane %v1324_v29, 4  ;;  %v3756_v32 = vrot.slane %v3754_v49, 4  ;;  %v3767_v43 = vshrl.u32 %v7623_v62, 16  ;;  %v7696_v16 = vld [vmem:[%s6584_s30 + $0x80] sm:$0x1] }
  0xf6   : > { %5761 = vmatprep.mubr.msk.bf16.mxu1 %vm660_vm4, %v8445_v45  ;;  %v3778_v17 = vshrl.u32 %v5396_v20, 16  ;;  %v3781_v39 = vshll.u32 %v5396_v20, 16  ;;  %v3787_v11 = vshll.u32 %v7642_v55, 16  ;;  %v3791_v36 = vshrl.u32 %v7642_v55, 16 }
  0xf7   : > { %v3802_v15 = vshrl.u32 %v5399_v23, 16  ;;  %v3805_v60 = vshll.u32 %v5399_v23, 16  ;;  %v3811_v47 = vshll.u32 %v7655_v59, 16  ;;  %v3815_v24 = vshrl.u32 %v7655_v59, 16  ;;  %v5405_v59 = vld [vmem:[%s6584_s30 + $0x9c] sm:$0xf] }
  0xf8   : > { %v3826_v29 = vshrl.u32 %v5402_v0, 16  ;;  %v3829_v49 = vshll.u32 %v5402_v0, 16  ;;  %v3835_v45 = vshll.u32 %v7671_v48, 16  ;;  %v3839_v20 = vshrl.u32 %v7671_v48, 16 }
  0xf9   : > { %v8449_v14 = vcombine.low %v7361_v28, %v7378_v8  ;;  %v3759_v23 = vrot.slane %v3757_v2, 5  ;;  %v7693_v0 = vrot.slane %v3763_v1, 5  ;;  %v3769_v40 = vrot.slane %v3767_v43, 4 }
  0xfa   : > { %v8450_v48 = vcombine.low %v7401_v58, %v7405_v18  ;;  %v3780_v28 = vrot.slane %v3778_v17, 4  ;;  %v3783_v8 = vrot.slane %v3781_v39, 5  ;;  %v3804_v2 = vrot.slane %v3802_v15, 4 }
  0xfb   : > { %v3807_v1 = vrot.slane %v3805_v60, 5  ;;  %v7708_v43 = vrot.slane %v3811_v47, 5  ;;  %v3817_v55 = vrot.slane %v3815_v24, 4  ;;  %v3828_v62 = vrot.slane %v3826_v29, 4 }
  0xfc   : > { %5914 = vmatmul.mubr.msk.bf16.gmra.mrb[28].mxu0 %vm660_vm4, %v6334_v3  ;;  %v7706_v3 = vld [vmem:[%s6584_s30 + $0x8c] sm:$0x1]  ;;  %v3831_v37 = vrot.slane %v3829_v49, 5  ;;  %v7710_v58 = vrot.slane %v3835_v45, 5  ;;  %v3841_v18 = vrot.slane %v3839_v20, 4  ;;  %v3760_v17 = vor.u32 %v3759_v23, %v3756_v32 }
  0xfd   : > { %5762 = vmatmul.mubr.msk.bf16.gmra.mrb[12].mxu1 %vm660_vm4, %v8449_v14  ;;  %5919 = vmatprep.mubr.msk.bf16.mxu0 %vm660_vm4, %v7465_v53  ;;  %v7702_v53 = vrot.slane %v3787_v11, 5  ;;  %v3793_v14 = vrot.slane %v3791_v36, 4  ;;  %v3773_v39 = vshll.u32 %v7679_v30, 16  ;;  %v7717_v11 = vld [vmem:[%s6584_s30 + $0x98] sm:$0x1]  ;;  %v3850_v36 = vshrl.u32 %v5405_v59, 16 }
  0xfe   : > { %5765 = vmatprep.mubr.msk.bf16.mxu1 %vm660_vm4, %v8450_v48  ;;  %v7713_v48 = vld [vmem:[%s6584_s30 + $0xa0] sm:$0xf]  ;;  %v3853_v19 = vshll.u32 %v5405_v59, 16  ;;  %v3770_v15 = vor.u32 %v3769_v40, %v7693_v0  ;;  %v3784_v60 = vor.u32 %v3783_v8, %v3780_v28  ;;  %v3797_v24 = vshll.u32 %v7696_v16, 16 }
  0xff   : > { %v3794_v47 = vor.u32 %v3793_v14, %v7702_v53  ;;  %v3808_v29 = vor.u32 %v3807_v1, %v3804_v2  ;;  %v3821_v49 = vshll.u32 %v7706_v3, 16  ;;  %v3859_v45 = vshll.u32 %v7713_v48, 16 }
 0x100   : > { %v3863_v32 = vshrl.u32 %v7713_v48, 16  ;;  %v3818_v20 = vor.u32 %v3817_v55, %v7708_v43  ;;  %v3832_v59 = vor.u32 %v3831_v37, %v3828_v62  ;;  %v3842_v40 = vor.u32 %v3841_v18, %v7710_v58  ;;  %v5408_v55 = vld [vmem:[%s6584_s30 + $0xa8] sm:$0xf] }
 0x101   : > { %v3845_v23 = vshll.u32 %v7717_v11, 16  ;;  %v8451_v28 = vcombine.low %v7409_v63, %v7417_v27  ;;  %v3761_v8 = vrot.slane %v3760_v17, 4  ;;  %v3775_v14 = vrot.slane %v3773_v39, 5 }
 0x102   : > { %v3852_v2 = vrot.slane %v3850_v36, 4  ;;  %v3855_v1 = vrot.slane %v3853_v19, 5  ;;  %v3771_v37 = vrot.slane %v3770_v15, 4  ;;  %v3785_v63 = vrot.slane %v3784_v60, 4  ;;  %v7752_v60 = vld [vmem:[%s6584_s30 + $0xac] sm:$0xf] }
 0x103   : > { %v3795_v27 = vrot.slane %v3794_v47, 4  ;;  %v3799_v62 = vrot.slane %v3797_v24, 5  ;;  %v3823_v18 = vrot.slane %v3821_v49, 5  ;;  %v7742_v17 = vrot.slane %v3859_v45, 5 }
 0x104   : > { %5920 = vmatmul.mubr.msk.bf16.vlgmr.msra.gmra.mrb[0].mxu0 %vm660_vm4, %v7467_v54  ;;  %v8452_v54 = vcombine.low %v7428_v13, %v7441_v10  ;;  %v3865_v19 = vrot.slane %v3863_v32, 4  ;;  %v3819_v39 = vrot.slane %v3818_v20, 4  ;;  %v3833_v36 = vrot.slane %v3832_v59, 4 }
 0x105   : > { %5766 = vmatmul.mubr.msk.bf16.gmra.mrb[16].mxu1 %vm660_vm4, %v8451_v28  ;;  %5952 = vmatpush3.bf16.msra.mxu0 %v7454_v42  ;;  %v3809_v42 = vrot.slane %v3808_v29, 4  ;;  %v3843_v13 = vrot.slane %v3842_v40, 4  ;;  %v3847_v10 = vrot.slane %v3845_v23, 5  ;;  %v7745_v28 = vld [vmem:[%s6584_s30 + $0xa4] sm:$0x1]  ;;  %v3856_v15 = vor.u32 %v3855_v1, %v3852_v2 }
 0x106   : > { %5769 = vmatprep.mubr.msk.bf16.mxu1 %vm660_vm4, %v8452_v54  ;;  %5923 = vmatprep.mubr.msk.bf16.mxu0 %vm660_vm4, %v7536_v35  ;;  %v3752_v35 = vsel %vm6629_vm3, %v7657_v57, %v7659_v21  ;;  %v3874_v47 = vshrl.u32 %v5408_v55, 16  ;;  %v3877_v24 = vshll.u32 %v5408_v55, 16  ;;  %v8453_v29 = vrot.slane %v7028_v52, 5  ;;  %v7786_v40 = vld [vmem:[%s6584_s30 + $0xb0] sm:$0x1] }
 0x107   : > { %v3766_v45 = vsel %vm6629_vm3, %v3761_v8, %v7693_v0  ;;  %v3776_v57 = vsel %vm6629_vm3, %v3771_v37, %v3775_v14  ;;  %v3790_v21 = vsel %vm6629_vm3, %v3785_v63, %v7702_v53  ;;  %v3800_v32 = vsel %vm6629_vm3, %v3795_v27, %v3799_v62  ;;  %v7797_v2 = vld [vmem:[%s6584_s30 + $0xb4] sm:$0xf]  ;;  %v5457_v63 = vld [vmem:[%s6584_s30 + $0x48] sm:$0xe] }
 0x108   : > { %v7759_v49 = vsel %vm6859_vm7, %v7667_v5, %v8453_v29  ;;  %v3814_v52 = vsel %vm6629_vm3, %v3809_v42, %v7708_v43  ;;  %v3866_v5 = vor.u32 %v3865_v19, %v7742_v17  ;;  %v3869_v20 = vshll.u32 %v7745_v28, 16 }
 0x109   : > { %v3824_v0 = vsel %vm6629_vm3, %v3819_v39, %v3823_v18  ;;  %v3838_v53 = vsel %vm6629_vm3, %v3833_v36, %v7710_v58  ;;  %v3848_v59 = vsel %vm6629_vm3, %v3843_v13, %v3847_v10  ;;  %v3883_v43 = vshll.u32 %v7752_v60, 16 }
 0x10a   : > { %v8454_v23 = vcombine.low %v7475_v38, %v7492_v50  ;;  %v3876_v8 = vrot.slane %v3874_v47, 4  ;;  %v3879_v58 = vrot.slane %v3877_v24, 5  ;;  %v3887_v14 = vshrl.u32 %v7752_v60, 16  ;;  %v5459_v47 = vld [vmem:[%s6584_s30 + $0x60] sm:$0xe] }
 0x10b   : > { %v8455_v1 = vcombine.low %v7581_v46, %v7585_v4  ;;  %v5078_v38 = vcombine.low %v7638_v25, %v7648_v7  ;;  %v8456_v50 = vsel %vm6629_vm3, %v7650_v51, %v7569_v56  ;;  %v5079_v54 = vcombine.low %v7665_v44, %v7759_v49  ;;  %v5458_v25 = vld [vmem:[%s6584_s30 + $0x54] sm:$0xe]  ;;  %v7826_v51 = vld [vmem:[%s6584_s30 + $0xb8] sm:$0xf] }
 0x10c   : > { %5924 = vmatmul.mubr.msk.bf16.gmra.mrb[4].mxu0 %vm660_vm4, %v7630_v6  ;;  %v3857_v6 = vrot.slane %v3856_v15, 4  ;;  %v7812_v37 = vcombine.low %v3766_v45, %v3776_v57  ;;  %v7815_v27 = vcombine.low %v3790_v21, %v3800_v32  ;;  %v3867_v46 = vrot.slane %v3866_v5, 4  ;;  %v5460_v32 = vld [vmem:[%s6584_s30 + $0x6c] sm:$0xe]  ;;  %v8463_v49 = vld [vmem:[#allocation10_spill] sm:$0xff] }
 0x10d   : > { %5770 = vmatmul.mubr.msk.bf16.gmra.mrb[20].mxu1 %vm660_vm4, %v8454_v23  ;;  %5927 = vmatprep.mubr.msk.bf16.mxu0 %vm660_vm4, %v7632_v26  ;;  %v5427_v26 = vcombine.low %v8456_v50, %v3752_v35  ;;  %v3871_v4 = vrot.slane %v3869_v20, 5  ;;  %v3893_v62 = vshll.u32 %v7786_v40, 16  ;;  %v7819_v7 = vcombine.low %v3814_v52, %v3824_v0  ;;  %v8457_v52 = vld [vmem:[#allocation17_spill] sm:$0xff] }
 0x10e   : > { %5773 = vmatprep.mubr.msk.bf16.mxu1 %vm660_vm4, %v8455_v1  ;;  %v7821_v55 = vcombine.low %v3838_v53, %v3848_v59  ;;  %v7823_v56 = vrot.slane %v3883_v43, 5  ;;  %v3898_v42 = vshrl.u32 %v7797_v2, 16  ;;  %v3862_v18 = vsel %vm6629_vm3, %v3857_v6, %v7742_v17  ;;  %v8459_v53 = vld [vmem:[#allocation15_spill] sm:$0xff]  ;;  %v8460_v43 = vld [vmem:[#allocation16_spill] sm:$0xff] }
 0x10f   : > { %v3880_v19 = vor.u32 %v3879_v58, %v3876_v8  ;;  %v3889_v39 = vrot.slane %v3887_v14, 4  ;;  %v3901_v36 = vshll.u32 %v7797_v2, 16  ;;  %v5473_v13 = vrot.slane %v5457_v63, 9  ;;  %v7872_v6 = vld [vmem:[%s6584_s30 + $0xbc] sm:$0x1]  ;;  %v8461_v2 = vld [vmem:[#allocation18_spill] sm:$0xff] }
 0x110   : > { %v4357_v10 = vrot.slane %v7462_v41, 5  ;;  %v4360_v35 = vrot.slane %v7516_v61, 5  ;;  %v5474_v15 = vrot.slane %v5458_v25, 9  ;;  %v3872_v24 = vsel %vm6629_vm3, %v3867_v46, %v3871_v4  ;;  %v7893_v25 = vld [vmem:[%s6584_s30 + $0xc4] sm:$0xf] }
 0x111   : > { %v7838_v29 = vrot.slane %v3893_v62, 5  ;;  %v3907_v45 = vshll.u32 %v7826_v51, 16  ;;  %v4364_v17 = vrot.slane %v7480_v33, 5  ;;  %v7844_v57 = vrot.slane %v3898_v42, 4 }
 0x112   : > { %v7848_v41 = vsel %vm6859_vm7, %v5473_v13, %v4357_v10  ;;  %v4359_v61 = vrot.slane %v4357_v10, 4  ;;  %v4367_v21 = vrot.slane %v7526_v9, 5  ;;  %v8458_v5 = vcombine.low %v7595_v12, %v8457_v52  ;;  %v5462_v52 = vld [vmem:[%s6584_s30 + $0x84] sm:$0xe] }
 0x113   : > { %v7857_v33 = vrot.slane %v3880_v19, 4  ;;  %v4366_v20 = vrot.slane %v4364_v17, 4  ;;  %v5475_v0 = vrot.slane %v5459_v47, 9  ;;  %v3890_v9 = vor.u32 %v3889_v39, %v7823_v56  ;;  %v6335_v39 = vld [vmem:[%s6584_s30 + $0xc] sm:$0xff]  }
 0x114   : > { %5928 = vmatmul.mubr.msk.bf16.gmra.mrb[8].mxu0 %vm660_vm4, %v7644_v34  ;;  %v7861_v34 = vsel %vm6859_vm7, %v5474_v15, %v4364_v17  ;;  %v7867_v12 = vsel %vm6859_vm7, %v4359_v61, %v4360_v35  ;;  %v4371_v59 = vrot.slane %v8459_v53, 5  ;;  %v4374_v23 = vrot.slane %v8460_v43, 5  ;;  %v5461_v35 = vld [vmem:[%s6584_s30 + $0x78] sm:$0xe] }
 0x115   : > { %5774 = vmatmul.mubr.msk.bf16.gmra.mrb[24].mxu1 %vm660_vm4, %v8458_v5  ;;  %5931 = vmatprep.mubr.msk.bf16.mxu0 %vm660_vm4, %v5427_v26  ;;  %v5490_v8 = vcombine.low %v7848_v41, %v7867_v12  ;;  %v7878_v58 = vsel %vm6859_vm7, %v4366_v20, %v4367_v21  ;;  %v5476_v14 = vrot.slane %v5460_v32, 9  ;;  %v4378_v1 = vrot.slane %v8461_v2, 5 }
 0x116   : > { %5777 = vmatprep.mubr.msk.bf16.mxu1 %vm660_vm4, %v5078_v38  ;;  %v5414_v38 = vld [vmem:[%s6584_s30 + $0xc0] sm:$0xf]  ;;  %v5491_v50 = vcombine.low %v7861_v34, %v7878_v58  ;;  %v7886_v26 = vsel %vm6859_vm7, %v5475_v0, %v4371_v59  ;;  %v4373_v63 = vrot.slane %v4371_v59, 4  ;;  %v4381_v46 = vrot.slane %v7679_v30, 5  ;;  %v6398_v58 = vld [vmem:[%s6584_s30 + $0x8c] sm:$0x1] }
 0x117   : > { %v7889_v4 = vcombine.low %v3862_v18, %v3872_v24  ;;  %v3911_v62 = vshrl.u32 %v7826_v51, 16  ;;  %v7897_v42 = vsel %vm6859_vm7, %v5476_v14, %v4378_v1  ;;  %v4380_v19 = vrot.slane %v4378_v1, 4  ;;  %v5417_v1 = vld [vmem:[%s6584_s30 + $0xcc] sm:$0xf] }
 0x118   : > { %v7900_v13 = vrot.slane %v3901_v36, 5  ;;  %v7902_v10 = vrot.slane %v3907_v45, 5  ;;  %v3917_v30 = vshll.u32 %v7872_v6, 16  ;;  %v7907_v18 = vsel %vm6859_vm7, %v4373_v63, %v4374_v23  ;;  %v5188_v45 = vld [vmem:[%s6584_s30 + $0x78] sm:$0xf] }
 0x119   : > { %v3886_v15 = vsel %vm6629_vm3, %v7857_v33, %v7823_v56  ;;  %v3922_v47 = vshrl.u32 %v5414_v38, 16  ;;  %v5492_v24 = vcombine.low %v7886_v26, %v7907_v18  ;;  %v7918_v36 = vsel %vm6859_vm7, %v4380_v19, %v4381_v46  ;;  %v8465_v46 = vld [vmem:[#allocation20_spill] sm:$0xff]  ;;  %v6336_v19 = vld [vmem:[%s6584_s30 + $0x18] sm:$0xff]  }
 0x11a   : > { %v3891_v17 = vrot.slane %v3890_v9, 4  ;;  %v3925_v61 = vshll.u32 %v5414_v38, 16  ;;  %v3931_v21 = vshll.u32 %v7893_v25, 16  ;;  %v5493_v32 = vcombine.low %v7897_v42, %v7918_v36  ;;  %v6401_v36 = vld [vmem:[%s6584_s30 + $0xac] sm:$0xf] }
 0x11b   : > { %v3913_v5 = vrot.slane %v3911_v62, 4  ;;  %v5477_v20 = vrot.slane %v5461_v35, 9  ;;  %v4388_v9 = vrot.slane %v7696_v16, 5  ;;  %v3935_v53 = vshrl.u32 %v7893_v25, 16 }
 0x11c   : > { %5932 = vmatmul.mubr.msk.bf16.gmra.mrb[12].mxu0 %vm660_vm4, %v7812_v37  ;;  %v8462_v37 = vld [vmem:[#allocation19_spill] sm:$0xff]  ;;  %v2247_v59 = vshrl.u32 %v5188_v45, 16  ;;  %v2250_v44 = vshll.u32 %v5188_v45, 16  ;;  %v5478_v16 = vrot.slane %v5462_v52, 9  ;;  %v3927_v2 = vrot.slane %v3925_v61, 5  ;;  %v6337_v52 = vld [vmem:[%s6584_s30 + $0x24] sm:$0xff]  }
 0x11d   : > { %5778 = vmatmul.mubr.msk.bf16.gmra.mrb[28].mxu1 %vm660_vm4, %v5079_v54  ;;  %5935 = vmatprep.mubr.msk.bf16.mxu0 %vm660_vm4, %v7815_v27  ;;  %v4385_v0 = vrot.slane %v8462_v37, 5  ;;  %v8464_v54 = vld [vmem:[#allocation11_spill] sm:$0xff]  ;;  %v3924_v27 = vrot.slane %v3922_v47, 4  ;;  %v4392_v62 = vrot.slane %v8465_v46, 5  ;;  %v7950_v35 = vrot.slane %v3931_v21, 5 }
 0x11e   : > { %5783 = vmatprep.mubr.msk.bf16.mxu1 %vm660_vm4, %v6335_v39  ;;  %v2269_v43 = vsel %vm6629_vm3, %v8464_v54, %v8463_v49  ;;  %v2249_v38 = vrot.slane %v2247_v59, 4  ;;  %v2252_v63 = vrot.slane %v2250_v44, 5  ;;  %v3904_v39 = vor.u32 %v7900_v13, %v7844_v57  ;;  %v7953_v47 = vld [vmem:[%s6584_s30 + $0xd0] sm:$0xf]  ;;  %v7969_v59 = vld [vmem:[%s6584_s30 + $0xc8] sm:$0x1] }
 0x11f   : > { %v7943_v23 = vsel %vm6859_vm7, %v5477_v20, %v4385_v0  ;;  %v4387_v14 = vrot.slane %v4385_v0, 4  ;;  %v4395_v61 = vrot.slane %v7706_v3, 5  ;;  %v3896_v20 = vsel %vm6629_vm3, %v3891_v17, %v7838_v29  ;;  %v5463_v13 = vld [vmem:[%s6584_s30 + $0x90] sm:$0xe] }
 0x120   : > { %v3937_v37 = vrot.slane %v3935_v53, 4  ;;  %v2253_v57 = vor.u32 %v2252_v63, %v2249_v38  ;;  %v3914_v21 = vor.u32 %v3913_v5, %v7902_v10  ;;  %v3946_v44 = vshrl.u32 %v5417_v1, 16  ;;  %v8468_v38 = vld [vmem:[#allocation9_spill] sm:$0xff] }
 0x121   : > { %v7957_v45 = vsel %vm6859_vm7, %v4387_v14, %v4388_v9  ;;  %v7973_v9 = vsel %vm6859_vm7, %v5478_v16, %v4392_v62  ;;  %v4394_v3 = vrot.slane %v4392_v62, 4  ;;  %v3928_v29 = vor.u32 %v3927_v2, %v3924_v27  ;;  %v8467_v16 = vld [vmem:[#allocation8_spill] sm:$0xff] }
 0x122   : > { %v5494_v0 = vcombine.low %v7943_v23, %v7957_v45  ;;  %v3949_v17 = vshll.u32 %v5417_v1, 16  ;;  %v3955_v53 = vshll.u32 %v7953_v47, 16  ;;  %v2254_v49 = vrot.slane %v2253_v57, 4  ;;  %v8007_v57 = vld [vmem:[%s6584_s30 + $0xd4] sm:$0x1] }
 0x123   : > { %v3959_v5 = vshrl.u32 %v7953_v47, 16  ;;  %v7984_v54 = vsel %vm6859_vm7, %v4394_v3, %v4395_v61  ;;  %v5479_v14 = vrot.slane %v5463_v13, 9  ;;  %v3938_v2 = vor.u32 %v3937_v37, %v7950_v35  ;;  %v6402_v45 = vld [vmem:[%s6584_s30 + $0xb8] sm:$0xf] }
 0x124   : > { %5936 = vmatmul.mubr.msk.bf16.gmra.mrb[16].mxu0 %vm660_vm4, %v7819_v7  ;;  %v8466_v7 = vld [vmem:[#allocation21_spill] sm:$0xff]  ;;  %v3941_v1 = vshll.u32 %v7969_v59, 16  ;;  %v5495_v63 = vcombine.low %v7973_v9, %v7984_v54  ;;  %v5433_v46 = vcombine.low %v3886_v15, %v3896_v20  ;;  %v3905_v62 = vrot.slane %v3904_v39, 4  ;;  %v5464_v20 = vld [vmem:[%s6584_s30 + $0x9c] sm:$0xe] }
 0x125   : > { %5784 = vmatmul.mubr.msk.bf16.vlgmr.msra.gmra.mrb[0].mxu1 %vm660_vm4, %v6336_v19  ;;  %5939 = vmatprep.mubr.msk.bf16.mxu0 %vm660_vm4, %v7821_v55  ;;  %v4399_v27 = vrot.slane %v8466_v7, 5  ;;  %v2259_v55 = vsel %vm6629_vm3, %v2254_v49, %v8468_v38  ;;  %v3919_v19 = vrot.slane %v3917_v30, 5  ;;  %v3915_v37 = vrot.slane %v3914_v21, 4  ;;  %v6339_v30 = vld [vmem:[%s6584_s30 + $0x3c] sm:$0xff]  }
 0x126   : > { %5986 = vmatpush3.bf16.msra.mxu1 %v8467_v16  ;;  %5787 = vmatprep.mubr.msk.bf16.mxu1 %vm660_vm4, %v6337_v52  ;;  %v8003_v61 = vcombine.low %v2259_v55, %v2269_v43  ;;  %v6338_v52 = vld [vmem:[%s6584_s30 + $0x30] sm:$0xff]   ;;  %v4402_v49 = vrot.slane %v7717_v11, 5  ;;  %v3948_v56 = vrot.slane %v3946_v44, 4  ;;  %v3951_v33 = vrot.slane %v3949_v17, 5  ;;  %v6388_v38 = vld [vmem:[%s6584_s30 + $0x1c] sm:$0xf] }
 0x127   : > { %v8011_v13 = vsel %vm6859_vm7, %v5479_v14, %v4399_v27  ;;  %v4401_v3 = vrot.slane %v4399_v27, 4  ;;  %v8014_v15 = vrot.slane %v3955_v53, 5  ;;  %v3961_v39 = vrot.slane %v3959_v5, 4 }
 0x128   : > { %v3929_v43 = vrot.slane %v3928_v29, 4  ;;  %v3939_v7 = vrot.slane %v3938_v2, 4  ;;  %v3943_v21 = vrot.slane %v3941_v1, 5  ;;  %v3910_v11 = vsel %vm6629_vm3, %v3905_v62, %v7902_v10  ;;  %v5465_v62 = vld [vmem:[%s6584_s30 + $0xa8] sm:$0xe] }
 0x129   : > { %v8020_v16 = vsel %vm6859_vm7, %v4401_v3, %v4402_v49  ;;  %v3920_v44 = vsel %vm6629_vm3, %v3915_v37, %v3919_v19  ;;  %v3965_v29 = vshll.u32 %v8007_v57, 16  ;;  %v5480_v17 = vrot.slane %v5464_v20, 9  ;;  %v6340_v37 = vld [vmem:[%s6584_s30 + $0x48] sm:$0xff]   ;;  %v6389_v20 = vld [vmem:[%s6584_s30 + $0x20] sm:$0x1] }
 0x12a   : > { %v5496_v14 = vcombine.low %v8011_v13, %v8020_v16  ;;  %v3952_v53 = vor.u32 %v3951_v33, %v3948_v56  ;;  %v3962_v5 = vor.u32 %v3961_v39, %v8014_v15  ;;  %v4406_v27 = vrot.slane %v7713_v48, 5  ;;  %v6341_v33 = vld [vmem:[%s6584_s30 + $0x54] sm:$0xff]  }
 0x12b   : > { %v4409_v10 = vrot.slane %v7745_v28, 5  ;;  %v3934_v2 = vsel %vm6629_vm3, %v3929_v43, %v7950_v35  ;;  %v3944_v1 = vsel %vm6629_vm3, %v3939_v7, %v3943_v21  ;;  %v4329_v55 = vrot.slane %v6388_v38, 5  ;;  %v5455_v38 = vld [vmem:[%s6584_s30 + $0x30] sm:$0xe] }
 0x12c   : > { %5940 = vmatmul.mubr.msk.bf16.gmra.mrb[20].mxu0 %vm660_vm4, %v7889_v4  ;;  %v5453_v4 = vld [vmem:[%s6584_s30 + $0x18] sm:$0xe]  ;;  %v4408_v48 = vrot.slane %v4406_v27, 4  ;;  %v5434_v28 = vcombine.low %v3910_v11, %v3920_v44  ;;  %v3967_v19 = vrot.slane %v3965_v29, 5  ;;  %v5435_v3 = vcombine.low %v3934_v2, %v3944_v1  ;;  %v5454_v11 = vld [vmem:[%s6584_s30 + $0x24] sm:$0xe] }
 0x12d   : > { %5788 = vmatmul.mubr.msk.bf16.gmra.mrb[4].mxu1 %vm660_vm4, %v6338_v52  ;;  %5943 = vmatprep.mubr.msk.bf16.mxu0 %vm660_vm4, %v5433_v46  ;;  %v8047_v46 = vsel %vm6859_vm7, %v5480_v17, %v4406_v27  ;;  %v5469_v52 = vrot.slane %v5453_v4, 9  ;;  %v3953_v35 = vrot.slane %v3952_v53, 4  ;;  %v3963_v49 = vrot.slane %v3962_v5, 4  ;;  %v6390_v44 = vld [vmem:[%s6584_s30 + $0x28] sm:$0xf] }
 0x12e   : > { %5791 = vmatprep.mubr.msk.bf16.mxu1 %vm660_vm4, %v6339_v30  ;;  %v8053_v56 = vsel %vm6859_vm7, %v4408_v48, %v4409_v10  ;;  %v4331_v39 = vrot.slane %v4329_v55, 4  ;;  %v4332_v30 = vrot.slane %v6389_v20, 5  ;;  %v5481_v7 = vrot.slane %v5465_v62, 9  ;;  %v6391_v10 = vld [vmem:[%s6584_s30 + $0x34] sm:$0xf] }
 0x12f   : > { %v5497_v43 = vcombine.low %v8047_v46, %v8053_v56  ;;  %v4413_v21 = vrot.slane %v7752_v60, 5  ;;  %v4336_v29 = vrot.slane %v6390_v44, 5  ;;  %v4416_v17 = vrot.slane %v7786_v40, 5  ;;  %v5466_v2 = vld [vmem:[%s6584_s30 + $0xb4] sm:$0xe] }
 0x130   : > { %v3958_v53 = vsel %vm6629_vm3, %v3953_v35, %v8014_v15  ;;  %v3968_v60 = vsel %vm6629_vm3, %v3963_v49, %v3967_v19  ;;  %v4330_v40 = vsel %vm6859_vm7, %v5469_v52, %v4329_v55  ;;  %v4333_v27 = vsel %vm6859_vm7, %v4331_v39, %v4332_v30  ;;  %v6392_v19 = vld [vmem:[%s6584_s30 + $0x2c] sm:$0x1]  ;;  %v6342_v52 = vld [vmem:[%s6584_s30 + $0x60] sm:$0xff]   ;;  %v6406_v46 = vld [vmem:[%s6584_s30 + $0xc8] sm:$0x1] }
 0x131   : > { %v8073_v5 = vsel %vm6859_vm7, %v5481_v7, %v4413_v21  ;;  %v4415_v4 = vrot.slane %v4413_v21, 4  ;;  %v4343_v15 = vrot.slane %v6391_v10, 5  ;;  %v5470_v1 = vrot.slane %v5454_v11, 9  ;;  %v6343_v39 = vld [vmem:[%s6584_s30 + $0x6c] sm:$0xff]   ;;  %v8469_v7 = vld [vmem:[#allocation12_spill] sm:$0xff] }
 0x132   : > { %v5436_v62 = vcombine.low %v3958_v53, %v3968_v60  ;;  %v5482_v35 = vrot.slane %v5466_v2, 9  ;;  %v4420_v49 = vrot.slane %v7826_v51, 5  ;;  %v5471_v20 = vrot.slane %v5455_v38, 9  ;;  %v8470_v11 = vld [vmem:[#allocation13_spill] sm:$0xff]  ;;  %v5467_v60 = vld [vmem:[%s6584_s30 + $0xc0] sm:$0xe] }
 0x133   : > { %v8085_v48 = vsel %vm6859_vm7, %v4415_v4, %v4416_v17  ;;  %v4345_v30 = vrot.slane %v4343_v15, 4  ;;  %v4346_v21 = vrot.slane %v8469_v7, 5  ;;  %v4350_v44 = vrot.slane %v8470_v11, 5  ;;  %v5456_v4 = vld [vmem:[%s6584_s30 + $0x3c] sm:$0xe] }
 0x134   : > { %5944 = vmatmul.mubr.msk.bf16.gmra.mrb[24].mxu0 %vm660_vm4, %v5434_v28  ;;  %v4338_v28 = vrot.slane %v4336_v29, 4  ;;  %v5498_v55 = vcombine.low %v8073_v5, %v8085_v48  ;;  %v8098_v17 = vsel %vm6859_vm7, %v5482_v35, %v4420_v49  ;;  %v4422_v53 = vrot.slane %v4420_v49, 4  ;;  %v5185_v35 = vld [vmem:[%s6584_s30 + $0x6c] sm:$0xf]  ;;  %v6393_v11 = vld [vmem:[%s6584_s30 + $0x70] sm:$0xf] }
 0x135   : > { %5792 = vmatmul.mubr.msk.bf16.gmra.mrb[8].mxu1 %vm660_vm4, %v6340_v37  ;;  %5947 = vmatprep.mubr.msk.bf16.mxu0 %vm660_vm4, %v5435_v3  ;;  %v4339_v37 = vrot.slane %v6392_v19, 5  ;;  %v5486_v3 = vcombine.low %v4330_v40, %v4333_v27  ;;  %v4337_v51 = vsel %vm6859_vm7, %v5470_v1, %v4336_v29  ;;  %v4344_v27 = vsel %vm6859_vm7, %v5471_v20, %v4343_v15  ;;  %v5468_v20 = vld [vmem:[%s6584_s30 + $0xcc] sm:$0xe] }
 0x136   : > { %5795 = vmatprep.mubr.msk.bf16.mxu1 %vm660_vm4, %v6341_v33  ;;  %v4423_v33 = vrot.slane %v7872_v6, 5  ;;  %v4347_v10 = vsel %vm6859_vm7, %v4345_v30, %v4346_v21  ;;  %v5483_v2 = vrot.slane %v5467_v60, 9  ;;  %v5472_v1 = vrot.slane %v5456_v4, 9 }
 0x137   : > { %v4340_v6 = vsel %vm6859_vm7, %v4338_v28, %v4339_v37  ;;  %v4352_v38 = vrot.slane %v4350_v44, 4  ;;  %v4427_v19 = vrot.slane %v7893_v25, 5  ;;  %v5488_v15 = vcombine.low %v4344_v27, %v4347_v10 }
 0x138   : > { %v8111_v40 = vsel %vm6859_vm7, %v4422_v53, %v4423_v33  ;;  %v5487_v37 = vcombine.low %v4337_v51, %v4340_v6  ;;  %v4351_v30 = vsel %vm6859_vm7, %v5472_v1, %v4350_v44  ;;  %v2226_v21 = vshll.u32 %v5185_v35, 16 }
 0x139   : > { %v5499_v29 = vcombine.low %v8098_v17, %v8111_v40  ;;  %v8127_v49 = vsel %vm6859_vm7, %v5483_v2, %v4427_v19  ;;  %v4429_v33 = vrot.slane %v4427_v19, 4  ;;  %v2232_v53 = vshll.u32 %v6393_v11, 16 }
 0x13a   : > { %v2236_v44 = vshrl.u32 %v6393_v11, 16  ;;  %v5484_v4 = vrot.slane %v5468_v20, 9  ;;  %v4434_v51 = vrot.slane %v7953_v47, 5  ;;  %v4437_v6 = vrot.slane %v8007_v57, 5  ;;  %v5191_v57 = vld [vmem:[%s6584_s30 + $0x84] sm:$0xf] }
 0x13b   : > { %v6395_v20 = vld [vmem:[%s6584_s30 + $0x88] sm:$0xf]  ;;  %v2410_v56 = vshll.u32 %v6406_v46, 16 }
 0x13c   : > { %5948 = vmatmul.mubr.msk.bf16.gmra.mrb[28].mxu0 %vm660_vm4, %v5436_v62  ;;  %v8471_v62 = vld [vmem:[#allocation14_spill] sm:$0xff]  ;;  %v8150_v27 = vsel %vm6859_vm7, %v5484_v4, %v4434_v51  ;;  %v4436_v10 = vrot.slane %v4434_v51, 4  ;;  %v2238_v19 = vrot.slane %v2236_v44, 4  ;;  %v5197_v44 = vld [vmem:[%s6584_s30 + $0x9c] sm:$0xf] }
 0x13d   : > { %5796 = vmatmul.mubr.msk.bf16.gmra.mrb[12].mxu1 %vm660_vm4, %v6342_v52  ;;  %5953 = vmatprep.mubr.msk.bf16.mxu0 %vm660_vm4, %v5486_v3  ;;  %v4353_v28 = vrot.slane %v8471_v62, 5  ;;  %v4430_v52 = vrot.slane %v7969_v59, 5  ;;  %v6344_v3 = vld [vmem:[%s6584_s30 + $0x78] sm:$0xff]   ;;  %v2223_v59 = vshrl.u32 %v5185_v35, 16  ;;  %v2228_v62 = vrot.slane %v2226_v21, 5  ;;  %v6348_v21 = vld [vmem:[%s6584_s30 + $0xa8] sm:$0xff]  }
 0x13e   : > { %5799 = vmatprep.mubr.msk.bf16.mxu1 %vm660_vm4, %v6343_v39  ;;  %v6345_v39 = vld [vmem:[%s6584_s30 + $0x84] sm:$0xff]   ;;  %v8155_v47 = vsel %vm6859_vm7, %v4436_v10, %v4437_v6  ;;  %v6349_v4 = vld [vmem:[%s6584_s30 + $0xb4] sm:$0xff]  }
 0x13f   : > { %v4354_v25 = vsel %vm6859_vm7, %v4352_v38, %v4353_v28  ;;  %v8137_v7 = vsel %vm6859_vm7, %v4429_v33, %v4430_v52  ;;  %v2225_v1 = vrot.slane %v2223_v59, 4  ;;  %v6346_v38 = vld [vmem:[%s6584_s30 + $0x90] sm:$0xff]   ;;  %v2234_v28 = vrot.slane %v2232_v53, 5 }
 0x140   : > { %v5500_v60 = vcombine.low %v8127_v49, %v8137_v7  ;;  %v5489_v2 = vcombine.low %v4351_v30, %v4354_v25  ;;  %v5501_v52 = vcombine.low %v8150_v27, %v8155_v47  ;;  %v2271_v33 = vshrl.u32 %v5191_v57, 16  ;;  %v5194_v59 = vld [vmem:[%s6584_s30 + $0x90] sm:$0xf] }
 0x141   : > { %v2229_v22 = vor.u32 %v2228_v62, %v2225_v1  ;;  %v2239_v35 = vor.u32 %v2238_v19, %v2234_v28  ;;  %v2280_v30 = vshll.u32 %v6395_v20, 16  ;;  %v2284_v25 = vshrl.u32 %v6395_v20, 16  ;;  %v6396_v1 = vld [vmem:[%s6584_s30 + $0x94] sm:$0xf] }
 0x142   : > { %v2273_v12 = vrot.slane %v2271_v33, 4  ;;  %v2295_v10 = vshrl.u32 %v5194_v59, 16  ;;  %v2308_v62 = vshrl.u32 %v6396_v1, 16  ;;  %v2319_v19 = vshrl.u32 %v5197_v44, 16 }
 0x143   : > { %v2230_v53 = vrot.slane %v2229_v22, 4  ;;  %v2240_v41 = vrot.slane %v2239_v35, 4  ;;  %v8174_v51 = vrot.slane %v2280_v30, 5  ;;  %v2286_v6 = vrot.slane %v2284_v25, 4 }
 0x144   : > { %5954 = vmatmul.mubr.msk.bf16.vlgmr.msra.gmra.mrb[0].mxu0 %vm660_vm4, %v5487_v37  ;;  %v6347_v37 = vld [vmem:[%s6584_s30 + $0x9c] sm:$0xff]   ;;  %v2321_v20 = vrot.slane %v2319_v19, 4 }
 0x145   : > { %5800 = vmatmul.mubr.msk.bf16.gmra.mrb[16].mxu1 %vm660_vm4, %v6344_v3  ;;  %5957 = vmatprep.mubr.msk.bf16.mxu0 %vm660_vm4, %v5488_v15  ;;  %v6394_v3 = vld [vmem:[%s6584_s30 + $0x74] sm:$0x1]  ;;  %v2235_v22 = vsel %vm6629_vm3, %v2230_v53, %v2234_v28  ;;  %v2287_v33 = vor.u32 %v2286_v6, %v8174_v51 }
 0x146   : > { %5803 = vmatprep.mubr.msk.bf16.mxu1 %vm660_vm4, %v6345_v39  ;;  %v2242_v15 = vshll.u32 %v6394_v3, 16  ;;  %v2274_v39 = vshll.u32 %v5191_v57, 16  ;;  %v6397_v57 = vld [vmem:[%s6584_s30 + $0xa0] sm:$0xf] }
 0x147   : > { %v2328_v3 = vshll.u32 %v6397_v57, 16 }
 0x148   : > { %v2244_v11 = vrot.slane %v2242_v15, 5  ;;  %v2332_v15 = vshrl.u32 %v6397_v57, 16 }
 0x149   : > { %v8196_v28 = vrot.slane %v2328_v3, 5 }
 0x14a   : > { %v2245_v34 = vsel %vm6629_vm3, %v2240_v41, %v2244_v11  ;;  %v2334_v25 = vrot.slane %v2332_v15, 4  ;;  %v2288_v41 = vrot.slane %v2287_v33, 4 }
 0x14c   : > { %5958 = vmatmul.mubr.msk.bf16.gmra.mrb[4].mxu0 %vm660_vm4, %v5489_v2  ;;  %v2298_v2 = vshll.u32 %v5194_v59, 16  ;;  %v6350_v59 = vld [vmem:[%s6584_s30 + $0xc0] sm:$0xff]  }
 0x14d   : > { %5804 = vmatmul.mubr.msk.bf16.gmra.mrb[20].mxu1 %vm660_vm4, %v6346_v38  ;;  %5961 = vmatprep.mubr.msk.bf16.mxu0 %vm660_vm4, %v5490_v8  ;;  %v2276_v8 = vrot.slane %v2274_v39, 5  ;;  %v2304_v38 = vshll.u32 %v6396_v1, 16  ;;  %v2297_v39 = vrot.slane %v2295_v10, 4  ;;  %v6400_v1 = vld [vmem:[%s6584_s30 + $0xa4] sm:$0x1] }
 0x14e   : > { %5807 = vmatprep.mubr.msk.bf16.mxu1 %vm660_vm4, %v6347_v37  ;;  %v2322_v37 = vshll.u32 %v5197_v44, 16  ;;  %v2300_v26 = vrot.slane %v2298_v2, 5  ;;  %v2335_v2 = vor.u32 %v2334_v25, %v8196_v28 }
 0x14f   : > { %v2277_v35 = vor.u32 %v2276_v8, %v2273_v12  ;;  %v8194_v18 = vrot.slane %v2304_v38, 5  ;;  %v6399_v8 = vld [vmem:[%s6584_s30 + $0x98] sm:$0x1]  ;;  %v2338_v38 = vshll.u32 %v6400_v1, 16 }
 0x150   : > { %v2324_v30 = vrot.slane %v2322_v37, 5  ;;  %v2301_v12 = vor.u32 %v2300_v26, %v2297_v39  ;;  %v2314_v44 = vshll.u32 %v6399_v8, 16  ;;  %v2356_v37 = vshrl.u32 %v6401_v36, 16 }
 0x151   : > { %v2278_v53 = vrot.slane %v2277_v35, 4  ;;  %v2336_v33 = vrot.slane %v2335_v2, 4  ;;  %v2340_v39 = vrot.slane %v2338_v38, 5  ;;  %v6405_v38 = vld [vmem:[%s6584_s30 + $0xbc] sm:$0x1] }
 0x152   : > { %v2325_v10 = vor.u32 %v2324_v30, %v2321_v20  ;;  %v2302_v15 = vrot.slane %v2301_v12, 4  ;;  %v2358_v30 = vrot.slane %v2356_v37, 4  ;;  %v2386_v13 = vshll.u32 %v6405_v38, 16 }
 0x153   : > { %v2283_v57 = vsel %vm6629_vm3, %v2278_v53, %v8174_v51  ;;  %v5206_v53 = vld [vmem:[%s6584_s30 + $0xc0] sm:$0xf]  ;;  %v2341_v9 = vsel %vm6629_vm3, %v2336_v33, %v2340_v39 }
 0x154   : > { %5962 = vmatmul.mubr.msk.bf16.gmra.mrb[8].mxu0 %vm660_vm4, %v5491_v50  ;;  %v2290_v50 = vshll.u32 %v6398_v58, 16  ;;  %v2380_v58 = vshrl.u32 %v6402_v45, 16  ;;  %v2326_v35 = vrot.slane %v2325_v10, 4 }
 0x155   : > { %5808 = vmatmul.mubr.msk.bf16.gmra.mrb[24].mxu1 %vm660_vm4, %v6348_v21  ;;  %5965 = vmatprep.mubr.msk.bf16.mxu0 %vm660_vm4, %v5492_v24  ;;  %v2310_v24 = vrot.slane %v2308_v62, 4  ;;  %v5218_v21 = vcombine.low %v2235_v22, %v2245_v34  ;;  %v5203_v62 = vld [vmem:[%s6584_s30 + $0xb4] sm:$0xf]  ;;  %v2316_v22 = vrot.slane %v2314_v44, 5 }
 0x156   : > { %5811 = vmatprep.mubr.msk.bf16.mxu1 %vm660_vm4, %v6349_v4  ;;  %v2292_v11 = vrot.slane %v2290_v50, 5  ;;  %v5200_v4 = vld [vmem:[%s6584_s30 + $0xa8] sm:$0xf]  ;;  %v2367_v34 = vshrl.u32 %v5203_v62, 16  ;;  %v2370_v23 = vshll.u32 %v5203_v62, 16  ;;  %v2331_v8 = vsel %vm6629_vm3, %v2326_v35, %v8196_v28 }
 0x157   : > { %v2311_v6 = vor.u32 %v2310_v24, %v8194_v18  ;;  %v2343_v19 = vshrl.u32 %v5200_v4, 16  ;;  %v2346_v42 = vshll.u32 %v5200_v4, 16  ;;  %v2391_v4 = vshrl.u32 %v5206_v53, 16 }
 0x158   : > { %v2293_v3 = vsel %vm6629_vm3, %v2288_v41, %v2292_v11  ;;  %v2369_v25 = vrot.slane %v2367_v34, 4  ;;  %v2382_v11 = vrot.slane %v2380_v58, 4  ;;  %v2307_v41 = vsel %vm6629_vm3, %v2302_v15, %v8194_v18  ;;  %v6403_v18 = vld [vmem:[%s6584_s30 + $0xb0] sm:$0x1] }
 0x159   : > { %v2312_v50 = vrot.slane %v2311_v6, 4  ;;  %v2345_v26 = vrot.slane %v2343_v19, 4  ;;  %v2348_v24 = vrot.slane %v2346_v42, 5  ;;  %v5220_v51 = vcombine.low %v2283_v57, %v2293_v3  ;;  %v6404_v6 = vld [vmem:[%s6584_s30 + $0xc4] sm:$0xf]  ;;  %s5525_s30 = sshll.u32 %s6547_s16, 12 }
 0x15a   : > { %v2362_v44 = vshll.u32 %v6403_v18, 16  ;;  %v2394_v28 = vshll.u32 %v5206_v53, 16  ;;  %v2400_v10 = vshll.u32 %v6404_v6, 16  ;;  %v2404_v2 = vshrl.u32 %v6404_v6, 16  ;;  %s8331_s19 = scalar_lea.hbm %s8405_s2, %s5525_s30 }
 0x15b   : > { %v2317_v12 = vsel %vm6629_vm3, %v2312_v50, %v2316_v22  ;;  %v2349_v54 = vor.u32 %v2348_v24, %v2345_v26  ;;  %v2388_v22 = vrot.slane %v2386_v13, 5  ;;  %v2412_v35 = vrot.slane %v2410_v56, 5 }
 0x15c   : > { %5966 = vmatmul.mubr.msk.bf16.gmra.mrb[12].mxu0 %vm660_vm4, %v5493_v32  ;;  %v2352_v32 = vshll.u32 %v6401_v36, 16  ;;  %v5221_v16 = vcombine.low %v2307_v41, %v2317_v12  ;;  %v2364_v42 = vrot.slane %v2362_v44, 5  ;;  %v2393_v36 = vrot.slane %v2391_v4, 4 }
 0x15d   : > { %5812 = vmatmul.mubr.msk.bf16.gmra.mrb[28].mxu1 %vm660_vm4, %v6350_v59  ;;  %5969 = vmatprep.mubr.msk.bf16.mxu0 %vm660_vm4, %v5494_v0  ;;  %v2376_v0 = vshll.u32 %v6402_v45, 16  ;;  %v2372_v59 = vrot.slane %v2370_v23, 5  ;;  %v2350_v62 = vrot.slane %v2349_v54, 4  ;;  %v2402_v37 = vrot.slane %v2400_v10, 5 }
 0x15e   : > { %5833 = vmatprep.mubr.msk.bf16.mxu1 %vm660_vm4, %v5218_v21  ;;  %v2354_v20 = vrot.slane %v2352_v32, 5  ;;  %v2396_v32 = vrot.slane %v2394_v28, 5  ;;  %v2406_v57 = vrot.slane %v2404_v2, 4 }
 0x15f   : > { %v2378_v21 = vrot.slane %v2376_v0, 5 }
 0x160   : > { %v2355_v34 = vsel %vm6629_vm3, %v2350_v62, %v2354_v20  ;;  %v2397_v45 = vor.u32 %v2396_v32, %v2393_v36  ;;  %v2407_v0 = vor.u32 %v2406_v57, %v2402_v37 }
 0x161   : > { %v2383_v1 = vor.u32 %v2382_v11, %v2378_v21 }
 0x162   : > { %v2398_v58 = vrot.slane %v2397_v45, 4  ;;  %v2408_v50 = vrot.slane %v2407_v0, 4 }
 0x163   : > { %v2384_v15 = vrot.slane %v2383_v1, 4 }
 0x164   : > { %5970 = vmatmul.mubr.msk.bf16.gmra.mrb[16].mxu0 %vm660_vm4, %v5495_v63  ;;  %v2359_v63 = vor.u32 %v2358_v30, %v2354_v20  ;;  %v2403_v33 = vsel %vm6629_vm3, %v2398_v58, %v2402_v37  ;;  %v2413_v39 = vsel %vm6629_vm3, %v2408_v50, %v2412_v35 }
 0x165   : > { %5834 = vmatmul.mubr.msk.bf16.vlgmr.msra.gmra.mrb[16].mxu1 %vm660_vm4, %v8003_v61  ;;  %5973 = vmatprep.mubr.msk.bf16.mxu0 %vm660_vm4, %v5496_v14  ;;  %v2373_v61 = vor.u32 %v2372_v59, %v2369_v25  ;;  %v5222_v14 = vcombine.low %v2331_v8, %v2341_v9  ;;  %v2389_v5 = vsel %vm6629_vm3, %v2384_v15, %v2388_v22 }
 0x166   : > { %5837 = vmatprep.mubr.msk.bf16.mxu1 %vm660_vm4, %v5220_v51  ;;  %v2360_v19 = vrot.slane %v2359_v63, 4  ;;  %v5225_v26 = vcombine.low %v2403_v33, %v2413_v39 }
 0x167   : > { %v2374_v3 = vrot.slane %v2373_v61, 4 }
 0x168   : > { %v2365_v23 = vsel %vm6629_vm3, %v2360_v19, %v2364_v42 }
 0x169   : > { %v5223_v48 = vcombine.low %v2355_v34, %v2365_v23 }
 0x16c   : > { %5974 = vmatmul.mubr.msk.bf16.gmra.mrb[20].mxu0 %vm660_vm4, %v5497_v43  ;;  %v2379_v43 = vsel %vm6629_vm3, %v2374_v3, %v2378_v21 }
 0x16d   : > { %5838 = vmatmul.mubr.msk.bf16.gmra.mrb[20].mxu1 %vm660_vm4, %v5221_v16  ;;  %5977 = vmatprep.mubr.msk.bf16.mxu0 %vm660_vm4, %v5498_v55  ;;  %v5224_v55 = vcombine.low %v2379_v43, %v2389_v5 }
 0x16e   : > { %5841 = vmatprep.mubr.msk.bf16.mxu1 %vm660_vm4, %v5222_v14 }
 0x174   : > { %5978 = vmatmul.mubr.msk.bf16.gmra.mrb[24].mxu0 %vm660_vm4, %v5499_v29 }
 0x175   : > { %5842 = vmatmul.mubr.msk.bf16.gmra.mrb[24].mxu1 %vm660_vm4, %v5223_v48  ;;  %5981 = vmatprep.mubr.msk.bf16.mxu0 %vm660_vm4, %v5500_v60 }
 0x176   : > { %5845 = vmatprep.mubr.msk.bf16.mxu1 %vm660_vm4, %v5224_v55 }
 0x17c   : > { %5982 = vmatmul.mubr.msk.bf16.gmra.mrb[28].mxu0 %vm660_vm4, %v5501_v52 }
 0x17d   : > { %5846 = vmatmul.mubr.msk.bf16.gmra.mrb[28].mxu1 %vm660_vm4, %v5225_v26 }
 0x1f8   : > { %v5785_v17 = vpop.f32.mrb[0].mxu1 }
 0x1f9   : > { %v1823_v40 = vpop.f32.mrb[1].mxu1 }
 0x1fa   : > { %v5786_v29 = vpop.f32.mrb[2].mxu1 }
 0x1fb   : > { %v1826_v49 = vpop.f32.mrb[3].mxu1 }
 0x200   : > { %v5789_v7 = vpop.f32.mrb[4].mxu1 }
 0x201   : > { %v1839_v60 = vpop.f32.mrb[5].mxu1 }
 0x202   : > { %v5790_v24 = vpop.f32.mrb[6].mxu1 }
 0x203   : > { %v1842_v20 = vpop.f32.mrb[7].mxu1 }
 0x208   : > { %v5793_v30 = vpop.f32.mrb[8].mxu1 }
 0x209   : > { %v1855_v31 = vpop.f32.mrb[9].mxu1 }
 0x20a   : > { %v5794_v51 = vpop.f32.mrb[10].mxu1 }
 0x20b   : > { %v1858_v25 = vpop.f32.mrb[11].mxu1 }
 0x210   : > { %v8285_v27 = vpop.f32.mrb[12].mxu1 }
 0x211   : > { %v8287_v47 = vpop.f32.mrb[13].mxu1 }
 0x212   : > { %v8289_v52 = vpop.f32.mrb[14].mxu1 }
 0x213   : > { %v8291_v59 = vpop.f32.mrb[15].mxu1 }
 0x217   : > { %v5955_v21 = vpop.f32.mrb[0].mxu0 }
 0x218   : > { %v5987_v11 = vadd.f32 %v5955_v21, %v5785_v17  ;;  %v4574_v53 = vpop.f32.mrb[1].mxu0 }
 0x219   : > { %v5988_v41 = vadd.f32 %v4574_v53, %v1823_v40  ;;  %v5956_v12 = vpop.f32.mrb[2].mxu0 }
 0x21a   : > { %4735 = vst [vmem:[%s6586_s4 + $0x10] sm:$0xff] %v5987_v11  ;;  %v5989_v8 = vadd.f32 %v5956_v12, %v5786_v29  ;;  %v4577_v9 = vpop.f32.mrb[3].mxu0  ;;  %v4808_v4 = vmul.f32 %v5987_v11, %v5987_v11 }
 0x21b   : > { %4733 = vst [vmem:[%s6586_s4] sm:$0xff] %v5988_v41  ;;  %v5990_v54 = vadd.f32 %v4577_v9, %v1826_v49  ;;  %v4806_v63 = vmul.f32 %v5988_v41, %v5988_v41 }
 0x21c   : > { %4736 = vst [vmem:[%s6586_s4 + $0x18] sm:$0xff] %v5989_v8  ;;  %v4809_v1 = vmul.f32 %v5989_v8, %v5989_v8 }
 0x21d   : > { %4734 = vst [vmem:[%s6586_s4 + $0x8] sm:$0xff] %v5990_v54  ;;  %v4766_v18 = vadd.f32 %v5990_v54, %v5988_v41  ;;  %v4807_v44 = vmul.f32 %v5990_v54, %v5990_v54 }
 0x21f   : > { %v4767_v28 = vadd.f32 %v5987_v11, %v4766_v18  ;;  %v4838_v6 = vadd.f32 %v4807_v44, %v4806_v63  ;;  %v5959_v10 = vpop.f32.mrb[4].mxu0 }
 0x220   : > { %v5991_v2 = vadd.f32 %v5959_v10, %v5789_v7  ;;  %v4590_v61 = vpop.f32.mrb[5].mxu0 }
 0x221   : > { %v4839_v38 = vadd.f32 %v4838_v6, %v4808_v4  ;;  %v5992_v13 = vadd.f32 %v4590_v61, %v1839_v60  ;;  %v4768_v16 = vadd.f32 %v5989_v8, %v4767_v28  ;;  %v5960_v14 = vpop.f32.mrb[6].mxu0 }
 0x222   : > { %4739 = vst [vmem:[%s6586_s4 + $0x30] sm:$0xff] %v5991_v2  ;;  %v5993_v62 = vadd.f32 %v5960_v14, %v5790_v24  ;;  %v4593_v19 = vpop.f32.mrb[7].mxu0  ;;  %v4812_v22 = vmul.f32 %v5991_v2, %v5991_v2 }
 0x223   : > { %4737 = vst [vmem:[%s6586_s4 + $0x20] sm:$0xff] %v5992_v13  ;;  %v4769_v42 = vadd.f32 %v5992_v13, %v4768_v16  ;;  %v4810_v36 = vmul.f32 %v5992_v13, %v5992_v13  ;;  %v4840_v32 = vadd.f32 %v4839_v38, %v4809_v1  ;;  %v5994_v37 = vadd.f32 %v4593_v19, %v1842_v20 }
 0x224   : > { %4740 = vst [vmem:[%s6586_s4 + $0x38] sm:$0xff] %v5993_v62  ;;  %v4813_v56 = vmul.f32 %v5993_v62, %v5993_v62 }
 0x225   : > { %v4841_v57 = vadd.f32 %v4840_v32, %v4810_v36  ;;  %4738 = vst [vmem:[%s6586_s4 + $0x28] sm:$0xff] %v5994_v37  ;;  %v4770_v3 = vadd.f32 %v5994_v37, %v4769_v42  ;;  %v4811_v15 = vmul.f32 %v5994_v37, %v5994_v37 }
 0x227   : > { %v4771_v34 = vadd.f32 %v5991_v2, %v4770_v3  ;;  %v4842_v23 = vadd.f32 %v4841_v57, %v4811_v15  ;;  %v5963_v45 = vpop.f32.mrb[8].mxu0 }
 0x228   : > { %v5995_v0 = vadd.f32 %v5963_v45, %v5793_v30  ;;  %v4606_v46 = vpop.f32.mrb[9].mxu0 }
 0x229   : > { %v4843_v43 = vadd.f32 %v4842_v23, %v4812_v22  ;;  %v5996_v5 = vadd.f32 %v4606_v46, %v1855_v31  ;;  %v4772_v48 = vadd.f32 %v5993_v62, %v4771_v34  ;;  %v5964_v55 = vpop.f32.mrb[10].mxu0 }
 0x22a   : > { %4743 = vst [vmem:[%s6586_s4 + $0x50] sm:$0xff] %v5995_v0  ;;  %v5997_v58 = vadd.f32 %v5964_v55, %v5794_v51  ;;  %v4609_v50 = vpop.f32.mrb[11].mxu0  ;;  %v4816_v49 = vmul.f32 %v5995_v0, %v5995_v0 }
 0x22b   : > { %4741 = vst [vmem:[%s6586_s4 + $0x40] sm:$0xff] %v5996_v5  ;;  %v4773_v35 = vadd.f32 %v5996_v5, %v4772_v48  ;;  %v4814_v33 = vmul.f32 %v5996_v5, %v5996_v5  ;;  %v4844_v39 = vadd.f32 %v4843_v43, %v4813_v56  ;;  %v5998_v26 = vadd.f32 %v4609_v50, %v1858_v25 }
 0x22c   : > { %4744 = vst [vmem:[%s6586_s4 + $0x58] sm:$0xff] %v5997_v58  ;;  %v4817_v31 = vmul.f32 %v5997_v58, %v5997_v58 }
 0x22d   : > { %v4845_v17 = vadd.f32 %v4844_v39, %v4814_v33  ;;  %4742 = vst [vmem:[%s6586_s4 + $0x48] sm:$0xff] %v5998_v26  ;;  %v4774_v40 = vadd.f32 %v5998_v26, %v4773_v35  ;;  %v4815_v29 = vmul.f32 %v5998_v26, %v5998_v26 }
 0x22f   : > { %v4775_v7 = vadd.f32 %v5995_v0, %v4774_v40  ;;  %v4846_v60 = vadd.f32 %v4845_v17, %v4815_v29  ;;  %v5967_v24 = vpop.f32.mrb[12].mxu0 }
 0x230   : > { %v5999_v20 = vadd.f32 %v5967_v24, %v8285_v27  ;;  %v4622_v30 = vpop.f32.mrb[13].mxu0 }
 0x231   : > { %v4847_v51 = vadd.f32 %v4846_v60, %v4816_v49  ;;  %v6000_v25 = vadd.f32 %v4622_v30, %v8287_v47  ;;  %v4776_v21 = vadd.f32 %v5997_v58, %v4775_v7  ;;  %v5968_v11 = vpop.f32.mrb[14].mxu0 }
 0x232   : > { %4747 = vst [vmem:[%s6586_s4 + $0x70] sm:$0xff] %v5999_v20  ;;  %v6001_v53 = vadd.f32 %v5968_v11, %v8289_v52  ;;  %v4625_v41 = vpop.f32.mrb[15].mxu0  ;;  %v4820_v44 = vmul.f32 %v5999_v20, %v5999_v20 }
 0x233   : > { %4745 = vst [vmem:[%s6586_s4 + $0x60] sm:$0xff] %v6000_v25  ;;  %v4777_v12 = vadd.f32 %v6000_v25, %v4776_v21  ;;  %v4818_v8 = vmul.f32 %v6000_v25, %v6000_v25  ;;  %v4848_v9 = vadd.f32 %v4847_v51, %v4817_v31  ;;  %v6002_v54 = vadd.f32 %v4625_v41, %v8291_v59 }
 0x234   : > { %4748 = vst [vmem:[%s6586_s4 + $0x78] sm:$0xff] %v6001_v53  ;;  %v4821_v10 = vmul.f32 %v6001_v53, %v6001_v53 }
 0x235   : > { %v4849_v27 = vadd.f32 %v4848_v9, %v4818_v8  ;;  %4746 = vst [vmem:[%s6586_s4 + $0x68] sm:$0xff] %v6002_v54  ;;  %v4778_v63 = vadd.f32 %v6002_v54, %v4777_v12  ;;  %v4819_v18 = vmul.f32 %v6002_v54, %v6002_v54 }
 0x237   : > { %v4779_v47 = vadd.f32 %v5999_v20, %v4778_v63  ;;  %v4850_v4 = vadd.f32 %v4849_v27, %v4819_v18  ;;  %v5971_v28 = vpop.f32.mrb[16].mxu0 }
 0x238   : > { %v5835_v6 = vpop.f32.mrb[16].mxu1  ;;  %v4638_v52 = vpop.f32.mrb[17].mxu0 }
 0x239   : > { %v4851_v2 = vadd.f32 %v4850_v4, %v4820_v44  ;;  %v6003_v61 = vadd.f32 %v5971_v28, %v5835_v6  ;;  %v2613_v1 = vpop.f32.mrb[17].mxu1  ;;  %v4780_v59 = vadd.f32 %v6001_v53, %v4779_v47  ;;  %v5972_v38 = vpop.f32.mrb[18].mxu0 }
 0x23a   : > { %v6004_v13 = vadd.f32 %v4638_v52, %v2613_v1  ;;  %v5836_v16 = vpop.f32.mrb[18].mxu1  ;;  %v4641_v14 = vpop.f32.mrb[19].mxu0 }
 0x23b   : > { %4751 = vst [vmem:[%s6586_s4 + $0x90] sm:$0xff] %v6003_v61  ;;  %v4852_v62 = vadd.f32 %v4851_v2, %v4821_v10  ;;  %v6005_v19 = vadd.f32 %v5972_v38, %v5836_v16  ;;  %v2616_v42 = vpop.f32.mrb[19].mxu1  ;;  %v4824_v34 = vmul.f32 %v6003_v61, %v6003_v61 }
 0x23c   : > { %4749 = vst [vmem:[%s6586_s4 + $0x80] sm:$0xff] %v6004_v13  ;;  %v4781_v36 = vadd.f32 %v6004_v13, %v4780_v59  ;;  %v4822_v32 = vmul.f32 %v6004_v13, %v6004_v13  ;;  %v6006_v37 = vadd.f32 %v4641_v14, %v2616_v42 }
 0x23d   : > { %4752 = vst [vmem:[%s6586_s4 + $0x98] sm:$0xff] %v6005_v19  ;;  %v4825_v48 = vmul.f32 %v6005_v19, %v6005_v19 }
 0x23e   : > { %v4853_v57 = vadd.f32 %v4852_v62, %v4822_v32  ;;  %4750 = vst [vmem:[%s6586_s4 + $0x88] sm:$0xff] %v6006_v37  ;;  %v4782_v3 = vadd.f32 %v6006_v37, %v4781_v36  ;;  %v4823_v15 = vmul.f32 %v6006_v37, %v6006_v37 }
 0x23f   : > { %v5975_v22 = vpop.f32.mrb[20].mxu0 }
 0x240   : > { %v4783_v23 = vadd.f32 %v6003_v61, %v4782_v3  ;;  %v4854_v45 = vadd.f32 %v4853_v57, %v4823_v15  ;;  %v5839_v0 = vpop.f32.mrb[20].mxu1  ;;  %v4654_v46 = vpop.f32.mrb[21].mxu0 }
 0x241   : > { %v6007_v56 = vadd.f32 %v5975_v22, %v5839_v0  ;;  %v2629_v43 = vpop.f32.mrb[21].mxu1  ;;  %v5976_v5 = vpop.f32.mrb[22].mxu0 }
 0x242   : > { %v4855_v55 = vadd.f32 %v4854_v45, %v4824_v34  ;;  %v6008_v58 = vadd.f32 %v4654_v46, %v2629_v43  ;;  %v4784_v50 = vadd.f32 %v6005_v19, %v4783_v23  ;;  %v5840_v35 = vpop.f32.mrb[22].mxu1  ;;  %v4657_v33 = vpop.f32.mrb[23].mxu0 }
 0x243   : > { %4755 = vst [vmem:[%s6586_s4 + $0xb0] sm:$0xff] %v6007_v56  ;;  %v6009_v39 = vadd.f32 %v5976_v5, %v5840_v35  ;;  %v2632_v26 = vpop.f32.mrb[23].mxu1  ;;  %v4828_v30 = vmul.f32 %v6007_v56, %v6007_v56 }
 0x244   : > { %4753 = vst [vmem:[%s6586_s4 + $0xa0] sm:$0xff] %v6008_v58  ;;  %v4785_v17 = vadd.f32 %v6008_v58, %v4784_v50  ;;  %v4826_v40 = vmul.f32 %v6008_v58, %v6008_v58  ;;  %v4856_v29 = vadd.f32 %v4855_v55, %v4825_v48  ;;  %v6010_v49 = vadd.f32 %v4657_v33, %v2632_v26 }
 0x245   : > { %4756 = vst [vmem:[%s6586_s4 + $0xb8] sm:$0xff] %v6009_v39  ;;  %v4829_v12 = vmul.f32 %v6009_v39, %v6009_v39 }
 0x246   : > { %v4857_v7 = vadd.f32 %v4856_v29, %v4826_v40  ;;  %4754 = vst [vmem:[%s6586_s4 + $0xa8] sm:$0xff] %v6010_v49  ;;  %v4786_v60 = vadd.f32 %v6010_v49, %v4785_v17  ;;  %v4827_v24 = vmul.f32 %v6010_v49, %v6010_v49 }
 0x247   : > { %v5979_v20 = vpop.f32.mrb[24].mxu0 }
 0x248   : > { %v4787_v31 = vadd.f32 %v6007_v56, %v4786_v60  ;;  %v4858_v51 = vadd.f32 %v4857_v7, %v4827_v24  ;;  %v5843_v25 = vpop.f32.mrb[24].mxu1  ;;  %v4670_v21 = vpop.f32.mrb[25].mxu0 }
 0x249   : > { %v6011_v11 = vadd.f32 %v5979_v20, %v5843_v25  ;;  %v2645_v53 = vpop.f32.mrb[25].mxu1  ;;  %v5980_v41 = vpop.f32.mrb[26].mxu0 }
 0x24a   : > { %v4859_v8 = vadd.f32 %v4858_v51, %v4828_v30  ;;  %v6012_v9 = vadd.f32 %v4670_v21, %v2645_v53  ;;  %v4788_v54 = vadd.f32 %v6009_v39, %v4787_v31  ;;  %v5844_v27 = vpop.f32.mrb[26].mxu1  ;;  %v4673_v63 = vpop.f32.mrb[27].mxu0 }
 0x24b   : > { %4759 = vst [vmem:[%s6586_s4 + $0xd0] sm:$0xff] %v6011_v11  ;;  %v6013_v18 = vadd.f32 %v5980_v41, %v5844_v27  ;;  %v2648_v44 = vpop.f32.mrb[27].mxu1  ;;  %v4832_v1 = vmul.f32 %v6011_v11, %v6011_v11 }
 0x24c   : > { %4757 = vst [vmem:[%s6586_s4 + $0xc0] sm:$0xff] %v6012_v9  ;;  %v4789_v47 = vadd.f32 %v6012_v9, %v4788_v54  ;;  %v4830_v4 = vmul.f32 %v6012_v9, %v6012_v9  ;;  %v4860_v28 = vadd.f32 %v4859_v8, %v4829_v12  ;;  %v6014_v6 = vadd.f32 %v4673_v63, %v2648_v44 }
 0x24d   : > { %4760 = vst [vmem:[%s6586_s4 + $0xd8] sm:$0xff] %v6013_v18  ;;  %v4833_v42 = vmul.f32 %v6013_v18, %v6013_v18 }
 0x24e   : > { %v4861_v52 = vadd.f32 %v4860_v28, %v4830_v4  ;;  %4758 = vst [vmem:[%s6586_s4 + $0xc8] sm:$0xff] %v6014_v6  ;;  %v4790_v10 = vadd.f32 %v6014_v6, %v4789_v47  ;;  %v4831_v2 = vmul.f32 %v6014_v6, %v6014_v6 }
 0x24f   : > { %v5983_v61 = vpop.f32.mrb[28].mxu0 }
 0x250   : > { %v4791_v59 = vadd.f32 %v6011_v11, %v4790_v10  ;;  %v4862_v38 = vadd.f32 %v4861_v52, %v4831_v2  ;;  %v5847_v13 = vpop.f32.mrb[28].mxu1  ;;  %v4686_v16 = vpop.f32.mrb[29].mxu0 }
 0x251   : > { %v6015_v14 = vadd.f32 %v5983_v61, %v5847_v13  ;;  %v2661_v62 = vpop.f32.mrb[29].mxu1  ;;  %v5984_v19 = vpop.f32.mrb[30].mxu0 }
 0x252   : > { %v4863_v36 = vadd.f32 %v4862_v38, %v4832_v1  ;;  %v6016_v32 = vadd.f32 %v4686_v16, %v2661_v62  ;;  %v4792_v37 = vadd.f32 %v6013_v18, %v4791_v59  ;;  %v5848_v57 = vpop.f32.mrb[30].mxu1  ;;  %v4689_v3 = vpop.f32.mrb[31].mxu0 }
 0x253   : > { %4763 = vst [vmem:[%s6586_s4 + $0xf0] sm:$0xff] %v6015_v14  ;;  %v6017_v15 = vadd.f32 %v5984_v19, %v5848_v57  ;;  %v2664_v22 = vpop.f32.mrb[31].mxu1 }
 0x254   : > { %4761 = vst [vmem:[%s6586_s4 + $0xe0] sm:$0xff] %v6016_v32  ;;  %v4793_v34 = vadd.f32 %v6016_v32, %v4792_v37  ;;  %v4834_v23 = vmul.f32 %v6016_v32, %v6016_v32  ;;  %v4864_v45 = vadd.f32 %v4863_v36, %v4833_v42  ;;  %v6018_v0 = vadd.f32 %v4689_v3, %v2664_v22 }
 0x255   : > { %4764 = vst [vmem:[%s6586_s4 + $0xf8] sm:$0xff] %v6017_v15 }
 0x256   : > { %v4865_v46 = vadd.f32 %v4864_v45, %v4834_v23  ;;  %4762 = vst [vmem:[%s6586_s4 + $0xe8] sm:$0xff] %v6018_v0  ;;  %v4794_v56 = vadd.f32 %v6018_v0, %v4793_v34  ;;  %v4835_v43 = vmul.f32 %v6018_v0, %v6018_v0 }
 0x257   : > { %6420 = shalt.err (!%p6417_p7)
}
 0x258   : > { %s6421_s24 = scalar_lea.hbm %s8331_s19, 4096  ;;  %s6425_s5 = scalar_lea.hbm %s8405_s2, 8192 }
 0x259   : > { %p6422_p8 = scmp.ne.s32.totalorder %s8331_s19, %s6421_s24  ;;  %p6426_p11 = scmp.lt.u32.totalorder %s8331_s19, %s8405_s2 }
 0x25a   : > { %p6427_p12 = scmp.lt.u32.totalorder %s6425_s5, %s6421_s24  ;;  %p6429_p0 = scmp.lt.u32.totalorder %s6421_s24, %s8331_s19 }
 0x25b   : > { %p6423_p9 = pnand %p6422_p8, %p6566_p5 }
 0x25c   : > { %p6428_p13 = por %p6427_p12, %p6426_p11 }
 0x25d   : > { %p6424_p10 = pneg %p6423_p9 }
 0x25e   : > { %p6430_p1 = por %p6429_p0, %p6428_p13 }
 0x260   : > { %p6431_p3 = pnand %p6430_p1, %p6424_p10 }
 0x262   : > { %6434 = shalt.err (!%p6431_p3)
}
 0x263   : > { %s6503_s8 = smov 128   ;;  %s6504_s9 = smov 8   ;;  %v4836_v5 = vmul.f32 %v6015_v14, %v6015_v14  ;;  %v4795_v48 = vadd.f32 %v6015_v14, %v4794_v56  ;;  %v4866_v55 = vadd.f32 %v4865_v46, %v4835_v43  ;;  %v4837_v58 = vmul.f32 %v6017_v15, %v6017_v15  ;;  %v4765_v20 = vld [vmem:[#allocation4] sm:$0x1]  ;;  %v4805_v51 = vld [vmem:[#allocation4 + $0x1] sm:$0x1] }
 0x264   : > { %6254 = dma.vmem_to_hbm [thread:$0]  (%p6566_p5), %s8333_s10, 4096, %s8331_s19, %s8340_s20, %s6503_s8, %s6503_s8, %s6504_s9  }
 0x265   : > { %v4796_v50 = vadd.f32 %v6017_v15, %v4795_v48  ;;  %v4867_v35 = vadd.f32 %v4866_v55, %v4836_v5  ;;  %s6505_s22 = smov [#allocation4]  }
 0x266   : > { %s4905_s30 = sshll.u32 %s6505_s22, 4  ;;  %s4906_s30 = int_to_ptr.vmem [resolvable:$true] %s4905_s30 }
 0x267   : > { %v4797_v33 = vrot.slane %v4796_v50, 4  ;;  %v4868_v39 = vadd.f32 %v4867_v35, %v4837_v58  ;;  %s6435_s10 = scalar_lea.vmem %s4906_s30, 32  ;;  %p6442_p8 = scmp.lt.s32.totalorder %s4906_s30, %s4906_s30 }
 0x268   : > { %p6436_p5 = scmp.ne.s32.totalorder %s4906_s30, %s6435_s10  ;;  %p6443_p9 = scmp.lt.s32.totalorder %s6435_s10, %s6435_s10 }
 0x269   : > { %v4798_v26 = vadd.f32 %v4797_v33, %v4796_v50  ;;  %v4869_v17 = vrot.slane %v4868_v39, 4 }
 0x26a   : > { %p6437_p4 = pnand %p6436_p5, %p83_p2  ;;  %p6444_p10 = por %p6443_p9, %p6442_p8 }
 0x26b   : > { %v4799_v40 = vrot.slane %v4798_v26, 2  ;;  %v4870_v29 = vadd.f32 %v4869_v17, %v4868_v39 }
 0x26c   : > { %p6438_p7 = pneg %p6437_p4 }
 0x26d   : > { %v4800_v49 = vadd.f32 %v4799_v40, %v4798_v26  ;;  %v4871_v7 = vrot.slane %v4870_v29, 2 }
 0x26e   : > { %p6445_p11 = pnand %p6444_p10, %p6438_p7 }
 0x26f   : > { %v4801_v60 = vrot.slane %v4800_v49, 1  ;;  %v4872_v24 = vadd.f32 %v4871_v7, %v4870_v29 }
 0x271   : > { %v4802_v30 = vadd.f32 %v4801_v60, %v4800_v49  ;;  %v4873_v31 = vrot.slane %v4872_v24, 1 }
 0x273   : > { %v4803_v25 = vadd.f32 %v4802_v30, %v4765_v20  ;;  %v4874_v21 = vadd.f32 %v4873_v31, %v4872_v24 }
 0x275   : > { %4804 = vst [vmem:[#allocation4] sm:$0x1] %v4803_v25  ;;  %v4875_v11 = vadd.f32 %v4874_v21, %v4805_v51 }
 0x277   : > { %4876 = vst [vmem:[#allocation4 + $0x1] sm:$0x1] %v4875_v11 }
 0x278   : > { %6448 = shalt.err (!%p6445_p11)
}
 0x279   : > { %s6449_s19 = scalar_lea.hbm %s8406_s3, 32 }
 0x27a   : > { %p6450_p12 = scmp.ne.s32.totalorder %s8406_s3, %s6449_s19  ;;  %p6455_p1 = scmp.lt.u32.totalorder %s6449_s19, %s8406_s3 }
 0x27c   : > { %p6451_p13 = pnand %p6450_p12, %p83_p2 }
 0x27e   : > { %p6452_p0 = pneg %p6451_p13 }
 0x280   : > { %p6457_p3 = pnand %p6455_p1, %p6452_p0 }
 0x282   : > { %6460 = shalt.err (!%p6457_p3)
}
 0x283   : > { %6256 = dma.vmem_to_hbm [thread:$0]  (%p83_p2), %s4906_s30, 32, %s8406_s3, [#allocation5]  }
 0x284   : > { %6478 = dma.done.wait (%p83_p2), [#allocation5], 32  }
 0x285   : > { %6480 = vsyncadd (%p83_p2), [#allocation5], 4294967264 }
 0x286 PF: > { %p6266_p5 = scmp.ge.s32.totalorder %s6499_s15, 2  ;;  %s4921_s4 = sand.u32 1, %s6487_s12  }
 0x287   : > { %s4922_s29 = scalar_lea.sflag [#allocation3], %s4921_s4 }
 0x288   : > { %p6261_p4 = pnand %p6266_p5, %p6570_p6 }
 0x28a   : > { %6482 = dma.done.wait (!%p6261_p4), %s4922_s29, 4096  }
 0x28b   : > { %6484 = vsyncadd (!%p6261_p4), %s4922_s29, 4294963200  ;;  %p15_p7 = scmp.ge.s32.totalorder %s6551_s18, 4   ;;  %s8472_s12 = smov %s6491_s13 }
 0x28c   : > { %s8473_s13 = smov %s6495_s14  ;;  %s8474_s14 = smov %s6562_s21 }
 0x28d   : > { %s8475_s15 = smov %s6551_s18  ;;  %17 = sbr.rel (!%p15_p7) target bundleno = 4 (0x4), region = 85 }
 0x294   :  { %4927 = vsyncpa [#allocation3], 1 }
 0x295   :  { %4929 = vsyncpa [#allocation3 + $0x1], 1 }
 0x296   :  { %4930 = vsyncpa [#allocation5], 1 }

</bundles_post_ra>
